<compile_context>
chip_gen: v7x
topology: tpu7x:2x2x1
jax: 0.10.0
libtpu: 0.0.40
codegen_flags: <defaults>
</compile_context>

<pallas_src>
import functools

import jax
import jax.numpy as jnp
from jax.experimental import pallas as pl
from jax.experimental.pallas import tpu as pltpu


def _round_up(x, m):
    return ((x + m - 1) // m) * m


def _bottom_to_up_kernel(paths_ref, emb_hbm, out_ref, ebuf, *, d_real):
    """Grid = (P, N_pad // TN): hop index p outer, A-row-slab index r inner.

    ebuf: (2, N_pad, DP) f32 ping-pong embedding buffer (lane d_real == 1.0).
    """
    p = pl.program_id(0)
    r = pl.program_id(1)

    tn = paths_ref.shape[0]      # rows per A slab
    dp = ebuf.shape[2]           # lane-dense (padded) feature width

    @pl.when(jnp.logical_and(p == 0, r == 0))
    def _():
        # One-time blocking HBM -> VMEM copy of the (padded) initial embedding.
        pltpu.sync_copy(emb_hbm, ebuf.at[0])

    cur = p % 2
    nxt = (p + 1) % 2

    # bf16 HBM storage (exact for 0/1 values); up-cast so in-kernel math is f32.
    a = paths_ref[...].astype(jnp.float32)                       # (TN, N_pad)

    e_all = ebuf[cur]                                            # (N_pad, DP)
    # Fused message + degree: lane d_real of e is all-ones, so
    # msg[:, d_real] == A_p[rows].sum(-1) comes out of the MXU for free.
    msg = jnp.dot(a, e_all, preferred_element_type=jnp.float32)  # (TN, DP)

    start = pl.multiple_of(r * tn, tn)
    e_slab = ebuf[cur, pl.ds(start, tn), :]                      # (TN, DP)

    deg = msg[:, d_real:d_real + 1] + 1.0                        # (TN, 1)
    inv = pl.reciprocal(deg, approx=True)                        # EUP slot
    inv = inv * (2.0 - deg * inv)                                # Newton step 1
    inv = inv * (2.0 - deg * inv)                                # Newton step 2 -> f32-accurate

    upd = (e_slab + msg) * inv                                   # (TN, DP)

    # Keep padding lanes exact: lane d_real stays 1.0, lanes > d_real stay 0.0.
    col = jax.lax.broadcasted_iota(jnp.int32, (tn, dp), 1)
    new_slab = jnp.where(col < d_real, upd, (col == d_real).astype(jnp.float32))

    ebuf[nxt, pl.ds(start, tn), :] = new_slab
    out_ref[...] = new_slab.astype(out_ref.dtype)                # final hop's write wins


def bottom_to_up_mean(embedding, bottom_to_top_paths,
                      *, vmem_budget_bytes=36 * 1024 * 1024):
    """MEAN branch of dehnn.bottom_to_up_layer.

    embedding:            [N, D]    float
    bottom_to_top_paths:  [P, N, N] float (0/1-valued hop/path matrices)
    """
    P, n2, n3 = bottom_to_top_paths.shape
    N, D = embedding.shape
    assert n2 == N and n3 == N, "path matrices must be [P, N, N]"
    out_dtype = embedding.dtype

    if P == 0:  # no hops -> identity (otherwise the output block is never written)
        return embedding

    dp = _round_up(D + 1, 128)  # lane-dense features + one all-ones lane for the degree

    # Pick the A row-slab size (multiple of 8) so everything fits a per-generation
    # safe VMEM budget (scoped limit of 48 MiB works on v5e / v6e / v7x).
    tn, n_pad = 8, _round_up(N, 128)
    for cand in (512, 256, 128, 64, 32, 16, 8):
        npad = _round_up(N, max(cand, 128))
        if cand > npad:
            continue
        need = (2 * cand * npad * 2      # bf16 A slab, double-buffered
                + cand * npad * 4        # f32 up-cast of the A slab (matmul operand)
                + 3 * npad * dp * 4      # ping-pong embedding buffers + slack
                + 6 * cand * dp * 4)     # out block (x2) + msg/new_slab temps
        if need <= vmem_budget_bytes:
            tn, n_pad = cand, npad
            break

    # Pad to (8,128)-friendly shapes; store A as bf16 (exact for 0/1 values).
    emb_pad = jnp.zeros((n_pad, dp), jnp.float32)
    emb_pad = emb_pad.at[:N, :D].set(embedding.astype(jnp.float32))
    emb_pad = emb_pad.at[:, D].set(1.0)                       # ones lane -> fused degree

    paths_pad = jnp.zeros((P, n_pad, n_pad), jnp.bfloat16)
    paths_pad = paths_pad.at[:, :N, :N].set(bottom_to_top_paths.astype(jnp.bfloat16))

    kernel = functools.partial(_bottom_to_up_kernel, d_real=D)

    out = pl.pallas_call(
        kernel,
        out_shape=jax.ShapeDtypeStruct((n_pad, dp), jnp.float32),
        grid_spec=pltpu.PrefetchScalarGridSpec(
            num_scalar_prefetch=0,
            grid=(P, n_pad // tn),   # hop index outer (sequential carry), row slabs inner
            in_specs=[
                # Row slab r of hop matrix A_p, streamed / double-buffered.
                pl.BlockSpec((pl.Squeezed(), tn, n_pad), lambda p, r: (p, r, 0)),
                # Initial embedding stays in HBM; copied once into the ping-pong buffer.
                pl.BlockSpec(memory_space=pl.ANY),
            ],
            out_specs=pl.BlockSpec((tn, dp), lambda p, r: (r, 0)),
            scratch_shapes=[pltpu.VMEM((2, n_pad, dp), jnp.float32)],
        ),
        compiler_params=pltpu.CompilerParams(
            # Both grid axes carry state (ping-pong across p, carry within p), so no
            # megacore sharding; with small D the kernel is HBM-bound on A anyway.
            dimension_semantics=("arbitrary", "arbitrary"),
            vmem_limit_bytes=48 * 1024 * 1024,
        ),
    )(paths_pad, emb_pad)

    return out[:N, :D].astype(out_dtype)


def _reference(embedding, paths):
    e = embedding
    for i in range(paths.shape[0]):
        a = paths[i]
        e = e + a @ e
        e = e * (1.0 / (a.sum(-1) + 1.0))[:, None]
    return e


if __name__ == "__main__":
    key = jax.random.PRNGKey(0)
    k1, k2 = jax.random.split(key)

    N, D, P = 16, 32, 3   # small shapes: 16 nodes, 32-dim embedding, 3 hop levels
    embedding = jax.random.normal(k1, (N, D), dtype=jnp.float32)
    # binary hop matrices (like adjacency / path selections in dehnn)
    paths = (jax.random.uniform(k2, (P, N, N)) > 0.7).astype(jnp.float32)

    out = jax.block_until_ready(bottom_to_up_mean(embedding, paths))
    ref = _reference(embedding, paths)

    assert out.shape == (N, D)
    # bf16 storage of A is exact (0/1 values); approx-reciprocal + 2 Newton steps is
    # f32-accurate, so only MXU accumulation ordering differs from the XLA reference.
    assert jnp.allclose(out, ref, atol=1e-4, rtol=1e-4), "mismatch vs reference"

    print("KERNEL_OK")
</pallas_src>

<mosaic_0001>
module attributes {stable_mosaic.version = 11 : i64} {
  func.func @_bottom_to_up_kernel(%arg0: i32, %arg1: i32, %arg2: memref<1x512x512xbf16, #tpu.memory_space<vmem>>, %arg3: memref<512x128xf32, #tpu.memory_space<any>>, %arg4: memref<512x128xf32, #tpu.memory_space<vmem>>, %arg5: memref<2x512x128xf32, #tpu.memory_space<vmem>>) attributes {dimension_semantics = [#tpu.dimension_semantics<arbitrary>, #tpu.dimension_semantics<arbitrary>], iteration_bounds = array<i64: 3, 1>, scalar_prefetch = 0 : i64, scratch_operands = 1 : i64, tpu.core_type = #tpu.core_type<tc>, window_params = [{transform_indices = @transform_0, window_bounds = array<i64: 1, 512, 512>}, {}, {transform_indices = @transform_2, window_bounds = array<i64: 512, 128>}]} {
    %c0_i32 = arith.constant 0 : i32
    %0 = arith.cmpi eq, %arg0, %c0_i32 : i32
    %c0_i32_0 = arith.constant 0 : i32
    %1 = arith.cmpi eq, %arg1, %c0_i32_0 : i32
    %2 = arith.andi %0, %1 : i1
    %3 = arith.extui %2 : i1 to i32
    %c0_i32_1 = arith.constant 0 : i32
    %4 = arith.cmpi ne, %3, %c0_i32_1 : i32
    scf.if %4 {
      %c0_i32_25 = arith.constant 0 : i32
      "tpu.region"() ({
        %68 = tpu.sem_alloc : memref<!tpu.dma_semaphore, #tpu.memory_space<semaphore_mem>>
        %c0_i32_26 = arith.constant 0 : i32
        %c0_i32_27 = arith.constant 0 : i32
        %69 = tpu.memref_slice %arg5[%c0_i32_25, %c0_i32_26, %c0_i32_27] : memref<2x512x128xf32, #tpu.memory_space<vmem>> -> memref<1x512x128xf32, #tpu.memory_space<vmem>>
        %70 = tpu.memref_squeeze %69 : memref<1x512x128xf32, #tpu.memory_space<vmem>> -> memref<512x128xf32, #tpu.memory_space<vmem>>
        tpu.enqueue_dma source(%arg3 : memref<512x128xf32, #tpu.memory_space<any>>) target(%70 : memref<512x128xf32, #tpu.memory_space<vmem>>) target_semaphore(%68 : memref<!tpu.dma_semaphore, #tpu.memory_space<semaphore_mem>>)
        %c0_i32_28 = arith.constant 0 : i32
        %c0_i32_29 = arith.constant 0 : i32
        %71 = tpu.memref_slice %arg5[%c0_i32_25, %c0_i32_28, %c0_i32_29] : memref<2x512x128xf32, #tpu.memory_space<vmem>> -> memref<1x512x128xf32, #tpu.memory_space<vmem>>
        %72 = tpu.memref_squeeze %71 : memref<1x512x128xf32, #tpu.memory_space<vmem>> -> memref<512x128xf32, #tpu.memory_space<vmem>>
        tpu.wait_dma2 semaphore(%68 : memref<!tpu.dma_semaphore, #tpu.memory_space<semaphore_mem>>) src(%arg3 : memref<512x128xf32, #tpu.memory_space<any>>) dst(%72 : memref<512x128xf32, #tpu.memory_space<vmem>>)
        tpu.yield
      }) : () -> ()
    } else {
    }
    %c2_i32 = arith.constant 2 : i32
    %c0_i32_2 = arith.constant 0 : i32
    %5 = arith.cmpi eq, %c2_i32, %c0_i32_2 : i32
    %c1_i32 = arith.constant 1 : i32
    %6 = arith.select %5, %c1_i32, %c2_i32 : i32
    %7 = arith.remsi %arg0, %6 : i32
    %c0_i32_3 = arith.constant 0 : i32
    %8 = arith.cmpi ne, %7, %c0_i32_3 : i32
    %c0_i32_4 = arith.constant 0 : i32
    %9 = arith.cmpi slt, %7, %c0_i32_4 : i32
    %c0_i32_5 = arith.constant 0 : i32
    %10 = arith.cmpi slt, %6, %c0_i32_5 : i32
    %11 = arith.xori %9, %10 : i1
    %12 = arith.andi %11, %8 : i1
    %13 = arith.addi %7, %6 : i32
    %14 = arith.select %12, %13, %7 : i32
    %c1_i32_6 = arith.constant 1 : i32
    %15 = arith.addi %arg0, %c1_i32_6 : i32
    %c2_i32_7 = arith.constant 2 : i32
    %c0_i32_8 = arith.constant 0 : i32
    %16 = arith.cmpi eq, %c2_i32_7, %c0_i32_8 : i32
    %c1_i32_9 = arith.constant 1 : i32
    %17 = arith.select %16, %c1_i32_9, %c2_i32_7 : i32
    %18 = arith.remsi %15, %17 : i32
    %c0_i32_10 = arith.constant 0 : i32
    %19 = arith.cmpi ne, %18, %c0_i32_10 : i32
    %c0_i32_11 = arith.constant 0 : i32
    %20 = arith.cmpi slt, %18, %c0_i32_11 : i32
    %c0_i32_12 = arith.constant 0 : i32
    %21 = arith.cmpi slt, %17, %c0_i32_12 : i32
    %22 = arith.xori %20, %21 : i1
    %23 = arith.andi %22, %19 : i1
    %24 = arith.addi %18, %17 : i32
    %25 = arith.select %23, %24, %18 : i32
    %c0 = arith.constant 0 : index
    %c0_13 = arith.constant 0 : index
    %c0_14 = arith.constant 0 : index
    %26 = vector.load %arg2[%c0, %c0_13, %c0_14] : memref<1x512x512xbf16, #tpu.memory_space<vmem>>, vector<1x512x512xbf16>
    %27 = vector.shape_cast %26 : vector<1x512x512xbf16> to vector<512x512xbf16>
    %28 = arith.extf %27 : vector<512x512xbf16> to vector<512x512xf32>
    %29 = arith.index_cast %14 : i32 to index
    %c0_15 = arith.constant 0 : index
    %c0_16 = arith.constant 0 : index
    %30 = vector.load %arg5[%29, %c0_15, %c0_16] : memref<2x512x128xf32, #tpu.memory_space<vmem>>, vector<1x512x128xf32>
    %31 = vector.shape_cast %30 : vector<1x512x128xf32> to vector<512x128xf32>
    %cst = arith.constant dense<0.000000e+00> : vector<512x128xf32>
    %32 = tpu.matmul %28, %31, %cst {dimension_numbers = #tpu.dot_dimension_numbers<[1], [0], [0], [1], [0, 0, 1, 1], [], []>} : vector<512x512xf32>, vector<512x128xf32>, vector<512x128xf32> -> vector<512x128xf32>
    %c512_i32 = arith.constant 512 : i32
    %33 = arith.muli %arg1, %c512_i32 : i32
    %34 = tpu.assume_multiple %33, 512 : i32
    %35 = arith.index_cast %14 : i32 to index
    %36 = arith.index_cast %34 : i32 to index
    %c0_17 = arith.constant 0 : index
    %37 = vector.load %arg5[%35, %36, %c0_17] : memref<2x512x128xf32, #tpu.memory_space<vmem>>, vector<1x512x128xf32>
    %38 = vector.shape_cast %37 : vector<1x512x128xf32> to vector<512x128xf32>
    %39 = vector.extract_strided_slice %32 {offsets = [0, 32], sizes = [512, 1], strides = [1, 1]} : vector<512x128xf32> to vector<512x1xf32>
    %cst_18 = arith.constant 1.000000e+00 : f32
    %40 = vector.broadcast %cst_18 : f32 to vector<512x1xf32>
    %41 = arith.addf %39, %40 : vector<512x1xf32>
    %42 = tpu.reciprocal %41 {approx = true} : vector<512x1xf32> -> vector<512x1xf32>
    %43 = arith.mulf %41, %42 : vector<512x1xf32>
    %cst_19 = arith.constant 2.000000e+00 : f32
    %44 = vector.broadcast %cst_19 : f32 to vector<512x1xf32>
    %45 = arith.subf %44, %43 : vector<512x1xf32>
    %46 = arith.mulf %42, %45 : vector<512x1xf32>
    %47 = arith.mulf %41, %46 : vector<512x1xf32>
    %cst_20 = arith.constant 2.000000e+00 : f32
    %48 = vector.broadcast %cst_20 : f32 to vector<512x1xf32>
    %49 = arith.subf %48, %47 : vector<512x1xf32>
    %50 = arith.mulf %46, %49 : vector<512x1xf32>
    %51 = arith.addf %38, %32 : vector<512x128xf32>
    %52 = vector.broadcast %50 : vector<512x1xf32> to vector<512x128xf32>
    %53 = arith.mulf %51, %52 : vector<512x128xf32>
    %54 = tpu.iota {dimensions = array<i32: 1>} : vector<512x128xi32>
    %c32_i32 = arith.constant 32 : i32
    %55 = vector.broadcast %c32_i32 : i32 to vector<512x128xi32>
    %56 = arith.cmpi slt, %54, %55 : vector<512x128xi32>
    %c32_i32_21 = arith.constant 32 : i32
    %57 = vector.broadcast %c32_i32_21 : i32 to vector<512x128xi32>
    %58 = arith.cmpi eq, %54, %57 : vector<512x128xi32>
    %59 = arith.extui %58 : vector<512x128xi1> to vector<512x128xi32>
    %60 = arith.sitofp %59 : vector<512x128xi32> to vector<512x128xf32>
    %61 = arith.select %56, %53, %60 : vector<512x128xi1>, vector<512x128xf32>
    %62 = arith.index_cast %25 : i32 to index
    %63 = arith.index_cast %34 : i32 to index
    %c0_22 = arith.constant 0 : index
    %64 = vector.load %arg5[%62, %63, %c0_22] : memref<2x512x128xf32, #tpu.memory_space<vmem>>, vector<1x512x128xf32>
    %65 = vector.shape_cast %64 : vector<1x512x128xf32> to vector<512x128xf32>
    %66 = vector.shape_cast %61 : vector<512x128xf32> to vector<1x512x128xf32>
    tpu.vector_store %arg5[%62, %63, %c0_22], %66 {strides = array<i32>} : memref<2x512x128xf32, #tpu.memory_space<vmem>>, vector<1x512x128xf32>,
    %c0_23 = arith.constant 0 : index
    %c0_24 = arith.constant 0 : index
    %67 = vector.load %arg4[%c0_23, %c0_24] : memref<512x128xf32, #tpu.memory_space<vmem>>, vector<512x128xf32>
    tpu.vector_store %arg4[%c0_23, %c0_24], %61 {strides = array<i32>} : memref<512x128xf32, #tpu.memory_space<vmem>>, vector<512x128xf32>,
    return
  }
  func.func @transform_0(%arg0: i32, %arg1: i32) -> (i32, i32, i32) {
    %c0_i32 = arith.constant 0 : i32
    %c0_i32_0 = arith.constant 0 : i32
    return %arg0, %arg1, %c0_i32 : i32, i32, i32
  }
  func.func @transform_2(%arg0: i32, %arg1: i32) -> (i32, i32) {
    %c0_i32 = arith.constant 0 : i32
    %c0_i32_0 = arith.constant 0 : i32
    return %arg1, %c0_i32 : i32, i32
  }
}

</mosaic_0001>

<bundles_post_ra>
// kernel: tpu_custom_call.1
= control target key start
LH: loop header
LB: loop body
LE: loop exit
PB: predicated region body
PF: predicated region fallthrough
CT: control target
= control target key end

     0   :  { %7 = vsyncpa [#allocation4], 0  ;;  %s4602_s0 = inlined_call_operand.hbm [shape: bf16[3,512,512], index: 0, kind: input, shape index: {}]   ;;  %s4603_s1 = inlined_call_operand.hbm [shape: f32[512,128], index: 1, kind: input, shape index: {}]   ;;  %s4604_s2 = inlined_call_operand.hbm [shape: f32[512,128], index: 2, kind: output, shape index: {}]  }
   0x1   :  { %9 = vsyncpa [#allocation4 + $0x1], 0 }
   0x2   :  { %10 = vsyncpa [#allocation5], 0  ;;  %s3272_s9 = smov 0   ;;  %s3274_s10 = smov 0  }
   0x3   :  { %s3276_s11 = smov 0   ;;  %s3278_s12 = smov 0  }
   0x4   :  { %s3280_s13 = smov 0   ;;  %s3282_s14 = smov 0  }
   0x5 LB: > { %s2727_s15 = sadd.s32 4294967295, %s3245_s14   ;;  %s28_s16 = sadd.s32 1, %s3241_s13  ;;  %s3245_s14 = sphi %s3282_s14, %s16_s14   ;;  %s3241_s13 = sphi %s3280_s13, %s4625_s13   ;;  %s3237_s12 = sphi %s3278_s12, %s4624_s12   ;;  %s3233_s11 = sphi %s3276_s11, %s4623_s11   ;;  %s3229_s10 = sphi %s3274_s10, %s4622_s10   ;;  %s3225_s9 = sphi %s3272_s9, %s4621_s9  }
   0x6   : > { %p30_p0 = scmp.ge.s32.totalorder %s28_s16, 3  ;;  %s37_s17 = sadd.s32 1, %s3233_s11 }
   0x7   : > { %p44_p1 = scmp.ne.s32.totalorder %s3233_s11, %s3229_s10  ;;  %p45_p2 = scmp.eq.s32.totalorder %s3245_s14, 0 }
   0x8   : > { %s4627_s16 = smov (%p30_p0, %s28_s16), 0  ;;  %p50_p4 = scmp.ne.s32.totalorder %s3229_s10, %s3225_s9 }
   0x9   : > { %p3308_p3 = por %p45_p2, %p44_p1  ;;  %s32_s19 = ssub.s32 %s3241_s13, %s4627_s16 }
   0xa   : > { %p51_p5 = scmp.eq.s32.totalorder %s2727_s15, 0  ;;  %p35_p6 = scmp.eq.s32.totalorder %s32_s19, 0 }
   0xb   : > { %p2921_p8 = scmp.lt.s32.totalorder %s3245_s14, 3  ;;  %s100_s22 = sand.u32 1, %s3233_s11  }
   0xc   : > { %p3317_p7 = por %p51_p5, %p50_p4  ;;  %s2749_s23 = sshll.u32 %s3241_s13, 14 }
   0xd   : > { %s3323_s21 = scalar_select %p35_p6, %s3233_s11, %s37_s17  }
   0xe   : > { %s2730_s24 = sshll.u32 %s100_s22, 10  ;;  %s3330_s27 = scalar_lea.hbm %s4602_s0, %s2749_s23 }
   0xf   : > { %s104_s28 = scalar_lea.vmem [#allocation3], %s2730_s24  ;;  %p3334_p9 = pnand %p2921_p8, %p3308_p3 }
  0x10   : > { %s114_s29 = sshll.u32 %s104_s28, 4  ;;  %s3340_s3 = scalar_lea.sflag [#allocation4], %s100_s22  ;;  %s3338_s29 = int_to_ptr.vmem [resolvable:$true] %s114_s29 }
  0x11   : > { %s3111_s4 = scalar_lea.hbm %s3330_s27, 16384  ;;  %p3113_p11 = pneg %p3334_p9 }
  0x12   : > { %p3112_p10 = scmp.ne.s32.totalorder %s3330_s27, %s3111_s4  ;;  %s3116_s7 = scalar_lea.hbm %s4602_s0, 49152 }
  0x13   : > { %p3117_p0 = scmp.lt.u32.totalorder %s3330_s27, %s4602_s0  ;;  %p3118_p1 = scmp.lt.u32.totalorder %s3116_s7, %s3111_s4 }
  0x14   : > { %p3114_p12 = pnand %p3113_p11, %p3112_p10  ;;  %p3120_p3 = scmp.lt.u32.totalorder %s3111_s4, %s3330_s27 }
  0x15   : > { %p3119_p2 = por %p3118_p1, %p3117_p0 }
  0x16   : > { %p3115_p13 = pneg %p3114_p12 }
  0x17   : > { %p3121_p4 = por %p3120_p3, %p3119_p2 }
  0x19   : > { %p3122_p5 = pnand %p3121_p4, %p3115_p13 }
  0x1b   : > { %3125 = shalt.err (!%p3122_p5)
}
  0x1c   : > { %s3126_s17 = scalar_lea.vmem %s3338_s29, 16384  ;;  %s3247_s18 = smov [#allocation3]  }
  0x1d   : > { %p3127_p6 = scmp.ne.s32.totalorder %s3338_s29, %s3126_s17  ;;  %s3131_s19 = sshll.u32 %s3247_s18, 4  ;;  %s3132_s19 = int_to_ptr.vmem [resolvable:$false] %s3131_s19 }
  0x1e   : > { %s3133_s22 = scalar_lea.vmem %s3132_s19, 32768  ;;  %p3134_p12 = scmp.lt.s32.totalorder %s3338_s29, %s3132_s19 }
  0x1f   : > { %p3129_p8 = pnand %p3127_p6, %p3113_p11  ;;  %p3135_p0 = scmp.lt.s32.totalorder %s3133_s22, %s3126_s17 }
  0x21   : > { %p3130_p10 = pneg %p3129_p8  ;;  %p3136_p1 = por %p3135_p0, %p3134_p12 }
  0x23   : > { %p3137_p2 = pnand %p3136_p1, %p3130_p10 }
  0x25   : > { %3140 = shalt.err (!%p3137_p2)
}
  0x26   : > { %s3248_s23 = smov 256   ;;  %s3249_s24 = smov 16  }
  0x27   : > { %2920 = dma.hbm_to_vmem [thread:$0]  (!%p3334_p9), %s3330_s27, 16384, %s3338_s29, %s3340_s3, %s3248_s23, %s3248_s23, %s3249_s24  }
  0x28   : > { %p2733_p11 = scmp.ge.s32.totalorder %s3245_s14, 1  ;;  %p122_p13 = scmp.lt.s32.totalorder %s3245_s14, 4 }
  0x2a   : > { %p123_p3 = pnand %p2733_p11, %p122_p13 }
  0x2c   : > { %126 = sbr.rel (%p123_p3) target bundleno = 1039 (0x40f), region = 24 }
  0x33   : > { %s128_s25 = sand.u32 1, %s3229_s10  }
  0x34   : > { %s2734_s26 = sshll.u32 %s128_s25, 10  ;;  %s129_s28 = scalar_lea.sflag [#allocation4], %s128_s25 }
  0x35   : > { %s3371_s4 = scalar_lea.vmem [#allocation3], %s2734_s26 }
  0x36   : > { %3214 = dma.done.wait (%p3317_p7), %s129_s28, 16384  }
  0x37   : > { %3216 = vsyncadd (%p3317_p7), %s129_s28, 4294950912  ;;  %p148_p4 = scmp.eq.s32.totalorder %s3237_s12, 0 }
  0x39   : > { %153 = sbr.rel (!%p148_p4) target bundleno = 83 (0x53), region = 32 }
  0x40   : > { %s3250_s27 = smov [#allocation2]   ;;  %s3141_s5 = scalar_lea.hbm %s4603_s1, 8192 }
  0x41   : > { %s161_s29 = sshll.u32 %s3250_s27, 4  ;;  %p3142_p9 = scmp.ne.s32.totalorder %s4603_s1, %s3141_s5  ;;  %s162_s29 = int_to_ptr.vmem [resolvable:$true] %s161_s29 }
  0x42   : > { %p3145_p5 = scmp.lt.u32.totalorder %s3141_s5, %s4603_s1 }
  0x44   : > { %p3147_p6 = pnand %p3145_p5, %p3142_p9 }
  0x46   : > { %3150 = shalt.err (!%p3147_p6)  }
  0x47   : > { %s3151_s20 = scalar_lea.vmem %s162_s29, 8192  ;;  %s3155_s17 = scalar_lea.vmem %s162_s29, 16384 }
  0x48   : > { %p3152_p7 = scmp.ne.s32.totalorder %s162_s29, %s3151_s20  ;;  %p3156_p8 = scmp.lt.s32.totalorder %s162_s29, %s162_s29 }
  0x49   : > { %p3157_p10 = scmp.lt.s32.totalorder %s3155_s17, %s3151_s20 }
  0x4b   : > { %p3158_p12 = por %p3157_p10, %p3156_p8 }
  0x4d   : > { %p3159_p0 = pnand %p3158_p12, %p3152_p7 }
  0x4f   : > { %3162 = shalt.err (!%p3159_p0)  }
  0x50   : > { %164 = dma.hbm_to_vmem [thread:$0]  %s4603_s1, 8192, %s162_s29, [#allocation7] }
  0x51   : > { %3217 = dma.done.wait [#allocation7], 8192 }
  0x52   : > { %3218 = vsyncadd [#allocation7], 4294959104 }
  0x53 PF: > { %p168_p1 = scmp.lt.s32.totalorder %s3237_s12, 0  ;;  %s169_s22 = ssub.s32 0, %s3237_s12  ;;  %v3393_v0 = vld [vmem:[%s3371_s4] sm:$0xff]  ;;  %v3396_v1 = vld [vmem:[%s3371_s4 + $0x8] sm:$0xff]  ;;  %v3251_v2 = vmov 0.0|0.0  }
  0x54   : > { %2751 = vmatprep.subr.bf16.mxu1 %v3251_v2  ;;  %2799 = vmatprep.subr.bf16.mxu0 %v3251_v2  ;;  %s2736_s23 = smin.u32 %s3237_s12, %s169_s22  ;;  %v322_v3 = vunpack.c.h.bf16 %v3393_v0  ;;  %v324_v4 = vunpack.c.h.bf16 %v3396_v1  ;;  %s3254_s8 = smov [#allocation6]  }
  0x55   : > { %s171_s24 = sand.u32 1, %s2736_s23   ;;  %s2650_s9 = sshll.u32 %s3254_s8, 4  ;;  %s2651_s9 = int_to_ptr.vmem [resolvable:$true] %s2650_s9 }
  0x56   : > { %s172_s25 = ssub.s32 0, %s171_s24  ;;  %707 = vmatprep.mubr.f32.mxu1 %v322_v3  ;;  %1092 = vmatprep.mubr.f32.mxu0 %v324_v4  ;;  %p4554_p3 = scmp.eq.s32.totalorder %s2727_s15, 2 }
  0x57   : > { %s4629_s25 = smov (!%p168_p1, %s172_s25), %s171_s24  ;;  %s3163_s17 = scalar_lea.vmem %s2651_s9, 8192 }
  0x58   : > { %p2738_p2 = scmp.lt.s32.totalorder %s4629_s25, 0  ;;  %s178_s26 = sadd.s32 2, %s4629_s25 }
  0x59   : > { %p3164_p4 = scmp.ne.s32.totalorder %s2651_s9, %s3163_s17  ;;  %p3170_p6 = scmp.lt.s32.totalorder %s2651_s9, %s2651_s9 }
  0x5a   : > { %s4631_s26 = smov (!%p2738_p2, %s178_s26), %s4629_s25  ;;  %p3171_p7 = scmp.lt.s32.totalorder %s3163_s17, %s3163_s17 }
  0x5b   : > { %s2742_s28 = sshll.u32 %s4631_s26, 9  ;;  %p3165_p9 = pnand %p3164_p4, %p4554_p3 }
  0x5c   : > { %s3405_s27 = scalar_lea.vmem [#allocation2], %s2742_s28  ;;  %p3172_p8 = por %p3171_p7, %p3170_p6 }
  0x5d   : > { %v579_v5 = vld [vmem:[%s3405_s27] sm:$0xff]  ;;  %v580_v6 = vld [vmem:[%s3405_s27 + $0x8] sm:$0xff]  ;;  %v581_v10 = vld [vmem:[%s3405_s27 + $0x10] sm:$0xff]  ;;  %p3166_p5 = pneg %p3165_p9 }
  0x5e   : > { %v611_v7 = vld [vmem:[%s3405_s27 + $0x100] sm:$0xff]  ;;  %v2752_v8 = vpack.c.bf16 %v580_v6, %v579_v5  ;;  %v612_v9 = vld [vmem:[%s3405_s27 + $0x108] sm:$0xff]  ;;  %v582_v11 = vld [vmem:[%s3405_s27 + $0x18] sm:$0xff] }
  0x5f   : > { %v2800_v12 = vpack.c.bf16 %v612_v9, %v611_v7  ;;  %v613_v13 = vld [vmem:[%s3405_s27 + $0x110] sm:$0xff]  ;;  %v614_v14 = vld [vmem:[%s3405_s27 + $0x118] sm:$0xff]  ;;  %v2755_v15 = vpack.c.bf16 %v582_v11, %v581_v10  ;;  %v583_v17 = vld [vmem:[%s3405_s27 + $0x20] sm:$0xff]  ;;  %p3173_p10 = pnand %p3172_p8, %p3166_p5 }
  0x60   : > { %2753 = vmatpush1.bf16.msra.mxu1 %v2752_v8  ;;  %v2803_v16 = vpack.c.bf16 %v614_v14, %v613_v13  ;;  %v584_v18 = vld [vmem:[%s3405_s27 + $0x28] sm:$0xff]  ;;  %v615_v19 = vld [vmem:[%s3405_s27 + $0x120] sm:$0xff]  ;;  %v585_v23 = vld [vmem:[%s3405_s27 + $0x30] sm:$0xff] }
  0x61   : > { %2801 = vmatpush1.bf16.msra.mxu0 %v2800_v12  ;;  %2754 = vmatprep.subr.bf16.mxu1 %v3251_v2  ;;  %v616_v20 = vld [vmem:[%s3405_s27 + $0x128] sm:$0xff]  ;;  %v2758_v21 = vpack.c.bf16 %v584_v18, %v583_v17  ;;  %v586_v24 = vld [vmem:[%s3405_s27 + $0x38] sm:$0xff]  ;;  %v617_v25 = vld [vmem:[%s3405_s27 + $0x130] sm:$0xff] }
  0x62   : > { %2802 = vmatprep.subr.bf16.mxu0 %v3251_v2  ;;  %v2806_v22 = vpack.c.bf16 %v616_v20, %v615_v19  ;;  %v618_v26 = vld [vmem:[%s3405_s27 + $0x138] sm:$0xff]  ;;  %v2761_v27 = vpack.c.bf16 %v586_v24, %v585_v23  ;;  %v587_v29 = vld [vmem:[%s3405_s27 + $0x40] sm:$0xff]  ;;  %v588_v30 = vld [vmem:[%s3405_s27 + $0x48] sm:$0xff] }
  0x63   : > { %v2809_v28 = vpack.c.bf16 %v618_v26, %v617_v25  ;;  %v619_v31 = vld [vmem:[%s3405_s27 + $0x140] sm:$0xff]  ;;  %v620_v32 = vld [vmem:[%s3405_s27 + $0x148] sm:$0xff]  ;;  %v2764_v33 = vpack.c.bf16 %v588_v30, %v587_v29  ;;  %v589_v35 = vld [vmem:[%s3405_s27 + $0x50] sm:$0xff] }
  0x64   : > { %2756 = vmatpush1.bf16.msra.mxu1 %v2755_v15  ;;  %v2812_v34 = vpack.c.bf16 %v620_v32, %v619_v31  ;;  %v590_v36 = vld [vmem:[%s3405_s27 + $0x58] sm:$0xff]  ;;  %v621_v37 = vld [vmem:[%s3405_s27 + $0x150] sm:$0xff]  ;;  %v591_v41 = vld [vmem:[%s3405_s27 + $0x60] sm:$0xff] }
  0x65   : > { %2804 = vmatpush1.bf16.msra.mxu0 %v2803_v16  ;;  %2757 = vmatprep.subr.bf16.mxu1 %v3251_v2  ;;  %v622_v38 = vld [vmem:[%s3405_s27 + $0x158] sm:$0xff]  ;;  %v2767_v39 = vpack.c.bf16 %v590_v36, %v589_v35  ;;  %v592_v42 = vld [vmem:[%s3405_s27 + $0x68] sm:$0xff]  ;;  %v623_v43 = vld [vmem:[%s3405_s27 + $0x160] sm:$0xff] }
  0x66   : > { %2805 = vmatprep.subr.bf16.mxu0 %v3251_v2  ;;  %v2815_v40 = vpack.c.bf16 %v622_v38, %v621_v37  ;;  %v624_v44 = vld [vmem:[%s3405_s27 + $0x168] sm:$0xff]  ;;  %v2770_v45 = vpack.c.bf16 %v592_v42, %v591_v41  ;;  %v593_v47 = vld [vmem:[%s3405_s27 + $0x70] sm:$0xff]  ;;  %v594_v48 = vld [vmem:[%s3405_s27 + $0x78] sm:$0xff]  ;;  %v321_v42 = vunpack.c.l.bf16 %v3393_v0 }
  0x67   : > { %v2818_v46 = vpack.c.bf16 %v624_v44, %v623_v43  ;;  %v625_v49 = vld [vmem:[%s3405_s27 + $0x170] sm:$0xff]  ;;  %v626_v50 = vld [vmem:[%s3405_s27 + $0x178] sm:$0xff]  ;;  %v2773_v51 = vpack.c.bf16 %v594_v48, %v593_v47  ;;  %v595_v53 = vld [vmem:[%s3405_s27 + $0x80] sm:$0xff]  ;;  %v323_v43 = vunpack.c.l.bf16 %v3396_v1 }
  0x68   : > { %2759 = vmatpush1.bf16.msra.mxu1 %v2758_v21  ;;  %v2821_v52 = vpack.c.bf16 %v626_v50, %v625_v49  ;;  %v596_v54 = vld [vmem:[%s3405_s27 + $0x88] sm:$0xff]  ;;  %v627_v55 = vld [vmem:[%s3405_s27 + $0x180] sm:$0xff]  ;;  %v597_v59 = vld [vmem:[%s3405_s27 + $0x90] sm:$0xff] }
  0x69   : > { %2807 = vmatpush1.bf16.msra.mxu0 %v2806_v22  ;;  %2760 = vmatprep.subr.bf16.mxu1 %v3251_v2  ;;  %v628_v56 = vld [vmem:[%s3405_s27 + $0x188] sm:$0xff]  ;;  %v2776_v57 = vpack.c.bf16 %v596_v54, %v595_v53  ;;  %v598_v60 = vld [vmem:[%s3405_s27 + $0x98] sm:$0xff]  ;;  %v629_v61 = vld [vmem:[%s3405_s27 + $0x190] sm:$0xff] }
  0x6a   : > { %2808 = vmatprep.subr.bf16.mxu0 %v3251_v2  ;;  %v2824_v58 = vpack.c.bf16 %v628_v56, %v627_v55  ;;  %v630_v62 = vld [vmem:[%s3405_s27 + $0x198] sm:$0xff]  ;;  %v2779_v63 = vpack.c.bf16 %v598_v60, %v597_v59  ;;  %v599_v4 = vld [vmem:[%s3405_s27 + $0xa0] sm:$0xff]  ;;  %v600_v5 = vld [vmem:[%s3405_s27 + $0xa8] sm:$0xff] }
  0x6b   : > { %v2827_v3 = vpack.c.bf16 %v630_v62, %v629_v61  ;;  %v631_v6 = vld [vmem:[%s3405_s27 + $0x1a0] sm:$0xff]  ;;  %v632_v7 = vld [vmem:[%s3405_s27 + $0x1a8] sm:$0xff]  ;;  %v2782_v8 = vpack.c.bf16 %v600_v5, %v599_v4  ;;  %v601_v10 = vld [vmem:[%s3405_s27 + $0xb0] sm:$0xff] }
  0x6c   : > { %2762 = vmatpush1.bf16.msra.mxu1 %v2761_v27  ;;  %v2830_v9 = vpack.c.bf16 %v632_v7, %v631_v6  ;;  %v602_v11 = vld [vmem:[%s3405_s27 + $0xb8] sm:$0xff]  ;;  %v633_v12 = vld [vmem:[%s3405_s27 + $0x1b0] sm:$0xff]  ;;  %v603_v16 = vld [vmem:[%s3405_s27 + $0xc0] sm:$0xff] }
  0x6d   : > { %2810 = vmatpush1.bf16.msra.mxu0 %v2809_v28  ;;  %2763 = vmatprep.subr.bf16.mxu1 %v3251_v2  ;;  %v634_v13 = vld [vmem:[%s3405_s27 + $0x1b8] sm:$0xff]  ;;  %v2785_v14 = vpack.c.bf16 %v602_v11, %v601_v10  ;;  %v604_v17 = vld [vmem:[%s3405_s27 + $0xc8] sm:$0xff]  ;;  %v635_v18 = vld [vmem:[%s3405_s27 + $0x1c0] sm:$0xff] }
  0x6e   : > { %2811 = vmatprep.subr.bf16.mxu0 %v3251_v2  ;;  %v2833_v15 = vpack.c.bf16 %v634_v13, %v633_v12  ;;  %v636_v19 = vld [vmem:[%s3405_s27 + $0x1c8] sm:$0xff]  ;;  %v2788_v20 = vpack.c.bf16 %v604_v17, %v603_v16  ;;  %v605_v22 = vld [vmem:[%s3405_s27 + $0xd0] sm:$0xff]  ;;  %v606_v23 = vld [vmem:[%s3405_s27 + $0xd8] sm:$0xff] }
  0x6f   : > { %v2836_v21 = vpack.c.bf16 %v636_v19, %v635_v18  ;;  %v637_v24 = vld [vmem:[%s3405_s27 + $0x1d0] sm:$0xff]  ;;  %v638_v25 = vld [vmem:[%s3405_s27 + $0x1d8] sm:$0xff]  ;;  %v2791_v26 = vpack.c.bf16 %v606_v23, %v605_v22  ;;  %v607_v28 = vld [vmem:[%s3405_s27 + $0xe0] sm:$0xff] }
  0x70   : > { %2765 = vmatpush1.bf16.msra.mxu1 %v2764_v33  ;;  %v2839_v27 = vpack.c.bf16 %v638_v25, %v637_v24  ;;  %v608_v29 = vld [vmem:[%s3405_s27 + $0xe8] sm:$0xff]  ;;  %v639_v30 = vld [vmem:[%s3405_s27 + $0x1e0] sm:$0xff]  ;;  %v610_v35 = vld [vmem:[%s3405_s27 + $0xf8] sm:$0xff] }
  0x71   : > { %2813 = vmatpush1.bf16.msra.mxu0 %v2812_v34  ;;  %2766 = vmatprep.subr.bf16.mxu1 %v3251_v2  ;;  %v640_v31 = vld [vmem:[%s3405_s27 + $0x1e8] sm:$0xff]  ;;  %v2794_v32 = vpack.c.bf16 %v608_v29, %v607_v28  ;;  %v609_v34 = vld [vmem:[%s3405_s27 + $0xf0] sm:$0xff]  ;;  %v642_v37 = vld [vmem:[%s3405_s27 + $0x1f8] sm:$0xff] }
  0x72   : > { %2814 = vmatprep.subr.bf16.mxu0 %v3251_v2  ;;  %v2842_v33 = vpack.c.bf16 %v640_v31, %v639_v30  ;;  %v641_v36 = vld [vmem:[%s3405_s27 + $0x1f0] sm:$0xff]  ;;  %v2797_v38 = vpack.c.bf16 %v610_v35, %v609_v34  ;;  %v196_v41 = vld [vmem:[%s3371_s4 + $0x18] sm:$0xff]  ;;  %v198_v47 = vld [vmem:[%s3371_s4 + $0x28] sm:$0xff] }
  0x73   : > { %v332_v0 = vunpack.c.h.bf16 %v198_v47  ;;  %v199_v50 = vld [vmem:[%s3371_s4 + $0x30] sm:$0xff]  ;;  %v331_v1 = vunpack.c.l.bf16 %v198_v47  ;;  %v201_v55 = vld [vmem:[%s3371_s4 + $0x40] sm:$0xff]  ;;  %v202_v56 = vld [vmem:[%s3371_s4 + $0x48] sm:$0xff] }
  0x74   : > { %2768 = vmatpush1.bf16.msra.mxu1 %v2767_v39  ;;  %v2845_v39 = vpack.c.bf16 %v642_v37, %v641_v36  ;;  %v334_v53 = vunpack.c.h.bf16 %v199_v50  ;;  %v338_v59 = vunpack.c.h.bf16 %v201_v55  ;;  %v340_v60 = vunpack.c.h.bf16 %v202_v56  ;;  %v203_v61 = vld [vmem:[%s3371_s4 + $0x50] sm:$0xff]  ;;  %v204_v62 = vld [vmem:[%s3371_s4 + $0x58] sm:$0xff]  ;;  %v205_v6 = vld [vmem:[%s3371_s4 + $0x60] sm:$0xff] }
  0x75   : > { %2816 = vmatpush1.bf16.msra.mxu0 %v2815_v40  ;;  %2769 = vmatprep.subr.bf16.mxu1 %v3251_v2  ;;  %v195_v40 = vld [vmem:[%s3371_s4 + $0x10] sm:$0xff]  ;;  %v342_v4 = vunpack.c.h.bf16 %v203_v61  ;;  %v344_v5 = vunpack.c.h.bf16 %v204_v62  ;;  %v206_v7 = vld [vmem:[%s3371_s4 + $0x68] sm:$0xff]  ;;  %v346_v10 = vunpack.c.h.bf16 %v205_v6  ;;  %v208_v13 = vld [vmem:[%s3371_s4 + $0x78] sm:$0xff] }
  0x76   : > { %2817 = vmatprep.subr.bf16.mxu0 %v3251_v2  ;;  %v326_v44 = vunpack.c.h.bf16 %v195_v40  ;;  %v325_v48 = vunpack.c.l.bf16 %v195_v40  ;;  %v348_v11 = vunpack.c.h.bf16 %v206_v7  ;;  %v207_v12 = vld [vmem:[%s3371_s4 + $0x70] sm:$0xff]  ;;  %v352_v17 = vunpack.c.h.bf16 %v208_v13  ;;  %v209_v18 = vld [vmem:[%s3371_s4 + $0x80] sm:$0xff]  ;;  %v210_v19 = vld [vmem:[%s3371_s4 + $0x88] sm:$0xff] }
  0x77   : > { %v350_v16 = vunpack.c.h.bf16 %v207_v12  ;;  %v354_v22 = vunpack.c.h.bf16 %v209_v18  ;;  %v356_v23 = vunpack.c.h.bf16 %v210_v19  ;;  %v211_v24 = vld [vmem:[%s3371_s4 + $0x90] sm:$0xff]  ;;  %v212_v25 = vld [vmem:[%s3371_s4 + $0x98] sm:$0xff]  ;;  %v213_v30 = vld [vmem:[%s3371_s4 + $0xa0] sm:$0xff] }
  0x78   : > { %2771 = vmatpush1.bf16.msra.mxu1 %v2770_v45  ;;  %v328_v45 = vunpack.c.h.bf16 %v196_v41  ;;  %v358_v28 = vunpack.c.h.bf16 %v211_v24  ;;  %v360_v29 = vunpack.c.h.bf16 %v212_v25  ;;  %v214_v31 = vld [vmem:[%s3371_s4 + $0xa8] sm:$0xff]  ;;  %v362_v34 = vunpack.c.h.bf16 %v213_v30  ;;  %v215_v36 = vld [vmem:[%s3371_s4 + $0xb0] sm:$0xff]  ;;  %v216_v37 = vld [vmem:[%s3371_s4 + $0xb8] sm:$0xff] }
  0x79   : > { %2819 = vmatpush1.bf16.msra.mxu0 %v2818_v46  ;;  %2772 = vmatprep.subr.bf16.mxu1 %v3251_v2  ;;  %v197_v46 = vld [vmem:[%s3371_s4 + $0x20] sm:$0xff]  ;;  %v364_v35 = vunpack.c.h.bf16 %v214_v31  ;;  %v366_v40 = vunpack.c.h.bf16 %v215_v36 }
  0x7a   : > { %2820 = vmatprep.subr.bf16.mxu0 %v3251_v2  ;;  %v330_v49 = vunpack.c.h.bf16 %v197_v46 }
  0x7c   : > { %2774 = vmatpush1.bf16.msra.mxu1 %v2773_v51  ;;  %v200_v51 = vld [vmem:[%s3371_s4 + $0x38] sm:$0xff] }
  0x7d   : > { %2822 = vmatpush1.bf16.msra.mxu0 %v2821_v52  ;;  %2775 = vmatprep.subr.bf16.mxu1 %v3251_v2  ;;  %v329_v52 = vunpack.c.l.bf16 %v197_v46  ;;  %v336_v54 = vunpack.c.h.bf16 %v200_v51 }
  0x7e   : > { %2823 = vmatprep.subr.bf16.mxu0 %v3251_v2 }
  0x80   : > { %2777 = vmatpush1.bf16.msra.mxu1 %v2776_v57  ;;  %v333_v57 = vunpack.c.l.bf16 %v199_v50 }
  0x81   : > { %2825 = vmatpush1.bf16.msra.mxu0 %v2824_v58  ;;  %2778 = vmatprep.subr.bf16.mxu1 %v3251_v2  ;;  %v335_v58 = vunpack.c.l.bf16 %v200_v51 }
  0x82   : > { %2826 = vmatprep.subr.bf16.mxu0 %v3251_v2 }
  0x84   : > { %2780 = vmatpush1.bf16.msra.mxu1 %v2779_v63  ;;  %v337_v63 = vunpack.c.l.bf16 %v201_v55 }
  0x85   : > { %2828 = vmatpush1.bf16.msra.mxu0 %v2827_v3  ;;  %2781 = vmatprep.subr.bf16.mxu1 %v3251_v2  ;;  %v339_v3 = vunpack.c.l.bf16 %v202_v56 }
  0x86   : > { %2829 = vmatprep.subr.bf16.mxu0 %v3251_v2 }
  0x88   : > { %2783 = vmatpush1.bf16.msra.mxu1 %v2782_v8  ;;  %v341_v8 = vunpack.c.l.bf16 %v203_v61 }
  0x89   : > { %2831 = vmatpush1.bf16.msra.mxu0 %v2830_v9  ;;  %2784 = vmatprep.subr.bf16.mxu1 %v3251_v2  ;;  %v343_v9 = vunpack.c.l.bf16 %v204_v62 }
  0x8a   : > { %2832 = vmatprep.subr.bf16.mxu0 %v3251_v2 }
  0x8c   : > { %2786 = vmatpush1.bf16.msra.mxu1 %v2785_v14  ;;  %v345_v14 = vunpack.c.l.bf16 %v205_v6 }
  0x8d   : > { %2834 = vmatpush1.bf16.msra.mxu0 %v2833_v15  ;;  %2787 = vmatprep.subr.bf16.mxu1 %v3251_v2  ;;  %v347_v15 = vunpack.c.l.bf16 %v206_v7 }
  0x8e   : > { %2835 = vmatprep.subr.bf16.mxu0 %v3251_v2 }
  0x90   : > { %2789 = vmatpush1.bf16.msra.mxu1 %v2788_v20  ;;  %v349_v20 = vunpack.c.l.bf16 %v207_v12 }
  0x91   : > { %2837 = vmatpush1.bf16.msra.mxu0 %v2836_v21  ;;  %2790 = vmatprep.subr.bf16.mxu1 %v3251_v2  ;;  %v351_v21 = vunpack.c.l.bf16 %v208_v13 }
  0x92   : > { %2838 = vmatprep.subr.bf16.mxu0 %v3251_v2 }
  0x94   : > { %2792 = vmatpush1.bf16.msra.mxu1 %v2791_v26  ;;  %v353_v26 = vunpack.c.l.bf16 %v209_v18 }
  0x95   : > { %2840 = vmatpush1.bf16.msra.mxu0 %v2839_v27  ;;  %2793 = vmatprep.subr.bf16.mxu1 %v3251_v2  ;;  %v355_v27 = vunpack.c.l.bf16 %v210_v19 }
  0x96   : > { %2841 = vmatprep.subr.bf16.mxu0 %v3251_v2 }
  0x98   : > { %2795 = vmatpush1.bf16.msra.mxu1 %v2794_v32  ;;  %v357_v32 = vunpack.c.l.bf16 %v211_v24 }
  0x99   : > { %2843 = vmatpush1.bf16.msra.mxu0 %v2842_v33  ;;  %2796 = vmatprep.subr.bf16.mxu1 %v3251_v2  ;;  %v359_v33 = vunpack.c.l.bf16 %v212_v25 }
  0x9a   : > { %2844 = vmatprep.subr.bf16.mxu0 %v3251_v2  ;;  %v327_v2 = vunpack.c.l.bf16 %v196_v41  ;;  %v368_v41 = vunpack.c.h.bf16 %v216_v37 }
  0x9c   : > { %2798 = vmatpush1.bf16.msra.mxu1 %v2797_v38  ;;  %v361_v38 = vunpack.c.l.bf16 %v213_v30 }
  0x9d   : > { %2846 = vmatpush1.bf16.msra.mxu0 %v2845_v39  ;;  %v363_v39 = vunpack.c.l.bf16 %v214_v31 }
  0x9f   : > { %708 = vmatmul.mubr.f32.vlgmr.msra.gmra.mrb[0].mxu1 %v321_v42  ;;  %v217_v42 = vld [vmem:[%s3371_s4 + $0xc0] sm:$0xff] }
  0xa0   : > { %1093 = vmatmul.mubr.f32.vlgmr.msra.gmra.mrb[0].mxu0 %v323_v43  ;;  %712 = vmatprep.mubr.f32.mxu1 %v326_v44  ;;  %v218_v43 = vld [vmem:[%s3371_s4 + $0xc8] sm:$0xff]  ;;  %v365_v44 = vunpack.c.l.bf16 %v215_v36  ;;  %v370_v46 = vunpack.c.h.bf16 %v217_v42 }
  0xa1   : > { %1097 = vmatprep.mubr.f32.mxu0 %v328_v45  ;;  %v367_v45 = vunpack.c.l.bf16 %v216_v37  ;;  %v372_v47 = vunpack.c.h.bf16 %v218_v43 }
  0xa3   : > { %713 = vmatmul.mubr.f32.gmra.mrb[2].mxu1 %v325_v48  ;;  %v219_v48 = vld [vmem:[%s3371_s4 + $0xd0] sm:$0xff] }
  0xa4   : > { %1098 = vmatmul.mubr.f32.gmra.mrb[2].mxu0 %v327_v2  ;;  %717 = vmatprep.mubr.f32.mxu1 %v330_v49  ;;  %v220_v2 = vld [vmem:[%s3371_s4 + $0xd8] sm:$0xff]  ;;  %v369_v49 = vunpack.c.l.bf16 %v217_v42  ;;  %v374_v50 = vunpack.c.h.bf16 %v219_v48 }
  0xa5   : > { %1102 = vmatprep.mubr.f32.mxu0 %v332_v0  ;;  %v371_v0 = vunpack.c.l.bf16 %v218_v43  ;;  %v376_v51 = vunpack.c.h.bf16 %v220_v2 }
  0xa7   : > { %718 = vmatmul.mubr.f32.gmra.mrb[4].mxu1 %v329_v52  ;;  %v221_v52 = vld [vmem:[%s3371_s4 + $0xe0] sm:$0xff] }
  0xa8   : > { %1103 = vmatmul.mubr.f32.gmra.mrb[4].mxu0 %v331_v1  ;;  %722 = vmatprep.mubr.f32.mxu1 %v334_v53  ;;  %v222_v1 = vld [vmem:[%s3371_s4 + $0xe8] sm:$0xff]  ;;  %v373_v53 = vunpack.c.l.bf16 %v219_v48  ;;  %v378_v55 = vunpack.c.h.bf16 %v221_v52 }
  0xa9   : > { %1107 = vmatprep.mubr.f32.mxu0 %v336_v54  ;;  %v375_v54 = vunpack.c.l.bf16 %v220_v2  ;;  %v380_v56 = vunpack.c.h.bf16 %v222_v1 }
  0xab   : > { %723 = vmatmul.mubr.f32.gmra.mrb[6].mxu1 %v333_v57  ;;  %v223_v57 = vld [vmem:[%s3371_s4 + $0xf0] sm:$0xff] }
  0xac   : > { %1108 = vmatmul.mubr.f32.gmra.mrb[6].mxu0 %v335_v58  ;;  %727 = vmatprep.mubr.f32.mxu1 %v338_v59  ;;  %v224_v58 = vld [vmem:[%s3371_s4 + $0xf8] sm:$0xff]  ;;  %v377_v59 = vunpack.c.l.bf16 %v221_v52  ;;  %v382_v61 = vunpack.c.h.bf16 %v223_v57 }
  0xad   : > { %1112 = vmatprep.mubr.f32.mxu0 %v340_v60  ;;  %v379_v60 = vunpack.c.l.bf16 %v222_v1  ;;  %v384_v62 = vunpack.c.h.bf16 %v224_v58 }
  0xaf   : > { %728 = vmatmul.mubr.f32.gmra.mrb[8].mxu1 %v337_v63  ;;  %v225_v63 = vld [vmem:[%s3371_s4 + $0x100] sm:$0xff] }
  0xb0   : > { %1113 = vmatmul.mubr.f32.gmra.mrb[8].mxu0 %v339_v3  ;;  %732 = vmatprep.mubr.f32.mxu1 %v342_v4  ;;  %v226_v3 = vld [vmem:[%s3371_s4 + $0x108] sm:$0xff]  ;;  %v381_v4 = vunpack.c.l.bf16 %v223_v57  ;;  %v386_v6 = vunpack.c.h.bf16 %v225_v63 }
  0xb1   : > { %1117 = vmatprep.mubr.f32.mxu0 %v344_v5  ;;  %v383_v5 = vunpack.c.l.bf16 %v224_v58  ;;  %v388_v7 = vunpack.c.h.bf16 %v226_v3 }
  0xb3   : > { %733 = vmatmul.mubr.f32.gmra.mrb[10].mxu1 %v341_v8  ;;  %v227_v8 = vld [vmem:[%s3371_s4 + $0x110] sm:$0xff] }
  0xb4   : > { %1118 = vmatmul.mubr.f32.gmra.mrb[10].mxu0 %v343_v9  ;;  %737 = vmatprep.mubr.f32.mxu1 %v346_v10  ;;  %v228_v9 = vld [vmem:[%s3371_s4 + $0x118] sm:$0xff]  ;;  %v385_v10 = vunpack.c.l.bf16 %v225_v63  ;;  %v390_v12 = vunpack.c.h.bf16 %v227_v8 }
  0xb5   : > { %1122 = vmatprep.mubr.f32.mxu0 %v348_v11  ;;  %v387_v11 = vunpack.c.l.bf16 %v226_v3  ;;  %v392_v13 = vunpack.c.h.bf16 %v228_v9 }
  0xb7   : > { %738 = vmatmul.mubr.f32.gmra.mrb[12].mxu1 %v345_v14  ;;  %v229_v14 = vld [vmem:[%s3371_s4 + $0x120] sm:$0xff] }
  0xb8   : > { %1123 = vmatmul.mubr.f32.gmra.mrb[12].mxu0 %v347_v15  ;;  %742 = vmatprep.mubr.f32.mxu1 %v350_v16  ;;  %v230_v15 = vld [vmem:[%s3371_s4 + $0x128] sm:$0xff]  ;;  %v389_v16 = vunpack.c.l.bf16 %v227_v8  ;;  %v394_v18 = vunpack.c.h.bf16 %v229_v14 }
  0xb9   : > { %1127 = vmatprep.mubr.f32.mxu0 %v352_v17  ;;  %v391_v17 = vunpack.c.l.bf16 %v228_v9  ;;  %v396_v19 = vunpack.c.h.bf16 %v230_v15 }
  0xbb   : > { %743 = vmatmul.mubr.f32.gmra.mrb[14].mxu1 %v349_v20  ;;  %v231_v20 = vld [vmem:[%s3371_s4 + $0x130] sm:$0xff] }
  0xbc   : > { %1128 = vmatmul.mubr.f32.gmra.mrb[14].mxu0 %v351_v21  ;;  %747 = vmatprep.mubr.f32.mxu1 %v354_v22  ;;  %v232_v21 = vld [vmem:[%s3371_s4 + $0x138] sm:$0xff]  ;;  %v393_v22 = vunpack.c.l.bf16 %v229_v14  ;;  %v398_v24 = vunpack.c.h.bf16 %v231_v20 }
  0xbd   : > { %1132 = vmatprep.mubr.f32.mxu0 %v356_v23  ;;  %v395_v23 = vunpack.c.l.bf16 %v230_v15  ;;  %v400_v25 = vunpack.c.h.bf16 %v232_v21 }
  0xbf   : > { %748 = vmatmul.mubr.f32.gmra.mrb[16].mxu1 %v353_v26  ;;  %v233_v26 = vld [vmem:[%s3371_s4 + $0x140] sm:$0xff] }
  0xc0   : > { %1133 = vmatmul.mubr.f32.gmra.mrb[16].mxu0 %v355_v27  ;;  %752 = vmatprep.mubr.f32.mxu1 %v358_v28  ;;  %v234_v27 = vld [vmem:[%s3371_s4 + $0x148] sm:$0xff]  ;;  %v397_v28 = vunpack.c.l.bf16 %v231_v20  ;;  %v402_v30 = vunpack.c.h.bf16 %v233_v26 }
  0xc1   : > { %1137 = vmatprep.mubr.f32.mxu0 %v360_v29  ;;  %v399_v29 = vunpack.c.l.bf16 %v232_v21  ;;  %v404_v31 = vunpack.c.h.bf16 %v234_v27 }
  0xc3   : > { %753 = vmatmul.mubr.f32.gmra.mrb[18].mxu1 %v357_v32  ;;  %v235_v32 = vld [vmem:[%s3371_s4 + $0x150] sm:$0xff] }
  0xc4   : > { %1138 = vmatmul.mubr.f32.gmra.mrb[18].mxu0 %v359_v33  ;;  %757 = vmatprep.mubr.f32.mxu1 %v362_v34  ;;  %v236_v33 = vld [vmem:[%s3371_s4 + $0x158] sm:$0xff]  ;;  %v401_v34 = vunpack.c.l.bf16 %v233_v26  ;;  %v406_v36 = vunpack.c.h.bf16 %v235_v32 }
  0xc5   : > { %1142 = vmatprep.mubr.f32.mxu0 %v364_v35  ;;  %v403_v35 = vunpack.c.l.bf16 %v234_v27  ;;  %v408_v37 = vunpack.c.h.bf16 %v236_v33 }
  0xc7   : > { %758 = vmatmul.mubr.f32.gmra.mrb[20].mxu1 %v361_v38  ;;  %v237_v38 = vld [vmem:[%s3371_s4 + $0x160] sm:$0xff] }
  0xc8   : > { %1143 = vmatmul.mubr.f32.gmra.mrb[20].mxu0 %v363_v39  ;;  %762 = vmatprep.mubr.f32.mxu1 %v366_v40  ;;  %v238_v39 = vld [vmem:[%s3371_s4 + $0x168] sm:$0xff]  ;;  %v405_v40 = vunpack.c.l.bf16 %v235_v32  ;;  %v410_v42 = vunpack.c.h.bf16 %v237_v38 }
  0xc9   : > { %1147 = vmatprep.mubr.f32.mxu0 %v368_v41  ;;  %v407_v41 = vunpack.c.l.bf16 %v236_v33  ;;  %v412_v43 = vunpack.c.h.bf16 %v238_v39 }
  0xcb   : > { %763 = vmatmul.mubr.f32.gmra.mrb[22].mxu1 %v365_v44  ;;  %v239_v44 = vld [vmem:[%s3371_s4 + $0x170] sm:$0xff] }
  0xcc   : > { %1148 = vmatmul.mubr.f32.gmra.mrb[22].mxu0 %v367_v45  ;;  %767 = vmatprep.mubr.f32.mxu1 %v370_v46  ;;  %v240_v45 = vld [vmem:[%s3371_s4 + $0x178] sm:$0xff]  ;;  %v409_v46 = vunpack.c.l.bf16 %v237_v38  ;;  %v414_v48 = vunpack.c.h.bf16 %v239_v44 }
  0xcd   : > { %1152 = vmatprep.mubr.f32.mxu0 %v372_v47  ;;  %v411_v47 = vunpack.c.l.bf16 %v238_v39  ;;  %v416_v2 = vunpack.c.h.bf16 %v240_v45 }
  0xcf   : > { %768 = vmatmul.mubr.f32.gmra.mrb[24].mxu1 %v369_v49  ;;  %v241_v49 = vld [vmem:[%s3371_s4 + $0x180] sm:$0xff] }
  0xd0   : > { %1153 = vmatmul.mubr.f32.gmra.mrb[24].mxu0 %v371_v0  ;;  %772 = vmatprep.mubr.f32.mxu1 %v374_v50  ;;  %v242_v0 = vld [vmem:[%s3371_s4 + $0x188] sm:$0xff]  ;;  %v413_v50 = vunpack.c.l.bf16 %v239_v44  ;;  %v418_v52 = vunpack.c.h.bf16 %v241_v49 }
  0xd1   : > { %1157 = vmatprep.mubr.f32.mxu0 %v376_v51  ;;  %v415_v51 = vunpack.c.l.bf16 %v240_v45  ;;  %v420_v1 = vunpack.c.h.bf16 %v242_v0 }
  0xd3   : > { %773 = vmatmul.mubr.f32.gmra.mrb[26].mxu1 %v373_v53  ;;  %v243_v53 = vld [vmem:[%s3371_s4 + $0x190] sm:$0xff] }
  0xd4   : > { %1158 = vmatmul.mubr.f32.gmra.mrb[26].mxu0 %v375_v54  ;;  %777 = vmatprep.mubr.f32.mxu1 %v378_v55  ;;  %v244_v54 = vld [vmem:[%s3371_s4 + $0x198] sm:$0xff]  ;;  %v417_v55 = vunpack.c.l.bf16 %v241_v49  ;;  %v422_v57 = vunpack.c.h.bf16 %v243_v53 }
  0xd5   : > { %1162 = vmatprep.mubr.f32.mxu0 %v380_v56  ;;  %v419_v56 = vunpack.c.l.bf16 %v242_v0  ;;  %v424_v58 = vunpack.c.h.bf16 %v244_v54 }
  0xd7   : > { %778 = vmatmul.mubr.f32.gmra.mrb[28].mxu1 %v377_v59  ;;  %v245_v59 = vld [vmem:[%s3371_s4 + $0x1a0] sm:$0xff] }
  0xd8   : > { %1163 = vmatmul.mubr.f32.gmra.mrb[28].mxu0 %v379_v60  ;;  %782 = vmatprep.mubr.f32.mxu1 %v382_v61  ;;  %v246_v60 = vld [vmem:[%s3371_s4 + $0x1a8] sm:$0xff]  ;;  %v421_v61 = vunpack.c.l.bf16 %v243_v53  ;;  %v426_v63 = vunpack.c.h.bf16 %v245_v59 }
  0xd9   : > { %1167 = vmatprep.mubr.f32.mxu0 %v384_v62  ;;  %v423_v62 = vunpack.c.l.bf16 %v244_v54  ;;  %v428_v3 = vunpack.c.h.bf16 %v246_v60 }
  0xdb   : > { %783 = vmatmul.mubr.f32.gmra.mrb[30].mxu1 %v381_v4  ;;  %v247_v4 = vld [vmem:[%s3371_s4 + $0x1b0] sm:$0xff] }
  0xdc   : > { %1168 = vmatmul.mubr.f32.gmra.mrb[30].mxu0 %v383_v5  ;;  %787 = vmatprep.mubr.f32.mxu1 %v386_v6  ;;  %v248_v5 = vld [vmem:[%s3371_s4 + $0x1b8] sm:$0xff]  ;;  %v425_v6 = vunpack.c.l.bf16 %v245_v59  ;;  %v430_v8 = vunpack.c.h.bf16 %v247_v4 }
  0xdd   : > { %1172 = vmatprep.mubr.f32.mxu0 %v388_v7  ;;  %v427_v7 = vunpack.c.l.bf16 %v246_v60  ;;  %v432_v9 = vunpack.c.h.bf16 %v248_v5 }
  0xdf   : > { %788 = vmatmul.mubr.f32.gmra.mrb[32].mxu1 %v385_v10  ;;  %v249_v10 = vld [vmem:[%s3371_s4 + $0x1c0] sm:$0xff] }
  0xe0   : > { %1173 = vmatmul.mubr.f32.gmra.mrb[32].mxu0 %v387_v11  ;;  %792 = vmatprep.mubr.f32.mxu1 %v390_v12  ;;  %v250_v11 = vld [vmem:[%s3371_s4 + $0x1c8] sm:$0xff]  ;;  %v429_v12 = vunpack.c.l.bf16 %v247_v4  ;;  %v434_v14 = vunpack.c.h.bf16 %v249_v10 }
  0xe1   : > { %1177 = vmatprep.mubr.f32.mxu0 %v392_v13  ;;  %v431_v13 = vunpack.c.l.bf16 %v248_v5  ;;  %v436_v15 = vunpack.c.h.bf16 %v250_v11 }
  0xe3   : > { %793 = vmatmul.mubr.f32.gmra.mrb[34].mxu1 %v389_v16  ;;  %v251_v16 = vld [vmem:[%s3371_s4 + $0x1d0] sm:$0xff] }
  0xe4   : > { %1178 = vmatmul.mubr.f32.gmra.mrb[34].mxu0 %v391_v17  ;;  %797 = vmatprep.mubr.f32.mxu1 %v394_v18  ;;  %v252_v17 = vld [vmem:[%s3371_s4 + $0x1d8] sm:$0xff]  ;;  %v433_v18 = vunpack.c.l.bf16 %v249_v10  ;;  %v438_v20 = vunpack.c.h.bf16 %v251_v16 }
  0xe5   : > { %1182 = vmatprep.mubr.f32.mxu0 %v396_v19  ;;  %v435_v19 = vunpack.c.l.bf16 %v250_v11  ;;  %v440_v21 = vunpack.c.h.bf16 %v252_v17  ;;  %v439_v26 = vunpack.c.l.bf16 %v252_v17 }
  0xe7   : > { %798 = vmatmul.mubr.f32.gmra.mrb[36].mxu1 %v393_v22  ;;  %v253_v22 = vld [vmem:[%s3371_s4 + $0x1e0] sm:$0xff] }
  0xe8   : > { %1183 = vmatmul.mubr.f32.gmra.mrb[36].mxu0 %v395_v23  ;;  %802 = vmatprep.mubr.f32.mxu1 %v398_v24  ;;  %v254_v23 = vld [vmem:[%s3371_s4 + $0x1e8] sm:$0xff]  ;;  %v3252_v24 = vmov 32   ;;  %v442_v27 = vunpack.c.h.bf16 %v253_v22 }
  0xe9   : > { %1187 = vmatprep.mubr.f32.mxu0 %v400_v25  ;;  %2981 = vset.pattern.permute.xlu0 %v3252_v24  ;;  %v437_v25 = vunpack.c.l.bf16 %v251_v16  ;;  %v443_v32 = vunpack.c.l.bf16 %v254_v23 }
  0xea   : > { %2982 = vset.pattern.permute.xlu1 %v3252_v24 }
  0xeb   : > { %803 = vmatmul.mubr.f32.gmra.mrb[38].mxu1 %v397_v28  ;;  %v444_v28 = vunpack.c.h.bf16 %v254_v23 }
  0xec   : > { %1188 = vmatmul.mubr.f32.gmra.mrb[38].mxu0 %v399_v29  ;;  %807 = vmatprep.mubr.f32.mxu1 %v402_v30  ;;  %v255_v29 = vld [vmem:[%s3371_s4 + $0x1f0] sm:$0xff]  ;;  %v256_v30 = vld [vmem:[%s3371_s4 + $0x1f8] sm:$0xff] }
  0xed   : > { %1192 = vmatprep.mubr.f32.mxu0 %v404_v31  ;;  %v441_v31 = vunpack.c.l.bf16 %v253_v22  ;;  %v446_v33 = vunpack.c.h.bf16 %v255_v29  ;;  %v447_v38 = vunpack.c.l.bf16 %v256_v30 }
  0xef   : > { %808 = vmatmul.mubr.f32.gmra.mrb[40].mxu1 %v401_v34  ;;  %v448_v34 = vunpack.c.h.bf16 %v256_v30 }
  0xf0   : > { %1193 = vmatmul.mubr.f32.gmra.mrb[40].mxu0 %v403_v35  ;;  %812 = vmatprep.mubr.f32.mxu1 %v406_v36  ;;  %v257_v35 = vld [vmem:[%s3371_s4 + $0x200] sm:$0xff]  ;;  %v258_v36 = vld [vmem:[%s3371_s4 + $0x208] sm:$0xff] }
  0xf1   : > { %1197 = vmatprep.mubr.f32.mxu0 %v408_v37  ;;  %v445_v37 = vunpack.c.l.bf16 %v255_v29  ;;  %v450_v39 = vunpack.c.h.bf16 %v257_v35  ;;  %v451_v44 = vunpack.c.l.bf16 %v258_v36 }
  0xf3   : > { %813 = vmatmul.mubr.f32.gmra.mrb[42].mxu1 %v405_v40  ;;  %v452_v40 = vunpack.c.h.bf16 %v258_v36 }
  0xf4   : > { %1198 = vmatmul.mubr.f32.gmra.mrb[42].mxu0 %v407_v41  ;;  %817 = vmatprep.mubr.f32.mxu1 %v410_v42  ;;  %v259_v41 = vld [vmem:[%s3371_s4 + $0x210] sm:$0xff]  ;;  %v260_v42 = vld [vmem:[%s3371_s4 + $0x218] sm:$0xff] }
  0xf5   : > { %1202 = vmatprep.mubr.f32.mxu0 %v412_v43  ;;  %v449_v43 = vunpack.c.l.bf16 %v257_v35  ;;  %v454_v45 = vunpack.c.h.bf16 %v259_v41  ;;  %v455_v49 = vunpack.c.l.bf16 %v260_v42 }
  0xf7   : > { %818 = vmatmul.mubr.f32.gmra.mrb[44].mxu1 %v409_v46  ;;  %v456_v46 = vunpack.c.h.bf16 %v260_v42 }
  0xf8   : > { %1203 = vmatmul.mubr.f32.gmra.mrb[44].mxu0 %v411_v47  ;;  %822 = vmatprep.mubr.f32.mxu1 %v414_v48  ;;  %v261_v47 = vld [vmem:[%s3371_s4 + $0x220] sm:$0xff]  ;;  %v262_v48 = vld [vmem:[%s3371_s4 + $0x228] sm:$0xff] }
  0xf9   : > { %1207 = vmatprep.mubr.f32.mxu0 %v416_v2  ;;  %v453_v2 = vunpack.c.l.bf16 %v259_v41  ;;  %v458_v0 = vunpack.c.h.bf16 %v261_v47  ;;  %v459_v53 = vunpack.c.l.bf16 %v262_v48 }
  0xfb   : > { %823 = vmatmul.mubr.f32.gmra.mrb[46].mxu1 %v413_v50  ;;  %v460_v50 = vunpack.c.h.bf16 %v262_v48 }
  0xfc   : > { %1208 = vmatmul.mubr.f32.gmra.mrb[46].mxu0 %v415_v51  ;;  %827 = vmatprep.mubr.f32.mxu1 %v418_v52  ;;  %v263_v51 = vld [vmem:[%s3371_s4 + $0x230] sm:$0xff]  ;;  %v264_v52 = vld [vmem:[%s3371_s4 + $0x238] sm:$0xff] }
  0xfd   : > { %1212 = vmatprep.mubr.f32.mxu0 %v420_v1  ;;  %v457_v1 = vunpack.c.l.bf16 %v261_v47  ;;  %v462_v54 = vunpack.c.h.bf16 %v263_v51  ;;  %v463_v59 = vunpack.c.l.bf16 %v264_v52 }
  0xff   : > { %828 = vmatmul.mubr.f32.gmra.mrb[48].mxu1 %v417_v55  ;;  %v464_v55 = vunpack.c.h.bf16 %v264_v52 }
 0x100   : > { %1213 = vmatmul.mubr.f32.gmra.mrb[48].mxu0 %v419_v56  ;;  %832 = vmatprep.mubr.f32.mxu1 %v422_v57  ;;  %v265_v56 = vld [vmem:[%s3371_s4 + $0x240] sm:$0xff]  ;;  %v266_v57 = vld [vmem:[%s3371_s4 + $0x248] sm:$0xff] }
 0x101   : > { %1217 = vmatprep.mubr.f32.mxu0 %v424_v58  ;;  %v461_v58 = vunpack.c.l.bf16 %v263_v51  ;;  %v466_v60 = vunpack.c.h.bf16 %v265_v56  ;;  %v467_v4 = vunpack.c.l.bf16 %v266_v57 }
 0x103   : > { %833 = vmatmul.mubr.f32.gmra.mrb[50].mxu1 %v421_v61  ;;  %v468_v61 = vunpack.c.h.bf16 %v266_v57 }
 0x104   : > { %1218 = vmatmul.mubr.f32.gmra.mrb[50].mxu0 %v423_v62  ;;  %837 = vmatprep.mubr.f32.mxu1 %v426_v63  ;;  %v267_v62 = vld [vmem:[%s3371_s4 + $0x250] sm:$0xff]  ;;  %v268_v63 = vld [vmem:[%s3371_s4 + $0x258] sm:$0xff] }
 0x105   : > { %1222 = vmatprep.mubr.f32.mxu0 %v428_v3  ;;  %v465_v3 = vunpack.c.l.bf16 %v265_v56  ;;  %v470_v5 = vunpack.c.h.bf16 %v267_v62  ;;  %v471_v10 = vunpack.c.l.bf16 %v268_v63 }
 0x107   : > { %838 = vmatmul.mubr.f32.gmra.mrb[52].mxu1 %v425_v6  ;;  %v472_v6 = vunpack.c.h.bf16 %v268_v63 }
 0x108   : > { %1223 = vmatmul.mubr.f32.gmra.mrb[52].mxu0 %v427_v7  ;;  %842 = vmatprep.mubr.f32.mxu1 %v430_v8  ;;  %v269_v7 = vld [vmem:[%s3371_s4 + $0x260] sm:$0xff]  ;;  %v270_v8 = vld [vmem:[%s3371_s4 + $0x268] sm:$0xff] }
 0x109   : > { %1227 = vmatprep.mubr.f32.mxu0 %v432_v9  ;;  %v469_v9 = vunpack.c.l.bf16 %v267_v62  ;;  %v474_v11 = vunpack.c.h.bf16 %v269_v7  ;;  %v475_v16 = vunpack.c.l.bf16 %v270_v8 }
 0x10b   : > { %843 = vmatmul.mubr.f32.gmra.mrb[54].mxu1 %v429_v12  ;;  %v476_v12 = vunpack.c.h.bf16 %v270_v8 }
 0x10c   : > { %1228 = vmatmul.mubr.f32.gmra.mrb[54].mxu0 %v431_v13  ;;  %847 = vmatprep.mubr.f32.mxu1 %v434_v14  ;;  %v271_v13 = vld [vmem:[%s3371_s4 + $0x270] sm:$0xff]  ;;  %v272_v14 = vld [vmem:[%s3371_s4 + $0x278] sm:$0xff] }
 0x10d   : > { %1232 = vmatprep.mubr.f32.mxu0 %v436_v15  ;;  %v473_v15 = vunpack.c.l.bf16 %v269_v7  ;;  %v478_v17 = vunpack.c.h.bf16 %v271_v13  ;;  %v479_v22 = vunpack.c.l.bf16 %v272_v14 }
 0x10f   : > { %848 = vmatmul.mubr.f32.gmra.mrb[56].mxu1 %v433_v18  ;;  %v480_v18 = vunpack.c.h.bf16 %v272_v14 }
 0x110   : > { %1233 = vmatmul.mubr.f32.gmra.mrb[56].mxu0 %v435_v19  ;;  %852 = vmatprep.mubr.f32.mxu1 %v438_v20  ;;  %v273_v19 = vld [vmem:[%s3371_s4 + $0x280] sm:$0xff]  ;;  %v274_v20 = vld [vmem:[%s3371_s4 + $0x288] sm:$0xff] }
 0x111   : > { %1237 = vmatprep.mubr.f32.mxu0 %v440_v21  ;;  %v477_v21 = vunpack.c.l.bf16 %v271_v13  ;;  %v482_v23 = vunpack.c.h.bf16 %v273_v19  ;;  %v484_v24 = vunpack.c.h.bf16 %v274_v20 }
 0x113   : > { %853 = vmatmul.mubr.f32.gmra.mrb[58].mxu1 %v437_v25  ;;  %v275_v25 = vld [vmem:[%s3371_s4 + $0x290] sm:$0xff] }
 0x114   : > { %1238 = vmatmul.mubr.f32.gmra.mrb[58].mxu0 %v439_v26  ;;  %857 = vmatprep.mubr.f32.mxu1 %v442_v27  ;;  %v276_v26 = vld [vmem:[%s3371_s4 + $0x298] sm:$0xff]  ;;  %v481_v27 = vunpack.c.l.bf16 %v273_v19  ;;  %v486_v29 = vunpack.c.h.bf16 %v275_v25 }
 0x115   : > { %1242 = vmatprep.mubr.f32.mxu0 %v444_v28  ;;  %v483_v28 = vunpack.c.l.bf16 %v274_v20  ;;  %v488_v30 = vunpack.c.h.bf16 %v276_v26 }
 0x117   : > { %858 = vmatmul.mubr.f32.gmra.mrb[60].mxu1 %v441_v31  ;;  %v277_v31 = vld [vmem:[%s3371_s4 + $0x2a0] sm:$0xff] }
 0x118   : > { %1243 = vmatmul.mubr.f32.gmra.mrb[60].mxu0 %v443_v32  ;;  %862 = vmatprep.mubr.f32.mxu1 %v446_v33  ;;  %v278_v32 = vld [vmem:[%s3371_s4 + $0x2a8] sm:$0xff]  ;;  %v485_v33 = vunpack.c.l.bf16 %v275_v25  ;;  %v490_v35 = vunpack.c.h.bf16 %v277_v31 }
 0x119   : > { %1247 = vmatprep.mubr.f32.mxu0 %v448_v34  ;;  %v487_v34 = vunpack.c.l.bf16 %v276_v26  ;;  %v492_v36 = vunpack.c.h.bf16 %v278_v32 }
 0x11b   : > { %863 = vmatmul.mubr.f32.gmra.mrb[62].mxu1 %v445_v37  ;;  %v279_v37 = vld [vmem:[%s3371_s4 + $0x2b0] sm:$0xff] }
 0x11c   : > { %1248 = vmatmul.mubr.f32.gmra.mrb[62].mxu0 %v447_v38  ;;  %867 = vmatprep.mubr.f32.mxu1 %v450_v39  ;;  %v280_v38 = vld [vmem:[%s3371_s4 + $0x2b8] sm:$0xff]  ;;  %v489_v39 = vunpack.c.l.bf16 %v277_v31  ;;  %v494_v41 = vunpack.c.h.bf16 %v279_v37 }
 0x11d   : > { %1252 = vmatprep.mubr.f32.mxu0 %v452_v40  ;;  %v491_v40 = vunpack.c.l.bf16 %v278_v32  ;;  %v496_v42 = vunpack.c.h.bf16 %v280_v38 }
 0x11f   : > { %868 = vmatmul.mubr.f32.gmra.mrb[64].mxu1 %v449_v43  ;;  %v281_v43 = vld [vmem:[%s3371_s4 + $0x2c0] sm:$0xff] }
 0x120   : > { %1253 = vmatmul.mubr.f32.gmra.mrb[64].mxu0 %v451_v44  ;;  %872 = vmatprep.mubr.f32.mxu1 %v454_v45  ;;  %v282_v44 = vld [vmem:[%s3371_s4 + $0x2c8] sm:$0xff]  ;;  %v493_v45 = vunpack.c.l.bf16 %v279_v37  ;;  %v498_v47 = vunpack.c.h.bf16 %v281_v43 }
 0x121   : > { %1257 = vmatprep.mubr.f32.mxu0 %v456_v46  ;;  %v495_v46 = vunpack.c.l.bf16 %v280_v38  ;;  %v500_v48 = vunpack.c.h.bf16 %v282_v44 }
 0x123   : > { %873 = vmatmul.mubr.f32.gmra.mrb[66].mxu1 %v453_v2  ;;  %v283_v2 = vld [vmem:[%s3371_s4 + $0x2d0] sm:$0xff] }
 0x124   : > { %1258 = vmatmul.mubr.f32.gmra.mrb[66].mxu0 %v455_v49  ;;  %877 = vmatprep.mubr.f32.mxu1 %v458_v0  ;;  %v284_v49 = vld [vmem:[%s3371_s4 + $0x2d8] sm:$0xff]  ;;  %v497_v0 = vunpack.c.l.bf16 %v281_v43  ;;  %v502_v51 = vunpack.c.h.bf16 %v283_v2 }
 0x125   : > { %1262 = vmatprep.mubr.f32.mxu0 %v460_v50  ;;  %v499_v50 = vunpack.c.l.bf16 %v282_v44  ;;  %v504_v52 = vunpack.c.h.bf16 %v284_v49 }
 0x127   : > { %878 = vmatmul.mubr.f32.gmra.mrb[68].mxu1 %v457_v1  ;;  %v285_v1 = vld [vmem:[%s3371_s4 + $0x2e0] sm:$0xff] }
 0x128   : > { %1263 = vmatmul.mubr.f32.gmra.mrb[68].mxu0 %v459_v53  ;;  %882 = vmatprep.mubr.f32.mxu1 %v462_v54  ;;  %v286_v53 = vld [vmem:[%s3371_s4 + $0x2e8] sm:$0xff]  ;;  %v501_v54 = vunpack.c.l.bf16 %v283_v2  ;;  %v506_v56 = vunpack.c.h.bf16 %v285_v1 }
 0x129   : > { %1267 = vmatprep.mubr.f32.mxu0 %v464_v55  ;;  %v503_v55 = vunpack.c.l.bf16 %v284_v49  ;;  %v508_v57 = vunpack.c.h.bf16 %v286_v53 }
 0x12b   : > { %883 = vmatmul.mubr.f32.gmra.mrb[70].mxu1 %v461_v58  ;;  %v287_v58 = vld [vmem:[%s3371_s4 + $0x2f0] sm:$0xff] }
 0x12c   : > { %1268 = vmatmul.mubr.f32.gmra.mrb[70].mxu0 %v463_v59  ;;  %887 = vmatprep.mubr.f32.mxu1 %v466_v60  ;;  %v288_v59 = vld [vmem:[%s3371_s4 + $0x2f8] sm:$0xff]  ;;  %v505_v60 = vunpack.c.l.bf16 %v285_v1  ;;  %v510_v62 = vunpack.c.h.bf16 %v287_v58 }
 0x12d   : > { %1272 = vmatprep.mubr.f32.mxu0 %v468_v61  ;;  %v507_v61 = vunpack.c.l.bf16 %v286_v53  ;;  %v512_v63 = vunpack.c.h.bf16 %v288_v59  ;;  %v305_v53 = vld [vmem:[%s3371_s4 + $0x380] sm:$0xff] }
 0x12f   : > { %888 = vmatmul.mubr.f32.gmra.mrb[72].mxu1 %v465_v3  ;;  %v289_v3 = vld [vmem:[%s3371_s4 + $0x300] sm:$0xff] }
 0x130   : > { %1273 = vmatmul.mubr.f32.gmra.mrb[72].mxu0 %v467_v4  ;;  %892 = vmatprep.mubr.f32.mxu1 %v470_v5  ;;  %v290_v4 = vld [vmem:[%s3371_s4 + $0x308] sm:$0xff]  ;;  %v509_v5 = vunpack.c.l.bf16 %v287_v58  ;;  %v514_v7 = vunpack.c.h.bf16 %v289_v3 }
 0x131   : > { %1277 = vmatprep.mubr.f32.mxu0 %v472_v6  ;;  %v511_v6 = vunpack.c.l.bf16 %v288_v59  ;;  %v516_v8 = vunpack.c.h.bf16 %v290_v4 }
 0x133   : > { %893 = vmatmul.mubr.f32.gmra.mrb[74].mxu1 %v469_v9  ;;  %v291_v9 = vld [vmem:[%s3371_s4 + $0x310] sm:$0xff] }
 0x134   : > { %1278 = vmatmul.mubr.f32.gmra.mrb[74].mxu0 %v471_v10  ;;  %897 = vmatprep.mubr.f32.mxu1 %v474_v11  ;;  %v292_v10 = vld [vmem:[%s3371_s4 + $0x318] sm:$0xff]  ;;  %v513_v11 = vunpack.c.l.bf16 %v289_v3  ;;  %v518_v13 = vunpack.c.h.bf16 %v291_v9 }
 0x135   : > { %1282 = vmatprep.mubr.f32.mxu0 %v476_v12  ;;  %v515_v12 = vunpack.c.l.bf16 %v290_v4  ;;  %v520_v14 = vunpack.c.h.bf16 %v292_v10  ;;  %v307_v4 = vld [vmem:[%s3371_s4 + $0x390] sm:$0xff] }
 0x137   : > { %898 = vmatmul.mubr.f32.gmra.mrb[76].mxu1 %v473_v15  ;;  %v293_v15 = vld [vmem:[%s3371_s4 + $0x320] sm:$0xff] }
 0x138   : > { %1283 = vmatmul.mubr.f32.gmra.mrb[76].mxu0 %v475_v16  ;;  %902 = vmatprep.mubr.f32.mxu1 %v478_v17  ;;  %v294_v16 = vld [vmem:[%s3371_s4 + $0x328] sm:$0xff]  ;;  %v517_v17 = vunpack.c.l.bf16 %v291_v9  ;;  %v522_v19 = vunpack.c.h.bf16 %v293_v15 }
 0x139   : > { %1287 = vmatprep.mubr.f32.mxu0 %v480_v18  ;;  %v519_v18 = vunpack.c.l.bf16 %v292_v10  ;;  %v524_v20 = vunpack.c.h.bf16 %v294_v16  ;;  %v545_v10 = vunpack.c.l.bf16 %v305_v53 }
 0x13b   : > { %903 = vmatmul.mubr.f32.gmra.mrb[78].mxu1 %v477_v21  ;;  %v295_v21 = vld [vmem:[%s3371_s4 + $0x330] sm:$0xff] }
 0x13c   : > { %1288 = vmatmul.mubr.f32.gmra.mrb[78].mxu0 %v479_v22  ;;  %907 = vmatprep.mubr.f32.mxu1 %v482_v23  ;;  %v296_v22 = vld [vmem:[%s3371_s4 + $0x338] sm:$0xff]  ;;  %v521_v23 = vunpack.c.l.bf16 %v293_v15  ;;  %v526_v25 = vunpack.c.h.bf16 %v295_v21 }
 0x13d   : > { %1292 = vmatprep.mubr.f32.mxu0 %v484_v24  ;;  %v523_v24 = vunpack.c.l.bf16 %v294_v16  ;;  %v528_v26 = vunpack.c.h.bf16 %v296_v22  ;;  %v309_v16 = vld [vmem:[%s3371_s4 + $0x3a0] sm:$0xff] }
 0x13f   : > { %908 = vmatmul.mubr.f32.gmra.mrb[80].mxu1 %v481_v27  ;;  %v297_v27 = vld [vmem:[%s3371_s4 + $0x340] sm:$0xff] }
 0x140   : > { %1293 = vmatmul.mubr.f32.gmra.mrb[80].mxu0 %v483_v28  ;;  %912 = vmatprep.mubr.f32.mxu1 %v486_v29  ;;  %v298_v28 = vld [vmem:[%s3371_s4 + $0x348] sm:$0xff]  ;;  %v525_v29 = vunpack.c.l.bf16 %v295_v21  ;;  %v530_v31 = vunpack.c.h.bf16 %v297_v27 }
 0x141   : > { %1297 = vmatprep.mubr.f32.mxu0 %v488_v30  ;;  %v527_v30 = vunpack.c.l.bf16 %v296_v22  ;;  %v532_v32 = vunpack.c.h.bf16 %v298_v28  ;;  %v549_v22 = vunpack.c.l.bf16 %v307_v4 }
 0x143   : > { %913 = vmatmul.mubr.f32.gmra.mrb[82].mxu1 %v485_v33  ;;  %v299_v33 = vld [vmem:[%s3371_s4 + $0x350] sm:$0xff] }
 0x144   : > { %1298 = vmatmul.mubr.f32.gmra.mrb[82].mxu0 %v487_v34  ;;  %917 = vmatprep.mubr.f32.mxu1 %v490_v35  ;;  %v300_v34 = vld [vmem:[%s3371_s4 + $0x358] sm:$0xff]  ;;  %v529_v35 = vunpack.c.l.bf16 %v297_v27  ;;  %v534_v37 = vunpack.c.h.bf16 %v299_v33 }
 0x145   : > { %1302 = vmatprep.mubr.f32.mxu0 %v492_v36  ;;  %v531_v36 = vunpack.c.l.bf16 %v298_v28  ;;  %v536_v38 = vunpack.c.h.bf16 %v300_v34  ;;  %v311_v28 = vld [vmem:[%s3371_s4 + $0x3b0] sm:$0xff] }
 0x147   : > { %918 = vmatmul.mubr.f32.gmra.mrb[84].mxu1 %v489_v39  ;;  %v301_v39 = vld [vmem:[%s3371_s4 + $0x360] sm:$0xff] }
 0x148   : > { %1303 = vmatmul.mubr.f32.gmra.mrb[84].mxu0 %v491_v40  ;;  %922 = vmatprep.mubr.f32.mxu1 %v494_v41  ;;  %v302_v40 = vld [vmem:[%s3371_s4 + $0x368] sm:$0xff]  ;;  %v533_v41 = vunpack.c.l.bf16 %v299_v33  ;;  %v538_v43 = vunpack.c.h.bf16 %v301_v39  ;;  %v537_v49 = vunpack.c.l.bf16 %v301_v39 }
 0x149   : > { %1307 = vmatprep.mubr.f32.mxu0 %v496_v42  ;;  %v535_v42 = vunpack.c.l.bf16 %v300_v34  ;;  %v540_v44 = vunpack.c.h.bf16 %v302_v40 }
 0x14b   : > { %923 = vmatmul.mubr.f32.gmra.mrb[86].mxu1 %v493_v45  ;;  %v303_v45 = vld [vmem:[%s3371_s4 + $0x370] sm:$0xff] }
 0x14c   : > { %1308 = vmatmul.mubr.f32.gmra.mrb[86].mxu0 %v495_v46  ;;  %927 = vmatprep.mubr.f32.mxu1 %v498_v47  ;;  %v304_v47 = vld [vmem:[%s3371_s4 + $0x378] sm:$0xff]  ;;  %v541_v59 = vunpack.c.l.bf16 %v303_v45 }
 0x14d   : > { %1312 = vmatprep.mubr.f32.mxu0 %v500_v48  ;;  %v544_v1 = vunpack.c.h.bf16 %v304_v47 }
 0x14f   : > { %928 = vmatmul.mubr.f32.gmra.mrb[88].mxu1 %v497_v0 }
 0x150   : > { %1313 = vmatmul.mubr.f32.gmra.mrb[88].mxu0 %v499_v50  ;;  %932 = vmatprep.mubr.f32.mxu1 %v502_v51  ;;  %v539_v51 = vunpack.c.l.bf16 %v302_v40  ;;  %v558_v40 = vunpack.c.h.bf16 %v311_v28 }
 0x151   : > { %1317 = vmatprep.mubr.f32.mxu0 %v504_v52  ;;  %v542_v52 = vunpack.c.h.bf16 %v303_v45 }
 0x153   : > { %933 = vmatmul.mubr.f32.gmra.mrb[90].mxu1 %v501_v54 }
 0x154   : > { %1318 = vmatmul.mubr.f32.gmra.mrb[90].mxu0 %v503_v55  ;;  %937 = vmatprep.mubr.f32.mxu1 %v506_v56  ;;  %v306_v56 = vld [vmem:[%s3371_s4 + $0x388] sm:$0xff] }
 0x155   : > { %1322 = vmatprep.mubr.f32.mxu0 %v508_v57  ;;  %v548_v3 = vunpack.c.h.bf16 %v306_v56 }
 0x157   : > { %938 = vmatmul.mubr.f32.gmra.mrb[92].mxu1 %v505_v60 }
 0x158   : > { %1323 = vmatmul.mubr.f32.gmra.mrb[92].mxu0 %v507_v61  ;;  %942 = vmatprep.mubr.f32.mxu1 %v510_v62  ;;  %v543_v62 = vunpack.c.l.bf16 %v304_v47  ;;  %v314_v47 = vld [vmem:[%s3371_s4 + $0x3c8] sm:$0xff] }
 0x159   : > { %1327 = vmatprep.mubr.f32.mxu0 %v512_v63  ;;  %v546_v63 = vunpack.c.h.bf16 %v305_v53 }
 0x15b   : > { %943 = vmatmul.mubr.f32.gmra.mrb[94].mxu1 %v509_v5 }
 0x15c   : > { %1328 = vmatmul.mubr.f32.gmra.mrb[94].mxu0 %v511_v6  ;;  %947 = vmatprep.mubr.f32.mxu1 %v514_v7  ;;  %v308_v7 = vld [vmem:[%s3371_s4 + $0x398] sm:$0xff] }
 0x15d   : > { %1332 = vmatprep.mubr.f32.mxu0 %v516_v8  ;;  %v552_v15 = vunpack.c.h.bf16 %v308_v7 }
 0x15f   : > { %948 = vmatmul.mubr.f32.gmra.mrb[96].mxu1 %v513_v11 }
 0x160   : > { %1333 = vmatmul.mubr.f32.gmra.mrb[96].mxu0 %v515_v12  ;;  %952 = vmatprep.mubr.f32.mxu1 %v518_v13  ;;  %v547_v13 = vunpack.c.l.bf16 %v306_v56 }
 0x161   : > { %1337 = vmatprep.mubr.f32.mxu0 %v520_v14  ;;  %v550_v14 = vunpack.c.h.bf16 %v307_v4 }
 0x163   : > { %953 = vmatmul.mubr.f32.gmra.mrb[98].mxu1 %v517_v17 }
 0x164   : > { %1338 = vmatmul.mubr.f32.gmra.mrb[98].mxu0 %v519_v18  ;;  %957 = vmatprep.mubr.f32.mxu1 %v522_v19  ;;  %v310_v19 = vld [vmem:[%s3371_s4 + $0x3a8] sm:$0xff] }
 0x165   : > { %1342 = vmatprep.mubr.f32.mxu0 %v524_v20  ;;  %v556_v27 = vunpack.c.h.bf16 %v310_v19  ;;  %v555_v39 = vunpack.c.l.bf16 %v310_v19  ;;  %v317_v19 = vld [vmem:[%s3371_s4 + $0x3e0] sm:$0xff] }
 0x167   : > { %958 = vmatmul.mubr.f32.gmra.mrb[100].mxu1 %v521_v23 }
 0x168   : > { %1343 = vmatmul.mubr.f32.gmra.mrb[100].mxu0 %v523_v24  ;;  %962 = vmatprep.mubr.f32.mxu1 %v526_v25  ;;  %v551_v25 = vunpack.c.l.bf16 %v308_v7 }
 0x169   : > { %1347 = vmatprep.mubr.f32.mxu0 %v528_v26  ;;  %v554_v26 = vunpack.c.h.bf16 %v309_v16 }
 0x16b   : > { %963 = vmatmul.mubr.f32.gmra.mrb[102].mxu1 %v525_v29 }
 0x16c   : > { %1348 = vmatmul.mubr.f32.gmra.mrb[102].mxu0 %v527_v30  ;;  %967 = vmatprep.mubr.f32.mxu1 %v530_v31 }
 0x16d   : > { %1352 = vmatprep.mubr.f32.mxu0 %v532_v32  ;;  %v312_v32 = vld [vmem:[%s3371_s4 + $0x3b8] sm:$0xff] }
 0x16e   : > { %v559_v53 = vunpack.c.l.bf16 %v312_v32 }
 0x16f   : > { %968 = vmatmul.mubr.f32.gmra.mrb[104].mxu1 %v529_v35  ;;  %v553_v35 = vunpack.c.l.bf16 %v309_v16 }
 0x170   : > { %1353 = vmatmul.mubr.f32.gmra.mrb[104].mxu0 %v531_v36  ;;  %972 = vmatprep.mubr.f32.mxu1 %v534_v37 }
 0x171   : > { %1357 = vmatprep.mubr.f32.mxu0 %v536_v38 }
 0x172   : > { %v709_v46 = vpop.f32.mrb[0].mxu1 }
 0x173   : > { %v1094_v48 = vpop.f32.mrb[0].mxu0  ;;  %v711_v2 = vpop.f32.mrb[1].mxu1  ;;  %973 = vmatmul.mubr.f32.gmra.mrb[106].mxu1 %v533_v41  ;;  %v560_v41 = vunpack.c.h.bf16 %v312_v32 }
 0x174   : > { %v3613_v0 = vadd.f32 %v1094_v48, %v709_v46  ;;  %v1096_v50 = vpop.f32.mrb[1].mxu0  ;;  %1358 = vmatmul.mubr.f32.gmra.mrb[106].mxu0 %v535_v42  ;;  %977 = vmatprep.mubr.f32.mxu1 %v538_v43  ;;  %v313_v42 = vld [vmem:[%s3371_s4 + $0x3c0] sm:$0xff] }
 0x175   : > { %1362 = vmatprep.mubr.f32.mxu0 %v540_v44  ;;  %v557_v50 = vunpack.c.l.bf16 %v311_v28 }
 0x176   : > { %v3617_v54 = vadd.f32 1.0, %v3613_v0  ;;  %v714_v55 = vpop.f32.mrb[2].mxu1 }
 0x177   : > { %v1099_v57 = vpop.f32.mrb[2].mxu0  ;;  %v716_v58 = vpop.f32.mrb[3].mxu1  ;;  %978 = vmatmul.mubr.f32.gmra.mrb[108].mxu1 %v537_v49 }
 0x178   : > { %2983 = vrcp.f32 %v3617_v54  ;;  %v3621_v60 = vadd.f32 %v1099_v57, %v714_v55  ;;  %v1101_v61 = vpop.f32.mrb[3].mxu0  ;;  %1363 = vmatmul.mubr.f32.gmra.mrb[108].mxu0 %v539_v51  ;;  %982 = vmatprep.mubr.f32.mxu1 %v542_v52  ;;  %v562_v55 = vunpack.c.h.bf16 %v313_v42  ;;  %v564_v57 = vunpack.c.h.bf16 %v314_v47 }
 0x179   : > { %1367 = vmatprep.mubr.f32.mxu0 %v544_v1 }
 0x17a   : > { %v3625_v5 = vadd.f32 1.0, %v3621_v60  ;;  %v719_v6 = vpop.f32.mrb[4].mxu1 }
 0x17b   : > { %v1104_v8 = vpop.f32.mrb[4].mxu0  ;;  %v721_v9 = vpop.f32.mrb[5].mxu1  ;;  %983 = vmatmul.mubr.f32.gmra.mrb[110].mxu1 %v541_v59  ;;  %v315_v59 = vld [vmem:[%s3371_s4 + $0x3d0] sm:$0xff] }
 0x17c   : > { %2985 = vrcp.f32 %v3625_v5  ;;  %v3629_v11 = vadd.f32 %v1104_v8, %v719_v6  ;;  %v1106_v12 = vpop.f32.mrb[5].mxu0  ;;  %1368 = vmatmul.mubr.f32.gmra.mrb[110].mxu0 %v543_v62  ;;  %987 = vmatprep.mubr.f32.mxu1 %v546_v63  ;;  %v561_v8 = vunpack.c.l.bf16 %v313_v42 }
 0x17d   : > { %1372 = vmatprep.mubr.f32.mxu0 %v548_v3  ;;  %v316_v3 = vld [vmem:[%s3371_s4 + $0x3d8] sm:$0xff] }
 0x17e   : > { %v3633_v17 = vadd.f32 1.0, %v3629_v11  ;;  %v724_v18 = vpop.f32.mrb[6].mxu1  ;;  %v568_v16 = vunpack.c.h.bf16 %v316_v3 }
 0x17f   : > { %v1109_v20 = vpop.f32.mrb[6].mxu0  ;;  %v726_v21 = vpop.f32.mrb[7].mxu1  ;;  %988 = vmatmul.mubr.f32.gmra.mrb[112].mxu1 %v545_v10 }
 0x180   : > { %2987 = vrcp.f32 %v3633_v17  ;;  %v3637_v23 = vadd.f32 %v1109_v20, %v724_v18  ;;  %v1111_v24 = vpop.f32.mrb[7].mxu0  ;;  %1373 = vmatmul.mubr.f32.gmra.mrb[112].mxu0 %v547_v13  ;;  %992 = vmatprep.mubr.f32.mxu1 %v550_v14  ;;  %v563_v13 = vunpack.c.l.bf16 %v314_v47  ;;  %v566_v14 = vunpack.c.h.bf16 %v315_v59 }
 0x181   : > { %1377 = vmatprep.mubr.f32.mxu0 %v552_v15 }
 0x182   : > { %v2984_v29 = vpop.eup %2983  ;;  %v3641_v30 = vadd.f32 1.0, %v3637_v23  ;;  %v729_v31 = vpop.f32.mrb[8].mxu1 }
 0x183   : > { %v1114_v33 = vpop.f32.mrb[8].mxu0  ;;  %v731_v34 = vpop.f32.mrb[9].mxu1  ;;  %993 = vmatmul.mubr.f32.gmra.mrb[114].mxu1 %v549_v22  ;;  %v1608_v36 = vmul.f32 %v2984_v29, %v3617_v54 }
 0x184   : > { %2989 = vrcp.f32 %v3641_v30  ;;  %v3646_v37 = vadd.f32 %v1114_v33, %v729_v31  ;;  %v1116_v38 = vpop.f32.mrb[9].mxu0  ;;  %1378 = vmatmul.mubr.f32.gmra.mrb[114].mxu0 %v551_v25  ;;  %997 = vmatprep.mubr.f32.mxu1 %v554_v26  ;;  %v318_v25 = vld [vmem:[%s3371_s4 + $0x3e8] sm:$0xff]  ;;  %v565_v31 = vunpack.c.l.bf16 %v315_v59  ;;  %v567_v34 = vunpack.c.l.bf16 %v316_v3 }
 0x185   : > { %1382 = vmatprep.mubr.f32.mxu0 %v556_v27  ;;  %v1672_v43 = vsub.f32 2.0, %v1608_v36 }
 0x186   : > { %v2986_v44 = vpop.eup %2985  ;;  %v3650_v45 = vadd.f32 1.0, %v3646_v37  ;;  %v734_v46 = vpop.f32.mrb[10].mxu1 }
 0x187   : > { %v1609_v48 = vmul.f32 %v2986_v44, %v3625_v5  ;;  %v1119_v2 = vpop.f32.mrb[10].mxu0  ;;  %v736_v49 = vpop.f32.mrb[11].mxu1  ;;  %998 = vmatmul.mubr.f32.gmra.mrb[116].mxu1 %v553_v35  ;;  %v1736_v51 = vmul.f32 %v2984_v29, %v1672_v43  ;;  %v570_v35 = vunpack.c.h.bf16 %v317_v19 }
 0x188   : > { %2991 = vrcp.f32 %v3650_v45  ;;  %v3655_v52 = vadd.f32 %v1119_v2, %v734_v46  ;;  %v1121_v1 = vpop.f32.mrb[11].mxu0  ;;  %1383 = vmatmul.mubr.f32.gmra.mrb[116].mxu0 %v555_v39  ;;  %1002 = vmatprep.mubr.f32.mxu1 %v558_v40  ;;  %v572_v39 = vunpack.c.h.bf16 %v318_v25  ;;  %v320_v46 = vld [vmem:[%s3371_s4 + $0x3f8] sm:$0xff] }
 0x189   : > { %v1673_v56 = vsub.f32 2.0, %v1609_v48  ;;  %1387 = vmatprep.mubr.f32.mxu0 %v560_v41  ;;  %v1800_v58 = vmul.f32 %v1736_v51, %v3617_v54  ;;  %v319_v41 = vld [vmem:[%s3371_s4 + $0x3f0] sm:$0xff]  ;;  %s3873_s4 = sadd.s32 1, %s3237_s12 }
 0x18a   : > { %v2988_v61 = vpop.eup %2987  ;;  %v3660_v62 = vadd.f32 1.0, %v3655_v52  ;;  %v739_v63 = vpop.f32.mrb[12].mxu1  ;;  %s182_s12 = ssub.s32 0, %s3873_s4  ;;  %p181_p11 = scmp.lt.s32.totalorder %s3873_s4, 0 }
 0x18b   : > { %v1124_v4 = vpop.f32.mrb[12].mxu0  ;;  %v741_v6 = vpop.f32.mrb[13].mxu1  ;;  %1003 = vmatmul.mubr.f32.gmra.mrb[118].mxu1 %v557_v50  ;;  %v1864_v7 = vsub.f32 2.0, %v1800_v58  ;;  %v1737_v9 = vmul.f32 %v2986_v44, %v1673_v56  ;;  %v1610_v10 = vmul.f32 %v2988_v61, %v3633_v17  ;;  %v569_v50 = vunpack.c.l.bf16 %v317_v19  ;;  %s3889_s29 = smin.u32 %s182_s12, %s3873_s4 }
 0x18c   : > { %2993 = vrcp.f32 %v3660_v62  ;;  %v3665_v54 = vadd.f32 %v1124_v4, %v739_v63  ;;  %v1126_v12 = vpop.f32.mrb[13].mxu0  ;;  %1388 = vmatmul.mubr.f32.gmra.mrb[118].mxu0 %v559_v53  ;;  %1007 = vmatprep.mubr.f32.mxu1 %v562_v55  ;;  %v571_v53 = vunpack.c.l.bf16 %v318_v25  ;;  %v574_v55 = vunpack.c.h.bf16 %v319_v41  ;;  %s184_s30 = sand.u32 1, %s3889_s29  }
 0x18d   : > { %1392 = vmatprep.mubr.f32.mxu0 %v564_v57  ;;  %v1928_v15 = vmul.f32 %v1864_v7, %v1736_v51  ;;  %v1801_v18 = vmul.f32 %v1737_v9, %v3625_v5  ;;  %v1674_v20 = vsub.f32 2.0, %v1610_v10  ;;  %v576_v58 = vunpack.c.h.bf16 %v320_v46  ;;  %s185_s3 = ssub.s32 0, %s184_s30 }
 0x18e   : > { %v2990_v21 = vpop.eup %2989  ;;  %v3670_v22 = vadd.f32 1.0, %v3665_v54  ;;  %v744_v24 = vpop.f32.mrb[14].mxu1  ;;  %s4633_s3 = smov (!%p181_p11, %s185_s3), %s184_s30 }
 0x18f   : > { %v1611_v26 = vmul.f32 %v2990_v21, %v3641_v30  ;;  %v1129_v27 = vpop.f32.mrb[14].mxu0  ;;  %2058 = vperm.xlu0 %2981, %v1928_v15   ;;  %v746_v28 = vpop.f32.mrb[15].mxu1  ;;  %1008 = vmatmul.mubr.f32.gmra.mrb[120].mxu1 %v561_v8  ;;  %v1865_v29 = vsub.f32 2.0, %v1801_v18  ;;  %v1738_v32 = vmul.f32 %v2988_v61, %v1674_v20  ;;  %p2741_p13 = scmp.lt.s32.totalorder %s4633_s3, 0  ;;  %s191_s5 = sadd.s32 2, %s4633_s3 }
 0x190   : > { %2995 = vrcp.f32 %v3670_v22  ;;  %v3675_v5 = vadd.f32 %v1129_v27, %v744_v24  ;;  %v1131_v33 = vpop.f32.mrb[15].mxu0  ;;  %1393 = vmatmul.mubr.f32.gmra.mrb[120].mxu0 %v563_v13  ;;  %1012 = vmatprep.mubr.f32.mxu1 %v566_v14 }
 0x191   : > { %v1675_v36 = vsub.f32 2.0, %v1611_v26  ;;  %1397 = vmatprep.mubr.f32.mxu0 %v568_v16  ;;  %v1929_v38 = vmul.f32 %v1865_v29, %v1737_v9  ;;  %v1802_v40 = vmul.f32 %v1738_v32, %v3633_v17  ;;  %v573_v9 = vunpack.c.l.bf16 %v319_v41  ;;  %s4635_s5 = smov (!%p2741_p13, %s191_s5), %s4633_s3 }
 0x192   : > { %v2992_v42 = vpop.eup %2991  ;;  %v3680_v43 = vadd.f32 1.0, %v3675_v5  ;;  %v749_v44 = vpop.f32.mrb[16].mxu1  ;;  %s2744_s6 = sshll.u32 %s4635_s5, 9 }
 0x193   : > { %v1612_v47 = vmul.f32 %v2992_v42, %v3650_v45  ;;  %v1134_v48 = vpop.f32.mrb[16].mxu0  ;;  %2063 = vperm.xlu0 %2981, %v1929_v38   ;;  %v751_v2 = vpop.f32.mrb[17].mxu1  ;;  %1013 = vmatmul.mubr.f32.gmra.mrb[122].mxu1 %v565_v31  ;;  %v1866_v49 = vsub.f32 2.0, %v1802_v40  ;;  %v1739_v51 = vmul.f32 %v2990_v21, %v1675_v36  ;;  %s3973_s7 = scalar_lea.vmem [#allocation2], %s2744_s6 }
 0x194   : > { %2997 = vrcp.f32 %v3680_v43  ;;  %v3685_v1 = vadd.f32 %v1134_v48, %v749_v44  ;;  %v1136_v17 = vpop.f32.mrb[17].mxu0  ;;  %1398 = vmatmul.mubr.f32.gmra.mrb[122].mxu0 %v567_v34  ;;  %1017 = vmatprep.mubr.f32.mxu1 %v570_v35 }
 0x195   : > { %v1676_v56 = vsub.f32 2.0, %v1612_v47  ;;  %1402 = vmatprep.mubr.f32.mxu0 %v572_v39  ;;  %v1930_v57 = vmul.f32 %v1866_v49, %v1738_v32  ;;  %v1803_v59 = vmul.f32 %v1739_v51, %v3641_v30  ;;  %v575_v30 = vunpack.c.l.bf16 %v320_v46 }
 0x196   : > { %v2994_v61 = vpop.eup %2993  ;;  %v3689_v63 = vadd.f32 1.0, %v3685_v1  ;;  %v754_v3 = vpop.f32.mrb[18].mxu1 }
 0x197   : > { %v1613_v4 = vmul.f32 %v2994_v61, %v3660_v62  ;;  %v1139_v6 = vpop.f32.mrb[18].mxu0  ;;  %2068 = vperm.xlu1 %2982, %v1930_v57   ;;  %v756_v7 = vpop.f32.mrb[19].mxu1  ;;  %1018 = vmatmul.mubr.f32.gmra.mrb[124].mxu1 %v569_v50  ;;  %v1867_v8 = vsub.f32 2.0, %v1803_v59  ;;  %v1740_v10 = vmul.f32 %v2992_v42, %v1676_v56 }
 0x198   : > { %2999 = vrcp.f32 %v3689_v63  ;;  %v3693_v12 = vadd.f32 %v1139_v6, %v754_v3  ;;  %v1141_v13 = vpop.f32.mrb[19].mxu0  ;;  %1403 = vmatmul.mubr.f32.gmra.mrb[124].mxu0 %v571_v53  ;;  %1022 = vmatprep.mubr.f32.mxu1 %v574_v55 }
 0x199   : > { %v1677_v14 = vsub.f32 2.0, %v1613_v4  ;;  %1407 = vmatprep.mubr.f32.mxu0 %v576_v58  ;;  %v1931_v15 = vmul.f32 %v1867_v8, %v1739_v51  ;;  %v1804_v16 = vmul.f32 %v1740_v10, %v3650_v45 }
 0x19a   : > { %v2996_v18 = vpop.eup %2995  ;;  %v3697_v19 = vadd.f32 1.0, %v3693_v12  ;;  %v759_v20 = vpop.f32.mrb[20].mxu1 }
 0x19b   : > { %v1614_v21 = vmul.f32 %v2996_v18, %v3670_v22  ;;  %v1144_v24 = vpop.f32.mrb[20].mxu0  ;;  %2073 = vperm.xlu1 %2982, %v1931_v15   ;;  %v761_v25 = vpop.f32.mrb[21].mxu1  ;;  %1023 = vmatmul.mubr.f32.gmra.mrb[126].mxu1 %v573_v9  ;;  %v1868_v26 = vsub.f32 2.0, %v1804_v16  ;;  %v1741_v27 = vmul.f32 %v2994_v61, %v1677_v14 }
 0x19c   : > { %3001 = vrcp.f32 %v3697_v19  ;;  %v3701_v28 = vadd.f32 %v1144_v24, %v759_v20  ;;  %v1146_v29 = vpop.f32.mrb[21].mxu0  ;;  %1408 = vmatmul.mubr.f32.gmra.mrb[126].mxu0 %v575_v30 }
 0x19d   : > { %v1678_v45 = vsub.f32 2.0, %v1614_v21  ;;  %v1932_v31 = vmul.f32 %v1868_v26, %v1740_v10  ;;  %v1805_v32 = vmul.f32 %v1741_v27, %v3660_v62 }
 0x19e   : > { %v2998_v33 = vpop.eup %2997  ;;  %v3705_v34 = vadd.f32 1.0, %v3701_v28  ;;  %v764_v35 = vpop.f32.mrb[22].mxu1 }
 0x19f   : > { %v1615_v36 = vmul.f32 %v2998_v33, %v3680_v43  ;;  %v1149_v38 = vpop.f32.mrb[22].mxu0  ;;  %2078 = vperm.xlu0 %2981, %v1932_v31   ;;  %v766_v39 = vpop.f32.mrb[23].mxu1  ;;  %v1869_v40 = vsub.f32 2.0, %v1805_v32  ;;  %v1742_v41 = vmul.f32 %v2996_v18, %v1678_v45 }
 0x1a0   : > { %3003 = vrcp.f32 %v3705_v34  ;;  %v3709_v42 = vadd.f32 %v1149_v38, %v764_v35  ;;  %v1151_v44 = vpop.f32.mrb[23].mxu0 }
 0x1a1   : > { %v1679_v46 = vsub.f32 2.0, %v1615_v36  ;;  %v1933_v47 = vmul.f32 %v1869_v40, %v1741_v27  ;;  %v1806_v62 = vmul.f32 %v1742_v41, %v3670_v22 }
 0x1a2   : > { %v3000_v48 = vpop.eup %2999  ;;  %v3713_v2 = vadd.f32 1.0, %v3709_v42  ;;  %v769_v49 = vpop.f32.mrb[24].mxu1 }
 0x1a3   : > { %v1616_v50 = vmul.f32 %v3000_v48, %v3689_v63  ;;  %v1154_v51 = vpop.f32.mrb[24].mxu0  ;;  %2083 = vperm.xlu1 %2982, %v1933_v47   ;;  %v771_v17 = vpop.f32.mrb[25].mxu1  ;;  %v1870_v53 = vsub.f32 2.0, %v1806_v62  ;;  %v1743_v55 = vmul.f32 %v2998_v33, %v1679_v46 }
 0x1a4   : > { %3005 = vrcp.f32 %v3713_v2  ;;  %v3717_v56 = vadd.f32 %v1154_v51, %v769_v49  ;;  %v1156_v57 = vpop.f32.mrb[25].mxu0 }
 0x1a5   : > { %v1680_v58 = vsub.f32 2.0, %v1616_v50  ;;  %v1934_v59 = vmul.f32 %v1870_v53, %v1742_v41  ;;  %v1807_v22 = vmul.f32 %v1743_v55, %v3680_v43 }
 0x1a6   : > { %v3002_v61 = vpop.eup %3001  ;;  %v3721_v3 = vadd.f32 1.0, %v3717_v56  ;;  %v774_v4 = vpop.f32.mrb[26].mxu1 }
 0x1a7   : > { %v1617_v6 = vmul.f32 %v3002_v61, %v3697_v19  ;;  %v1159_v7 = vpop.f32.mrb[26].mxu0  ;;  %2088 = vperm.xlu0 %2981, %v1934_v59   ;;  %v776_v8 = vpop.f32.mrb[27].mxu1  ;;  %v1871_v9 = vsub.f32 2.0, %v1807_v22  ;;  %v1744_v10 = vmul.f32 %v3000_v48, %v1680_v58 }
 0x1a8   : > { %3007 = vrcp.f32 %v3721_v3  ;;  %v3725_v13 = vadd.f32 %v1159_v7, %v774_v4  ;;  %v1161_v30 = vpop.f32.mrb[27].mxu0 }
 0x1a9   : > { %v1681_v14 = vsub.f32 2.0, %v1617_v6  ;;  %v1935_v15 = vmul.f32 %v1871_v9, %v1743_v55  ;;  %v1808_v43 = vmul.f32 %v1744_v10, %v3689_v63 }
 0x1aa   : > { %v3004_v16 = vpop.eup %3003  ;;  %v3729_v18 = vadd.f32 1.0, %v3725_v13  ;;  %v779_v20 = vpop.f32.mrb[28].mxu1 }
 0x1ab   : > { %v1618_v21 = vmul.f32 %v3004_v16, %v3705_v34  ;;  %v1164_v24 = vpop.f32.mrb[28].mxu0  ;;  %2093 = vperm.xlu1 %2982, %v1935_v15   ;;  %v781_v25 = vpop.f32.mrb[29].mxu1  ;;  %v1872_v26 = vsub.f32 2.0, %v1808_v43  ;;  %v1745_v27 = vmul.f32 %v3002_v61, %v1681_v14 }
 0x1ac   : > { %3009 = vrcp.f32 %v3729_v18  ;;  %v3733_v29 = vadd.f32 %v1164_v24, %v779_v20  ;;  %v1166_v45 = vpop.f32.mrb[29].mxu0 }
 0x1ad   : > { %v1682_v31 = vsub.f32 2.0, %v1618_v21  ;;  %v1936_v32 = vmul.f32 %v1872_v26, %v1744_v10  ;;  %v1809_v63 = vmul.f32 %v1745_v27, %v3697_v19 }
 0x1ae   : > { %v3006_v33 = vpop.eup %3005  ;;  %v3737_v35 = vadd.f32 1.0, %v3733_v29  ;;  %v784_v36 = vpop.f32.mrb[30].mxu1 }
 0x1af   : > { %v1619_v38 = vmul.f32 %v3006_v33, %v3713_v2  ;;  %v1169_v39 = vpop.f32.mrb[30].mxu0  ;;  %2098 = vperm.xlu0 %2981, %v1936_v32   ;;  %v786_v40 = vpop.f32.mrb[31].mxu1  ;;  %v1873_v41 = vsub.f32 2.0, %v1809_v63  ;;  %v1746_v44 = vmul.f32 %v3004_v16, %v1682_v31 }
 0x1b0   : > { %3011 = vrcp.f32 %v3737_v35  ;;  %v3741_v46 = vadd.f32 %v1169_v39, %v784_v36  ;;  %v1171_v47 = vpop.f32.mrb[31].mxu0 }
 0x1b1   : > { %v1683_v62 = vsub.f32 2.0, %v1619_v38  ;;  %v1937_v48 = vmul.f32 %v1873_v41, %v1745_v27  ;;  %v1810_v19 = vmul.f32 %v1746_v44, %v3705_v34 }
 0x1b2   : > { %v3008_v49 = vpop.eup %3007  ;;  %v3745_v50 = vadd.f32 1.0, %v3741_v46  ;;  %v789_v51 = vpop.f32.mrb[32].mxu1 }
 0x1b3   : > { %v1620_v17 = vmul.f32 %v3008_v49, %v3721_v3  ;;  %v1174_v53 = vpop.f32.mrb[32].mxu0  ;;  %2103 = vperm.xlu1 %2982, %v1937_v48   ;;  %v791_v55 = vpop.f32.mrb[33].mxu1  ;;  %v1874_v57 = vsub.f32 2.0, %v1810_v19  ;;  %v1747_v58 = vmul.f32 %v3006_v33, %v1683_v62 }
 0x1b4   : > { %3013 = vrcp.f32 %v3745_v50  ;;  %v3749_v59 = vadd.f32 %v1174_v53, %v789_v51  ;;  %v1176_v22 = vpop.f32.mrb[33].mxu0 }
 0x1b5   : > { %v1684_v61 = vsub.f32 2.0, %v1620_v17  ;;  %v1938_v4 = vmul.f32 %v1874_v57, %v1746_v44  ;;  %v1811_v34 = vmul.f32 %v1747_v58, %v3713_v2 }
 0x1b6   : > { %v3010_v6 = vpop.eup %3009  ;;  %v3753_v7 = vadd.f32 1.0, %v3749_v59  ;;  %v794_v8 = vpop.f32.mrb[34].mxu1 }
 0x1b7   : > { %v1621_v9 = vmul.f32 %v3010_v6, %v3729_v18  ;;  %v1179_v10 = vpop.f32.mrb[34].mxu0  ;;  %2108 = vperm.xlu0 %2981, %v1938_v4   ;;  %v796_v30 = vpop.f32.mrb[35].mxu1  ;;  %v1875_v14 = vsub.f32 2.0, %v1811_v34  ;;  %v1748_v15 = vmul.f32 %v3008_v49, %v1684_v61 }
 0x1b8   : > { %3015 = vrcp.f32 %v3753_v7  ;;  %v3757_v43 = vadd.f32 %v1179_v10, %v794_v8  ;;  %v1181_v16 = vpop.f32.mrb[35].mxu0 }
 0x1b9   : > { %v1685_v20 = vsub.f32 2.0, %v1621_v9  ;;  %v1939_v21 = vmul.f32 %v1875_v14, %v1747_v58  ;;  %v1812_v2 = vmul.f32 %v1748_v15, %v3721_v3 }
 0x1ba   : > { %v3012_v24 = vpop.eup %3011  ;;  %v3761_v25 = vadd.f32 1.0, %v3757_v43  ;;  %v799_v26 = vpop.f32.mrb[36].mxu1 }
 0x1bb   : > { %v1622_v27 = vmul.f32 %v3012_v24, %v3737_v35  ;;  %v1184_v45 = vpop.f32.mrb[36].mxu0  ;;  %2113 = vperm.xlu1 %2982, %v1939_v21   ;;  %v801_v31 = vpop.f32.mrb[37].mxu1  ;;  %v1876_v32 = vsub.f32 2.0, %v1812_v2  ;;  %v1749_v63 = vmul.f32 %v3010_v6, %v1685_v20 }
 0x1bc   : > { %3017 = vrcp.f32 %v3761_v25  ;;  %v3765_v33 = vadd.f32 %v1184_v45, %v799_v26  ;;  %v1186_v36 = vpop.f32.mrb[37].mxu0 }
 0x1bd   : > { %v1686_v38 = vsub.f32 2.0, %v1622_v27  ;;  %v1940_v39 = vmul.f32 %v1876_v32, %v1748_v15  ;;  %v1813_v3 = vmul.f32 %v1749_v63, %v3729_v18 }
 0x1be   : > { %v3014_v40 = vpop.eup %3013  ;;  %v3769_v41 = vadd.f32 1.0, %v3765_v33  ;;  %v804_v44 = vpop.f32.mrb[38].mxu1 }
 0x1bf   : > { %v1623_v47 = vmul.f32 %v3014_v40, %v3745_v50  ;;  %v1189_v62 = vpop.f32.mrb[38].mxu0  ;;  %2118 = vperm.xlu0 %2981, %v1940_v39   ;;  %v806_v48 = vpop.f32.mrb[39].mxu1  ;;  %v1877_v19 = vsub.f32 2.0, %v1813_v3  ;;  %v1750_v49 = vmul.f32 %v3012_v24, %v1686_v38 }
 0x1c0   : > { %3019 = vrcp.f32 %v3769_v41  ;;  %v3773_v51 = vadd.f32 %v1189_v62, %v804_v44  ;;  %v1191_v17 = vpop.f32.mrb[39].mxu0 }
 0x1c1   : > { %v1687_v53 = vsub.f32 2.0, %v1623_v47  ;;  %v1941_v55 = vmul.f32 %v1877_v19, %v1749_v63  ;;  %v1814_v18 = vmul.f32 %v1750_v49, %v3737_v35 }
 0x1c2   : > { %v3016_v57 = vpop.eup %3015  ;;  %v3777_v58 = vadd.f32 1.0, %v3773_v51  ;;  %v809_v22 = vpop.f32.mrb[40].mxu1 }
 0x1c3   : > { %v1624_v61 = vmul.f32 %v3016_v57, %v3753_v7  ;;  %v1194_v4 = vpop.f32.mrb[40].mxu0  ;;  %2123 = vperm.xlu1 %2982, %v1941_v55   ;;  %v811_v34 = vpop.f32.mrb[41].mxu1  ;;  %v1878_v6 = vsub.f32 2.0, %v1814_v18  ;;  %v1751_v8 = vmul.f32 %v3014_v40, %v1687_v53 }
 0x1c4   : > { %3021 = vrcp.f32 %v3777_v58  ;;  %v3781_v9 = vadd.f32 %v1194_v4, %v809_v22  ;;  %v1196_v10 = vpop.f32.mrb[41].mxu0 }
 0x1c5   : > { %v1688_v30 = vsub.f32 2.0, %v1624_v61  ;;  %v1942_v14 = vmul.f32 %v1878_v6, %v1750_v49  ;;  %v1815_v35 = vmul.f32 %v1751_v8, %v3745_v50 }
 0x1c6   : > { %v3018_v15 = vpop.eup %3017  ;;  %v3785_v16 = vadd.f32 1.0, %v3781_v9  ;;  %v814_v20 = vpop.f32.mrb[42].mxu1 }
 0x1c7   : > { %v1625_v21 = vmul.f32 %v3018_v15, %v3761_v25  ;;  %v1199_v2 = vpop.f32.mrb[42].mxu0  ;;  %2128 = vperm.xlu0 %2981, %v1942_v14   ;;  %v816_v24 = vpop.f32.mrb[43].mxu1  ;;  %v1879_v26 = vsub.f32 2.0, %v1815_v35  ;;  %v1752_v27 = vmul.f32 %v3016_v57, %v1688_v30 }
 0x1c8   : > { %3023 = vrcp.f32 %v3785_v16  ;;  %v3789_v45 = vadd.f32 %v1199_v2, %v814_v20  ;;  %v1201_v31 = vpop.f32.mrb[43].mxu0 }
 0x1c9   : > { %v1689_v32 = vsub.f32 2.0, %v1625_v21  ;;  %v1943_v63 = vmul.f32 %v1879_v26, %v1751_v8  ;;  %v1816_v50 = vmul.f32 %v1752_v27, %v3753_v7 }
 0x1ca   : > { %v3020_v36 = vpop.eup %3019  ;;  %v3793_v38 = vadd.f32 1.0, %v3789_v45  ;;  %v819_v39 = vpop.f32.mrb[44].mxu1 }
 0x1cb   : > { %v1626_v3 = vmul.f32 %v3020_v36, %v3769_v41  ;;  %v1204_v40 = vpop.f32.mrb[44].mxu0  ;;  %2133 = vperm.xlu1 %2982, %v1943_v63   ;;  %v821_v44 = vpop.f32.mrb[45].mxu1  ;;  %v1880_v47 = vsub.f32 2.0, %v1816_v50  ;;  %v1753_v62 = vmul.f32 %v3018_v15, %v1689_v32 }
 0x1cc   : > { %3025 = vrcp.f32 %v3793_v38  ;;  %v3797_v48 = vadd.f32 %v1204_v40, %v819_v39  ;;  %v1206_v19 = vpop.f32.mrb[45].mxu0 }
 0x1cd   : > { %v1690_v49 = vsub.f32 2.0, %v1626_v3  ;;  %v1944_v17 = vmul.f32 %v1880_v47, %v1752_v27  ;;  %v1817_v7 = vmul.f32 %v1753_v62, %v3761_v25 }
 0x1ce   : > { %v3022_v53 = vpop.eup %3021  ;;  %v3801_v55 = vadd.f32 1.0, %v3797_v48  ;;  %v824_v18 = vpop.f32.mrb[46].mxu1 }
 0x1cf   : > { %v1627_v57 = vmul.f32 %v3022_v53, %v3777_v58  ;;  %v1209_v22 = vpop.f32.mrb[46].mxu0  ;;  %2138 = vperm.xlu0 %2981, %v1944_v17   ;;  %v826_v61 = vpop.f32.mrb[47].mxu1  ;;  %v1881_v4 = vsub.f32 2.0, %v1817_v7  ;;  %v1754_v34 = vmul.f32 %v3020_v36, %v1690_v49 }
 0x1d0   : > { %3027 = vrcp.f32 %v3801_v55  ;;  %v3805_v6 = vadd.f32 %v1209_v22, %v824_v18  ;;  %v1211_v8 = vpop.f32.mrb[47].mxu0 }
 0x1d1   : > { %v1691_v10 = vsub.f32 2.0, %v1627_v57  ;;  %v1945_v30 = vmul.f32 %v1881_v4, %v1753_v62  ;;  %v1818_v25 = vmul.f32 %v1754_v34, %v3769_v41 }
 0x1d2   : > { %v3024_v14 = vpop.eup %3023  ;;  %v3809_v35 = vadd.f32 1.0, %v3805_v6  ;;  %v829_v15 = vpop.f32.mrb[48].mxu1 }
 0x1d3   : > { %v1628_v20 = vmul.f32 %v3024_v14, %v3785_v16  ;;  %v1214_v21 = vpop.f32.mrb[48].mxu0  ;;  %2143 = vperm.xlu1 %2982, %v1945_v30   ;;  %v831_v2 = vpop.f32.mrb[49].mxu1  ;;  %v1882_v24 = vsub.f32 2.0, %v1818_v25  ;;  %v1755_v26 = vmul.f32 %v3022_v53, %v1691_v10 }
 0x1d4   : > { %3029 = vrcp.f32 %v3809_v35  ;;  %v3813_v27 = vadd.f32 %v1214_v21, %v829_v15  ;;  %v1216_v31 = vpop.f32.mrb[49].mxu0 }
 0x1d5   : > { %v1692_v32 = vsub.f32 2.0, %v1628_v20  ;;  %v1946_v63 = vmul.f32 %v1882_v24, %v1754_v34  ;;  %v1819_v41 = vmul.f32 %v1755_v26, %v3777_v58 }
 0x1d6   : > { %v3026_v50 = vpop.eup %3025  ;;  %v3817_v36 = vadd.f32 1.0, %v3813_v27  ;;  %v834_v39 = vpop.f32.mrb[50].mxu1 }
 0x1d7   : > { %v1629_v3 = vmul.f32 %v3026_v50, %v3793_v38  ;;  %v1219_v40 = vpop.f32.mrb[50].mxu0  ;;  %2148 = vperm.xlu0 %2981, %v1946_v63   ;;  %v836_v44 = vpop.f32.mrb[51].mxu1  ;;  %v1883_v47 = vsub.f32 2.0, %v1819_v41  ;;  %v1756_v62 = vmul.f32 %v3024_v14, %v1692_v32 }
 0x1d8   : > { %3031 = vrcp.f32 %v3817_v36  ;;  %v3821_v19 = vadd.f32 %v1219_v40, %v834_v39  ;;  %v1221_v49 = vpop.f32.mrb[51].mxu0 }
 0x1d9   : > { %v1693_v17 = vsub.f32 2.0, %v1629_v3  ;;  %v1947_v7 = vmul.f32 %v1883_v47, %v1755_v26  ;;  %v1820_v58 = vmul.f32 %v1756_v62, %v3785_v16 }
 0x1da   : > { %v3028_v53 = vpop.eup %3027  ;;  %v3825_v18 = vadd.f32 1.0, %v3821_v19  ;;  %v839_v57 = vpop.f32.mrb[52].mxu1 }
 0x1db   : > { %v1630_v22 = vmul.f32 %v3028_v53, %v3801_v55  ;;  %v1224_v61 = vpop.f32.mrb[52].mxu0  ;;  %2153 = vperm.xlu1 %2982, %v1947_v7   ;;  %v841_v4 = vpop.f32.mrb[53].mxu1  ;;  %v1884_v34 = vsub.f32 2.0, %v1820_v58  ;;  %v1757_v8 = vmul.f32 %v3026_v50, %v1693_v17 }
 0x1dc   : > { %3033 = vrcp.f32 %v3825_v18  ;;  %v3829_v10 = vadd.f32 %v1224_v61, %v839_v57  ;;  %v1226_v30 = vpop.f32.mrb[53].mxu0 }
 0x1dd   : > { %v1694_v25 = vsub.f32 2.0, %v1630_v22  ;;  %v1948_v14 = vmul.f32 %v1884_v34, %v1756_v62  ;;  %v1821_v16 = vmul.f32 %v1757_v8, %v3793_v38 }
 0x1de   : > { %v3030_v15 = vpop.eup %3029  ;;  %v3833_v20 = vadd.f32 1.0, %v3829_v10  ;;  %v844_v21 = vpop.f32.mrb[54].mxu1 }
 0x1df   : > { %v1631_v2 = vmul.f32 %v3030_v15, %v3809_v35  ;;  %v1229_v24 = vpop.f32.mrb[54].mxu0  ;;  %2158 = vperm.xlu0 %2981, %v1948_v14   ;;  %v846_v26 = vpop.f32.mrb[55].mxu1  ;;  %v1885_v31 = vsub.f32 2.0, %v1821_v16  ;;  %v1758_v32 = vmul.f32 %v3028_v53, %v1694_v25 }
 0x1e0   : > { %3035 = vrcp.f32 %v3833_v20  ;;  %v3837_v63 = vadd.f32 %v1229_v24, %v844_v21  ;;  %v1231_v41 = vpop.f32.mrb[55].mxu0 }
 0x1e1   : > { %v1695_v50 = vsub.f32 2.0, %v1631_v2  ;;  %v1949_v39 = vmul.f32 %v1885_v31, %v1757_v8  ;;  %v1822_v38 = vmul.f32 %v1758_v32, %v3801_v55 }
 0x1e2   : > { %v3032_v3 = vpop.eup %3031  ;;  %v3841_v40 = vadd.f32 1.0, %v3837_v63  ;;  %v849_v44 = vpop.f32.mrb[56].mxu1 }
 0x1e3   : > { %v1632_v47 = vmul.f32 %v3032_v3, %v3817_v36  ;;  %v1234_v62 = vpop.f32.mrb[56].mxu0  ;;  %2163 = vperm.xlu1 %2982, %v1949_v39   ;;  %v851_v49 = vpop.f32.mrb[57].mxu1  ;;  %v1886_v17 = vsub.f32 2.0, %v1822_v38  ;;  %v1759_v7 = vmul.f32 %v3030_v15, %v1695_v50 }
 0x1e4   : > { %3037 = vrcp.f32 %v3841_v40  ;;  %v3845_v58 = vadd.f32 %v1234_v62, %v849_v44  ;;  %v1236_v53 = vpop.f32.mrb[57].mxu0 }
 0x1e5   : > { %v1696_v57 = vsub.f32 2.0, %v1632_v47  ;;  %v1950_v22 = vmul.f32 %v1886_v17, %v1758_v32  ;;  %v1823_v55 = vmul.f32 %v1759_v7, %v3809_v35 }
 0x1e6   : > { %v3034_v61 = vpop.eup %3033  ;;  %v3849_v4 = vadd.f32 1.0, %v3845_v58  ;;  %v854_v34 = vpop.f32.mrb[58].mxu1 }
 0x1e7   : > { %v1633_v8 = vmul.f32 %v3034_v61, %v3825_v18  ;;  %v1239_v30 = vpop.f32.mrb[58].mxu0  ;;  %2168 = vperm.xlu0 %2981, %v1950_v22   ;;  %v856_v25 = vpop.f32.mrb[59].mxu1  ;;  %v1887_v14 = vsub.f32 2.0, %v1823_v55  ;;  %v1760_v16 = vmul.f32 %v3032_v3, %v1696_v57 }
 0x1e8   : > { %3039 = vrcp.f32 %v3849_v4  ;;  %v3853_v15 = vadd.f32 %v1239_v30, %v854_v34  ;;  %v1241_v21 = vpop.f32.mrb[59].mxu0 }
 0x1e9   : > { %v1697_v2 = vsub.f32 2.0, %v1633_v8  ;;  %v1951_v24 = vmul.f32 %v1887_v14, %v1759_v7  ;;  %v1824_v35 = vmul.f32 %v1760_v16, %v3817_v36 }
 0x1ea   : > { %v3036_v26 = vpop.eup %3035  ;;  %v3857_v31 = vadd.f32 1.0, %v3853_v15  ;;  %v859_v32 = vpop.f32.mrb[60].mxu1 }
 0x1eb   : > { %v1634_v41 = vmul.f32 %v3036_v26, %v3833_v20  ;;  %v1244_v50 = vpop.f32.mrb[60].mxu0  ;;  %2173 = vperm.xlu1 %2982, %v1951_v24   ;;  %v861_v39 = vpop.f32.mrb[61].mxu1  ;;  %v1888_v38 = vsub.f32 2.0, %v1824_v35  ;;  %v1761_v3 = vmul.f32 %v3034_v61, %v1697_v2 }
 0x1ec   : > { %3041 = vrcp.f32 %v3857_v31  ;;  %v3861_v44 = vadd.f32 %v1244_v50, %v859_v32  ;;  %v1246_v47 = vpop.f32.mrb[61].mxu0 }
 0x1ed   : > { %v1698_v62 = vsub.f32 2.0, %v1634_v41  ;;  %v1952_v49 = vmul.f32 %v1888_v38, %v1760_v16  ;;  %v1825_v36 = vmul.f32 %v1761_v3, %v3825_v18 }
 0x1ee   : > { %v3038_v17 = vpop.eup %3037  ;;  %v3865_v7 = vadd.f32 1.0, %v3861_v44  ;;  %v864_v53 = vpop.f32.mrb[62].mxu1 }
 0x1ef   : > { %v1635_v57 = vmul.f32 %v3038_v17, %v3841_v40  ;;  %v1249_v22 = vpop.f32.mrb[62].mxu0  ;;  %2178 = vperm.xlu0 %2981, %v1952_v49   ;;  %v866_v55 = vpop.f32.mrb[63].mxu1  ;;  %v1889_v61 = vsub.f32 2.0, %v1825_v36  ;;  %v1762_v34 = vmul.f32 %v3036_v26, %v1698_v62 }
 0x1f0   : > { %3043 = vrcp.f32 %v3865_v7  ;;  %v3869_v8 = vadd.f32 %v1249_v22, %v864_v53  ;;  %v1251_v30 = vpop.f32.mrb[63].mxu0 }
 0x1f1   : > { %v1699_v25 = vsub.f32 2.0, %v1635_v57  ;;  %v1953_v18 = vmul.f32 %v1889_v61, %v1761_v3  ;;  %v1826_v14 = vmul.f32 %v1762_v34, %v3833_v20 }
 0x1f2   : > { %v3040_v16 = vpop.eup %3039  ;;  %v3876_v21 = vadd.f32 1.0, %v3869_v8  ;;  %v869_v2 = vpop.f32.mrb[64].mxu1 }
 0x1f3   : > { %v1636_v24 = vmul.f32 %v3040_v16, %v3849_v4  ;;  %v1254_v35 = vpop.f32.mrb[64].mxu0  ;;  %2183 = vperm.xlu1 %2982, %v1953_v18   ;;  %v871_v26 = vpop.f32.mrb[65].mxu1  ;;  %v1890_v32 = vsub.f32 2.0, %v1826_v14  ;;  %v1763_v41 = vmul.f32 %v3038_v17, %v1699_v25 }
 0x1f4   : > { %3045 = vrcp.f32 %v3876_v21  ;;  %v3880_v50 = vadd.f32 %v1254_v35, %v869_v2  ;;  %v1256_v20 = vpop.f32.mrb[65].mxu0 }
 0x1f5   : > { %v1700_v39 = vsub.f32 2.0, %v1636_v24  ;;  %v1954_v38 = vmul.f32 %v1890_v32, %v1762_v34  ;;  %v1827_v3 = vmul.f32 %v1763_v41, %v3841_v40 }
 0x1f6   : > { %v3042_v47 = vpop.eup %3041  ;;  %v3885_v62 = vadd.f32 1.0, %v3880_v50  ;;  %v874_v49 = vpop.f32.mrb[66].mxu1 }
 0x1f7   : > { %v1637_v36 = vmul.f32 %v3042_v47, %v3857_v31  ;;  %v1259_v53 = vpop.f32.mrb[66].mxu0  ;;  %2188 = vperm.xlu0 %2981, %v1954_v38   ;;  %v876_v17 = vpop.f32.mrb[67].mxu1  ;;  %v1891_v57 = vsub.f32 2.0, %v1827_v3  ;;  %v1764_v22 = vmul.f32 %v3040_v16, %v1700_v39 }
 0x1f8   : > { %3047 = vrcp.f32 %v3885_v62  ;;  %v3892_v55 = vadd.f32 %v1259_v53, %v874_v49  ;;  %v1261_v40 = vpop.f32.mrb[67].mxu0 }
 0x1f9   : > { %v1701_v61 = vsub.f32 2.0, %v1637_v36  ;;  %v1955_v34 = vmul.f32 %v1891_v57, %v1763_v41  ;;  %v1828_v30 = vmul.f32 %v1764_v22, %v3849_v4 }
 0x1fa   : > { %v3044_v25 = vpop.eup %3043  ;;  %v3896_v18 = vadd.f32 1.0, %v3892_v55  ;;  %v879_v14 = vpop.f32.mrb[68].mxu1 }
 0x1fb   : > { %v1638_v16 = vmul.f32 %v3044_v25, %v3865_v7  ;;  %v1264_v2 = vpop.f32.mrb[68].mxu0  ;;  %2193 = vperm.xlu1 %2982, %v1955_v34   ;;  %v881_v24 = vpop.f32.mrb[69].mxu1  ;;  %v1892_v35 = vsub.f32 2.0, %v1828_v30  ;;  %v1765_v26 = vmul.f32 %v3042_v47, %v1701_v61 }
 0x1fc   : > { %3049 = vrcp.f32 %v3896_v18  ;;  %v3901_v32 = vadd.f32 %v1264_v2, %v879_v14  ;;  %v1266_v41 = vpop.f32.mrb[69].mxu0 }
 0x1fd   : > { %v1702_v4 = vsub.f32 2.0, %v1638_v16  ;;  %v1956_v20 = vmul.f32 %v1892_v35, %v1764_v22  ;;  %v1829_v39 = vmul.f32 %v1765_v26, %v3857_v31 }
 0x1fe   : > { %v3046_v38 = vpop.eup %3045  ;;  %v3906_v3 = vadd.f32 1.0, %v3901_v32  ;;  %v884_v49 = vpop.f32.mrb[70].mxu1 }
 0x1ff   : > { %v1639_v36 = vmul.f32 %v3046_v38, %v3876_v21  ;;  %v1269_v47 = vpop.f32.mrb[70].mxu0  ;;  %2198 = vperm.xlu0 %2981, %v1956_v20   ;;  %v886_v53 = vpop.f32.mrb[71].mxu1  ;;  %v1893_v17 = vsub.f32 2.0, %v1829_v39  ;;  %v1766_v57 = vmul.f32 %v3044_v25, %v1702_v4  ;;  %v2440_v25 = vlaneseq }
 0x200   : > { %3051 = vrcp.f32 %v3906_v3  ;;  %v3910_v40 = vadd.f32 %v1269_v47, %v884_v49  ;;  %v1271_v22 = vpop.f32.mrb[71].mxu0 }
 0x201   : > { %v1703_v31 = vsub.f32 2.0, %v1639_v36  ;;  %v1957_v61 = vmul.f32 %v1893_v17, %v1765_v26  ;;  %v1830_v34 = vmul.f32 %v1766_v57, %v3865_v7  ;;  %v3930_v17 = vand.u32 127, %v2440_v25 }
 0x202   : > { %4612 = vst [vmem:[#allocation15_spill] sm:$0xff] %v3910_v40  ;;  %v3048_v30 = vpop.eup %3047  ;;  %v3918_v14 = vadd.f32 1.0, %v3910_v40  ;;  %v889_v16 = vpop.f32.mrb[72].mxu1  ;;  %v1418_v40 = vld [vmem:[%s3405_s27 + $0x10] sm:$0xff] }
 0x203   : > { %v1640_v2 = vmul.f32 %v3048_v30, %v3885_v62  ;;  %v1274_v24 = vpop.f32.mrb[72].mxu0  ;;  %2203 = vperm.xlu1 %2982, %v1957_v61   ;;  %v891_v35 = vpop.f32.mrb[73].mxu1  ;;  %v1894_v41 = vsub.f32 2.0, %v1830_v34  ;;  %v1767_v4 = vmul.f32 %v3046_v38, %v1703_v31  ;;  %vm2443_vm0 = vcmp.eq.s32.totalorder %v3930_v17, 32 }
 0x204   : > { %3053 = vrcp.f32 %v3918_v14  ;;  %v3922_v20 = vadd.f32 %v1274_v24, %v889_v16  ;;  %v1276_v26 = vpop.f32.mrb[73].mxu0  ;;  %vm2442_vm1 = vcmp.lt.s32.totalorder %v3930_v17, 32 }
 0x205   : > { %v1704_v7 = vsub.f32 2.0, %v1640_v2  ;;  %v1958_v39 = vmul.f32 %v1894_v41, %v1766_v57  ;;  %v1831_v49 = vmul.f32 %v1767_v4, %v3876_v21 }
 0x206   : > { %4613 = vst [vmem:[#allocation16_spill] sm:$0xff] %v3922_v20  ;;  %v3050_v36 = vpop.eup %3049  ;;  %v3928_v47 = vadd.f32 1.0, %v3922_v20  ;;  %v894_v53 = vpop.f32.mrb[74].mxu1 }
 0x207   : > { %v1641_v38 = vmul.f32 %v3050_v36, %v3896_v18  ;;  %v1279_v22 = vpop.f32.mrb[74].mxu0  ;;  %2208 = vperm.xlu0 %2981, %v1958_v39   ;;  %v896_v31 = vpop.f32.mrb[75].mxu1  ;;  %v1895_v61 = vsub.f32 2.0, %v1831_v49  ;;  %v1768_v57 = vmul.f32 %v3048_v30, %v1704_v7  ;;  %v1416_v30 = vld [vmem:[%s3405_s27] sm:$0xff] }
 0x208   : > { %3055 = vrcp.f32 %v3928_v47  ;;  %v3934_v34 = vadd.f32 %v1279_v22, %v894_v53  ;;  %v1281_v21 = vpop.f32.mrb[75].mxu0  ;;  %v1992_v22 = vadd.f32 %v1416_v30, %v3613_v0 }
 0x209   : > { %v1705_v16 = vsub.f32 2.0, %v1641_v38  ;;  %v1959_v2 = vmul.f32 %v1895_v61, %v1767_v4  ;;  %v1832_v25 = vmul.f32 %v1768_v57, %v3885_v62  ;;  %v1417_v61 = vld [vmem:[%s3405_s27 + $0x8] sm:$0xff] }
 0x20a   : > { %4614 = vst [vmem:[#allocation17_spill] sm:$0xff] %v3934_v34  ;;  %v3052_v24 = vpop.eup %3051  ;;  %v3943_v35 = vadd.f32 1.0, %v3934_v34  ;;  %v899_v41 = vpop.f32.mrb[76].mxu1 }
 0x20b   : > { %v1642_v26 = vmul.f32 %v3052_v24, %v3906_v3  ;;  %v1284_v7 = vpop.f32.mrb[76].mxu0  ;;  %2213 = vperm.xlu1 %2982, %v1959_v2   ;;  %v901_v39 = vpop.f32.mrb[77].mxu1  ;;  %v1896_v49 = vsub.f32 2.0, %v1832_v25  ;;  %v1769_v53 = vmul.f32 %v3050_v36, %v1705_v16  ;;  %v3253_v36 = vmov 0.0  }
 0x20c   : > { %3057 = vrcp.f32 %v3943_v35  ;;  %v3949_v4 = vadd.f32 %v1284_v7, %v899_v41  ;;  %v1286_v62 = vpop.f32.mrb[77].mxu0  ;;  %v3961_v16 = vsel %vm2443_vm0, 1.0, %v3253_v36 }
 0x20d   : > { %v1706_v38 = vsub.f32 2.0, %v1642_v26  ;;  %v1960_v31 = vmul.f32 %v1896_v49, %v1768_v57  ;;  %v1833_v21 = vmul.f32 %v1769_v53, %v3896_v18  ;;  %v1993_v49 = vadd.f32 %v1417_v61, %v3621_v60 }
 0x20e   : > { %4615 = vst [vmem:[#allocation18_spill] sm:$0xff] %v3949_v4  ;;  %v3054_v34 = vpop.eup %3053  ;;  %v3956_v20 = vadd.f32 1.0, %v3949_v4  ;;  %v2059_v2 = vpop.permute.xlu0 %2058 }
 0x20f   : > { %v904_v25 = vpop.f32.mrb[78].mxu1  ;;  %v1643_v0 = vmul.f32 %v3054_v34, %v3918_v14  ;;  %v2376_v57 = vmul.f32 %v2059_v2, %v1992_v22  ;;  %v1289_v41 = vpop.f32.mrb[78].mxu0  ;;  %2218 = vperm.xlu0 %2981, %v1960_v31   ;;  %v1897_v30 = vsub.f32 2.0, %v1833_v21  ;;  %v1770_v26 = vmul.f32 %v3052_v24, %v1706_v38 }
 0x210   : > { %v906_v18 = vpop.f32.mrb[79].mxu1  ;;  %3059 = vrcp.f32 %v3956_v20  ;;  %v3965_v7 = vadd.f32 %v1289_v41, %v904_v25  ;;  %v1291_v39 = vpop.f32.mrb[79].mxu0  ;;  %v1994_v41 = vadd.f32 %v1418_v40, %v3629_v11 }
 0x211   : > { %v1707_v62 = vsub.f32 2.0, %v1643_v0  ;;  %v2446_v36 = vsel %vm2442_vm1, %v2376_v57, %v3961_v16  ;;  %v1961_v4 = vmul.f32 %v1897_v30, %v1769_v53  ;;  %v1834_v22 = vmul.f32 %v1770_v26, %v3906_v3 }
 0x212   : > { %v3056_v31 = vpop.eup %3055  ;;  %2513 = vst [vmem:[%s3973_s7] sm:$0xff] %v2446_v36  ;;  %2577 = vst [vmem:[#allocation6] sm:$0xff] %v2446_v36  ;;  %v3977_v24 = vadd.f32 1.0, %v3965_v7  ;;  %v2064_v38 = vpop.permute.xlu0 %2063 }
 0x213   : > { %v909_v60 = vpop.f32.mrb[80].mxu1  ;;  %v1644_v61 = vmul.f32 %v3056_v31, %v3928_v47  ;;  %v2377_v21 = vmul.f32 %v2064_v38, %v1993_v49  ;;  %v1294_v53 = vpop.f32.mrb[80].mxu0  ;;  %2223 = vperm.xlu1 %2982, %v1961_v4   ;;  %v1898_v3 = vsub.f32 2.0, %v1834_v22  ;;  %v1771_v25 = vmul.f32 %v3054_v34, %v1707_v62 }
 0x214   : > { %v911_v2 = vpop.f32.mrb[81].mxu1  ;;  %3061 = vrcp.f32 %v3977_v24  ;;  %v3981_v0 = vadd.f32 %v1294_v53, %v909_v60  ;;  %v1296_v57 = vpop.f32.mrb[81].mxu0 }
 0x215   : > { %v1708_v18 = vsub.f32 2.0, %v1644_v61  ;;  %v2447_v30 = vsel %vm2442_vm1, %v2377_v21, %v3961_v16  ;;  %v1962_v39 = vmul.f32 %v1898_v3, %v1770_v26  ;;  %v1835_v36 = vmul.f32 %v1771_v25, %v3918_v14 }
 0x216   : > { %v3058_v4 = vpop.eup %3057  ;;  %2578 = vst [vmem:[#allocation6 + $0x8] sm:$0xff] %v2447_v30  ;;  %v3991_v34 = vadd.f32 1.0, %v3981_v0  ;;  %v2069_v62 = vpop.permute.xlu1 %2068 }
 0x217   : > { %v914_v22 = vpop.f32.mrb[82].mxu1  ;;  %v1645_v11 = vmul.f32 %v3058_v4, %v3943_v35  ;;  %v2378_v40 = vmul.f32 %v2069_v62, %v1994_v41  ;;  %v1299_v38 = vpop.f32.mrb[82].mxu0  ;;  %2228 = vperm.xlu0 %2981, %v1962_v39   ;;  %v1899_v26 = vsub.f32 2.0, %v1835_v36  ;;  %v1772_v61 = vmul.f32 %v3056_v31, %v1708_v18 }
 0x218   : > { %v916_v60 = vpop.f32.mrb[83].mxu1  ;;  %3063 = vrcp.f32 %v3991_v34  ;;  %v3995_v14 = vadd.f32 %v1299_v38, %v914_v22  ;;  %v1301_v21 = vpop.f32.mrb[83].mxu0 }
 0x219   : > { %v1419_v49 = vld [vmem:[%s3405_s27 + $0x18] sm:$0xff]  ;;  %v1709_v2 = vsub.f32 2.0, %v1645_v11  ;;  %v2448_v3 = vsel %vm2442_vm1, %v2378_v40, %v3961_v16  ;;  %v1963_v57 = vmul.f32 %v1899_v26, %v1771_v25 }
 0x21a   : > { %2514 = vst [vmem:[%s3973_s7 + $0x8] sm:$0xff] %v2447_v30  ;;  %v1995_v53 = vadd.f32 %v1419_v49, %v3637_v23  ;;  %v1836_v30 = vmul.f32 %v1772_v61, %v3928_v47  ;;  %v3060_v39 = vpop.eup %3059  ;;  %2579 = vst [vmem:[#allocation6 + $0x10] sm:$0xff] %v2448_v3  ;;  %v4005_v31 = vadd.f32 1.0, %v3995_v14  ;;  %v2074_v18 = vpop.permute.xlu1 %2073 }
 0x21b   : > { %v919_v36 = vpop.f32.mrb[84].mxu1  ;;  %v1646_v23 = vmul.f32 %v3060_v39, %v3956_v20  ;;  %v1304_v62 = vpop.f32.mrb[84].mxu0  ;;  %2233 = vperm.xlu1 %2982, %v1963_v57   ;;  %v1773_v11 = vmul.f32 %v3058_v4, %v1709_v2 }
 0x21c   : > { %v2379_v49 = vmul.f32 %v2074_v18, %v1995_v53  ;;  %v921_v22 = vpop.f32.mrb[85].mxu1  ;;  %v1900_v25 = vsub.f32 2.0, %v1836_v30  ;;  %3065 = vrcp.f32 %v4005_v31  ;;  %v4009_v47 = vadd.f32 %v1304_v62, %v919_v36  ;;  %v1306_v40 = vpop.f32.mrb[85].mxu0 }
 0x21d   : > { %v1710_v60 = vsub.f32 2.0, %v1646_v23 }
 0x21e   : > { %v2449_v26 = vsel %vm2442_vm1, %v2379_v49, %v3961_v16  ;;  %v1964_v21 = vmul.f32 %v1900_v25, %v1772_v61  ;;  %v3062_v57 = vpop.eup %3061  ;;  %v4019_v4 = vadd.f32 1.0, %v4009_v47  ;;  %v2079_v2 = vpop.permute.xlu0 %2078 }
 0x21f   : > { %2580 = vst [vmem:[#allocation6 + $0x18] sm:$0xff] %v2449_v26  ;;  %v924_v30 = vpop.f32.mrb[86].mxu1  ;;  %v1309_v18 = vpop.f32.mrb[86].mxu0  ;;  %v1774_v23 = vmul.f32 %v3060_v39, %v1710_v60 }
 0x220   : > { %2238 = vperm.xlu0 %2981, %v1964_v21   ;;  %v926_v36 = vpop.f32.mrb[87].mxu1  ;;  %3067 = vrcp.f32 %v4019_v4  ;;  %v1311_v49 = vpop.f32.mrb[87].mxu0 }
 0x221   : > { %v1420_v41 = vld [vmem:[%s3405_s27 + $0x20] sm:$0xff] }
 0x222   : > { %2515 = vst [vmem:[%s3973_s7 + $0x10] sm:$0xff] %v2448_v3  ;;  %v1996_v38 = vadd.f32 %v1420_v41, %v3646_v37  ;;  %v1837_v3 = vmul.f32 %v1773_v11, %v3943_v35  ;;  %v1647_v37 = vmul.f32 %v3062_v57, %v3977_v24  ;;  %v4023_v35 = vadd.f32 %v1309_v18, %v924_v30  ;;  %v3064_v21 = vpop.eup %3063  ;;  %v2084_v60 = vpop.permute.xlu1 %2083 }
 0x224   : > { %v2380_v41 = vmul.f32 %v2079_v2, %v1996_v38  ;;  %v1901_v61 = vsub.f32 2.0, %v1837_v3  ;;  %v1711_v22 = vsub.f32 2.0, %v1647_v37  ;;  %v4033_v39 = vadd.f32 1.0, %v4023_v35  ;;  %v929_v3 = vpop.f32.mrb[88].mxu1  ;;  %v1314_v2 = vpop.f32.mrb[88].mxu0 }
 0x225   : > { %v931_v30 = vpop.f32.mrb[89].mxu1 }
 0x226   : > { %v2450_v25 = vsel %vm2442_vm1, %v2380_v41, %v3961_v16  ;;  %v1965_v40 = vmul.f32 %v1901_v61, %v1773_v11  ;;  %v1775_v37 = vmul.f32 %v3062_v57, %v1711_v22  ;;  %3069 = vrcp.f32 %v4033_v39  ;;  %v1316_v41 = vpop.f32.mrb[89].mxu0  ;;  %v2089_v22 = vpop.permute.xlu0 %2088 }
 0x227   : > { %2581 = vst [vmem:[#allocation6 + $0x20] sm:$0xff] %v2450_v25 }
 0x228   : > { %2243 = vperm.xlu1 %2982, %v1965_v40   ;;  %v3066_v40 = vpop.eup %3065 }
 0x229   : > { %v1421_v53 = vld [vmem:[%s3405_s27 + $0x28] sm:$0xff] }
 0x22a   : > { %2516 = vst [vmem:[%s3973_s7 + $0x18] sm:$0xff] %v2449_v26  ;;  %v1997_v62 = vadd.f32 %v1421_v53, %v3655_v52  ;;  %v1838_v26 = vmul.f32 %v1774_v23, %v3956_v20  ;;  %v1648_v52 = vmul.f32 %v3064_v21, %v3991_v34  ;;  %v4037_v20 = vadd.f32 %v1314_v2, %v929_v3 }
 0x22c   : > { %v2381_v53 = vmul.f32 %v2084_v60, %v1997_v62  ;;  %v1902_v11 = vsub.f32 2.0, %v1838_v26  ;;  %v1712_v36 = vsub.f32 2.0, %v1648_v52  ;;  %v4047_v57 = vadd.f32 1.0, %v4037_v20  ;;  %v934_v26 = vpop.f32.mrb[90].mxu1  ;;  %v1319_v60 = vpop.f32.mrb[90].mxu0 }
 0x22d   : > { %v936_v3 = vpop.f32.mrb[91].mxu1 }
 0x22e   : > { %v2451_v61 = vsel %vm2442_vm1, %v2381_v53, %v3961_v16  ;;  %v1966_v49 = vmul.f32 %v1902_v11, %v1774_v23  ;;  %v1776_v52 = vmul.f32 %v3064_v21, %v1712_v36  ;;  %3071 = vrcp.f32 %v4047_v57  ;;  %v1321_v53 = vpop.f32.mrb[91].mxu0  ;;  %v2094_v36 = vpop.permute.xlu1 %2093 }
 0x22f   : > { %2582 = vst [vmem:[#allocation6 + $0x28] sm:$0xff] %v2451_v61 }
 0x230   : > { %2248 = vperm.xlu0 %2981, %v1966_v49   ;;  %v3068_v49 = vpop.eup %3067 }
 0x231   : > { %v1422_v38 = vld [vmem:[%s3405_s27 + $0x30] sm:$0xff] }
 0x232   : > { %2517 = vst [vmem:[%s3973_s7 + $0x20] sm:$0xff] %v2450_v25  ;;  %v1998_v18 = vadd.f32 %v1422_v38, %v3665_v54  ;;  %v1839_v25 = vmul.f32 %v1775_v37, %v3977_v24  ;;  %v1649_v54 = vmul.f32 %v3066_v40, %v4005_v31  ;;  %v4051_v24 = vadd.f32 %v1319_v60, %v934_v26 }
 0x234   : > { %v2382_v38 = vmul.f32 %v2089_v22, %v1998_v18  ;;  %v1903_v23 = vsub.f32 2.0, %v1839_v25  ;;  %v1713_v30 = vsub.f32 2.0, %v1649_v54  ;;  %v4061_v21 = vadd.f32 1.0, %v4051_v24  ;;  %v939_v25 = vpop.f32.mrb[92].mxu1  ;;  %v1324_v22 = vpop.f32.mrb[92].mxu0 }
 0x235   : > { %v941_v26 = vpop.f32.mrb[93].mxu1 }
 0x236   : > { %v2452_v11 = vsel %vm2442_vm1, %v2382_v38, %v3961_v16  ;;  %v1967_v41 = vmul.f32 %v1903_v23, %v1775_v37  ;;  %v1777_v54 = vmul.f32 %v3066_v40, %v1713_v30  ;;  %3073 = vrcp.f32 %v4061_v21  ;;  %v1326_v38 = vpop.f32.mrb[93].mxu0  ;;  %v2099_v30 = vpop.permute.xlu0 %2098 }
 0x237   : > { %2583 = vst [vmem:[#allocation6 + $0x30] sm:$0xff] %v2452_v11 }
 0x238   : > { %2253 = vperm.xlu1 %2982, %v1967_v41   ;;  %v3070_v41 = vpop.eup %3069 }
 0x239   : > { %v1423_v62 = vld [vmem:[%s3405_s27 + $0x38] sm:$0xff] }
 0x23a   : > { %2518 = vst [vmem:[%s3973_s7 + $0x28] sm:$0xff] %v2451_v61  ;;  %v1999_v2 = vadd.f32 %v1423_v62, %v3675_v5  ;;  %v1840_v61 = vmul.f32 %v1776_v52, %v3991_v34  ;;  %v1650_v5 = vmul.f32 %v3068_v49, %v4019_v4  ;;  %v4065_v34 = vadd.f32 %v1324_v22, %v939_v25 }
 0x23c   : > { %v2383_v62 = vmul.f32 %v2094_v36, %v1999_v2  ;;  %v1904_v37 = vsub.f32 2.0, %v1840_v61  ;;  %v1714_v3 = vsub.f32 2.0, %v1650_v5  ;;  %v4075_v40 = vadd.f32 1.0, %v4065_v34  ;;  %v944_v61 = vpop.f32.mrb[94].mxu1  ;;  %v1329_v36 = vpop.f32.mrb[94].mxu0 }
 0x23d   : > { %v946_v25 = vpop.f32.mrb[95].mxu1 }
 0x23e   : > { %v2453_v23 = vsel %vm2442_vm1, %v2383_v62, %v3961_v16  ;;  %v1968_v53 = vmul.f32 %v1904_v37, %v1776_v52  ;;  %v1778_v5 = vmul.f32 %v3068_v49, %v1714_v3  ;;  %3075 = vrcp.f32 %v4075_v40  ;;  %v1331_v62 = vpop.f32.mrb[95].mxu0  ;;  %v2104_v3 = vpop.permute.xlu1 %2103 }
 0x23f   : > { %2584 = vst [vmem:[#allocation6 + $0x38] sm:$0xff] %v2453_v23 }
 0x240   : > { %2258 = vperm.xlu0 %2981, %v1968_v53   ;;  %v3072_v53 = vpop.eup %3071 }
 0x241   : > { %v1424_v18 = vld [vmem:[%s3405_s27 + $0x40] sm:$0xff] }
 0x242   : > { %2519 = vst [vmem:[%s3973_s7 + $0x30] sm:$0xff] %v2452_v11  ;;  %v2000_v60 = vadd.f32 %v1424_v18, %v3685_v1  ;;  %v1841_v11 = vmul.f32 %v1777_v54, %v4005_v31  ;;  %v1651_v1 = vmul.f32 %v3070_v41, %v4033_v39  ;;  %v4079_v31 = vadd.f32 %v1329_v36, %v944_v61 }
 0x244   : > { %v2384_v18 = vmul.f32 %v2099_v30, %v2000_v60  ;;  %v1905_v52 = vsub.f32 2.0, %v1841_v11  ;;  %v1715_v26 = vsub.f32 2.0, %v1651_v1  ;;  %v4089_v49 = vadd.f32 1.0, %v4079_v31  ;;  %v949_v11 = vpop.f32.mrb[96].mxu1  ;;  %v1334_v30 = vpop.f32.mrb[96].mxu0 }
 0x245   : > { %v951_v61 = vpop.f32.mrb[97].mxu1 }
 0x246   : > { %v2454_v37 = vsel %vm2442_vm1, %v2384_v18, %v3961_v16  ;;  %v1969_v38 = vmul.f32 %v1905_v52, %v1777_v54  ;;  %v1779_v1 = vmul.f32 %v3070_v41, %v1715_v26  ;;  %3077 = vrcp.f32 %v4089_v49  ;;  %v1336_v18 = vpop.f32.mrb[97].mxu0  ;;  %v2109_v26 = vpop.permute.xlu0 %2108 }
 0x247   : > { %2585 = vst [vmem:[#allocation6 + $0x40] sm:$0xff] %v2454_v37 }
 0x248   : > { %2263 = vperm.xlu1 %2982, %v1969_v38   ;;  %v3074_v38 = vpop.eup %3073 }
 0x249   : > { %v1425_v2 = vld [vmem:[%s3405_s27 + $0x48] sm:$0xff] }
 0x24a   : > { %2520 = vst [vmem:[%s3973_s7 + $0x38] sm:$0xff] %v2453_v23  ;;  %v2001_v22 = vadd.f32 %v1425_v2, %v3693_v12  ;;  %v1842_v23 = vmul.f32 %v1778_v5, %v4019_v4  ;;  %v1652_v12 = vmul.f32 %v3072_v53, %v4047_v57  ;;  %v4093_v4 = vadd.f32 %v1334_v30, %v949_v11 }
 0x24c   : > { %v2385_v2 = vmul.f32 %v2104_v3, %v2001_v22  ;;  %v1906_v54 = vsub.f32 2.0, %v1842_v23  ;;  %v1716_v25 = vsub.f32 2.0, %v1652_v12  ;;  %v4103_v41 = vadd.f32 1.0, %v4093_v4  ;;  %v954_v23 = vpop.f32.mrb[98].mxu1  ;;  %v1339_v3 = vpop.f32.mrb[98].mxu0 }
 0x24d   : > { %v956_v11 = vpop.f32.mrb[99].mxu1 }
 0x24e   : > { %v2455_v52 = vsel %vm2442_vm1, %v2385_v2, %v3961_v16  ;;  %v1970_v62 = vmul.f32 %v1906_v54, %v1778_v5  ;;  %v1780_v12 = vmul.f32 %v3072_v53, %v1716_v25  ;;  %3079 = vrcp.f32 %v4103_v41  ;;  %v1341_v2 = vpop.f32.mrb[99].mxu0  ;;  %v2114_v25 = vpop.permute.xlu1 %2113 }
 0x24f   : > { %2586 = vst [vmem:[#allocation6 + $0x48] sm:$0xff] %v2455_v52 }
 0x250   : > { %2268 = vperm.xlu0 %2981, %v1970_v62   ;;  %v3076_v62 = vpop.eup %3075 }
 0x251   : > { %v1426_v60 = vld [vmem:[%s3405_s27 + $0x50] sm:$0xff] }
 0x252   : > { %2521 = vst [vmem:[%s3973_s7 + $0x40] sm:$0xff] %v2454_v37  ;;  %v2002_v36 = vadd.f32 %v1426_v60, %v3701_v28  ;;  %v1843_v37 = vmul.f32 %v1779_v1, %v4033_v39  ;;  %v1653_v28 = vmul.f32 %v3074_v38, %v4061_v21  ;;  %v4107_v39 = vadd.f32 %v1339_v3, %v954_v23 }
 0x254   : > { %v2386_v60 = vmul.f32 %v2109_v26, %v2002_v36  ;;  %v1907_v5 = vsub.f32 2.0, %v1843_v37  ;;  %v1717_v61 = vsub.f32 2.0, %v1653_v28  ;;  %v4117_v53 = vadd.f32 1.0, %v4107_v39  ;;  %v959_v37 = vpop.f32.mrb[100].mxu1  ;;  %v1344_v26 = vpop.f32.mrb[100].mxu0 }
 0x255   : > { %v961_v23 = vpop.f32.mrb[101].mxu1 }
 0x256   : > { %v2456_v54 = vsel %vm2442_vm1, %v2386_v60, %v3961_v16  ;;  %v1971_v18 = vmul.f32 %v1907_v5, %v1779_v1  ;;  %v1781_v28 = vmul.f32 %v3074_v38, %v1717_v61  ;;  %3081 = vrcp.f32 %v4117_v53  ;;  %v1346_v60 = vpop.f32.mrb[101].mxu0  ;;  %v2119_v61 = vpop.permute.xlu0 %2118 }
 0x257   : > { %2587 = vst [vmem:[#allocation6 + $0x50] sm:$0xff] %v2456_v54 }
 0x258   : > { %2273 = vperm.xlu1 %2982, %v1971_v18   ;;  %v3078_v18 = vpop.eup %3077 }
 0x259   : > { %v1427_v22 = vld [vmem:[%s3405_s27 + $0x58] sm:$0xff] }
 0x25a   : > { %2522 = vst [vmem:[%s3973_s7 + $0x48] sm:$0xff] %v2455_v52  ;;  %v2003_v30 = vadd.f32 %v1427_v22, %v3709_v42  ;;  %v1844_v52 = vmul.f32 %v1780_v12, %v4047_v57  ;;  %v1654_v42 = vmul.f32 %v3076_v62, %v4075_v40  ;;  %v4121_v57 = vadd.f32 %v1344_v26, %v959_v37 }
 0x25c   : > { %v2387_v22 = vmul.f32 %v2114_v25, %v2003_v30  ;;  %v1908_v1 = vsub.f32 2.0, %v1844_v52  ;;  %v1718_v11 = vsub.f32 2.0, %v1654_v42  ;;  %v4131_v38 = vadd.f32 1.0, %v4121_v57  ;;  %v964_v52 = vpop.f32.mrb[102].mxu1  ;;  %v1349_v25 = vpop.f32.mrb[102].mxu0 }
 0x25d   : > { %v966_v37 = vpop.f32.mrb[103].mxu1 }
 0x25e   : > { %v2457_v5 = vsel %vm2442_vm1, %v2387_v22, %v3961_v16  ;;  %v1972_v2 = vmul.f32 %v1908_v1, %v1780_v12  ;;  %v1782_v42 = vmul.f32 %v3076_v62, %v1718_v11  ;;  %3083 = vrcp.f32 %v4131_v38  ;;  %v1351_v22 = vpop.f32.mrb[103].mxu0  ;;  %v2124_v11 = vpop.permute.xlu1 %2123 }
 0x25f   : > { %2588 = vst [vmem:[#allocation6 + $0x58] sm:$0xff] %v2457_v5 }
 0x260   : > { %2278 = vperm.xlu0 %2981, %v1972_v2   ;;  %v3080_v2 = vpop.eup %3079 }
 0x261   : > { %v1428_v36 = vld [vmem:[%s3405_s27 + $0x60] sm:$0xff] }
 0x262   : > { %2523 = vst [vmem:[%s3973_s7 + $0x50] sm:$0xff] %v2456_v54  ;;  %v2004_v3 = vadd.f32 %v1428_v36, %v3717_v56  ;;  %v1845_v54 = vmul.f32 %v1781_v28, %v4061_v21  ;;  %v1655_v56 = vmul.f32 %v3078_v18, %v4089_v49  ;;  %v4135_v21 = vadd.f32 %v1349_v25, %v964_v52 }
 0x264   : > { %v2388_v36 = vmul.f32 %v2119_v61, %v2004_v3  ;;  %v1909_v12 = vsub.f32 2.0, %v1845_v54  ;;  %v1719_v23 = vsub.f32 2.0, %v1655_v56  ;;  %v4145_v62 = vadd.f32 1.0, %v4135_v21  ;;  %v969_v54 = vpop.f32.mrb[104].mxu1  ;;  %v1354_v61 = vpop.f32.mrb[104].mxu0 }
 0x265   : > { %v971_v52 = vpop.f32.mrb[105].mxu1 }
 0x266   : > { %v2458_v1 = vsel %vm2442_vm1, %v2388_v36, %v3961_v16  ;;  %v1973_v60 = vmul.f32 %v1909_v12, %v1781_v28  ;;  %v1783_v56 = vmul.f32 %v3078_v18, %v1719_v23  ;;  %3085 = vrcp.f32 %v4145_v62  ;;  %v1356_v36 = vpop.f32.mrb[105].mxu0  ;;  %v2129_v23 = vpop.permute.xlu0 %2128 }
 0x267   : > { %2589 = vst [vmem:[#allocation6 + $0x60] sm:$0xff] %v2458_v1 }
 0x268   : > { %2283 = vperm.xlu1 %2982, %v1973_v60   ;;  %v3082_v60 = vpop.eup %3081 }
 0x269   : > { %v1429_v30 = vld [vmem:[%s3405_s27 + $0x68] sm:$0xff] }
 0x26a   : > { %2524 = vst [vmem:[%s3973_s7 + $0x58] sm:$0xff] %v2457_v5  ;;  %v2005_v26 = vadd.f32 %v1429_v30, %v3725_v13  ;;  %v1846_v5 = vmul.f32 %v1782_v42, %v4075_v40  ;;  %v1656_v13 = vmul.f32 %v3080_v2, %v4103_v41  ;;  %v4149_v40 = vadd.f32 %v1354_v61, %v969_v54 }
 0x26c   : > { %v2389_v30 = vmul.f32 %v2124_v11, %v2005_v26  ;;  %v1910_v28 = vsub.f32 2.0, %v1846_v5  ;;  %v1720_v37 = vsub.f32 2.0, %v1656_v13  ;;  %v4159_v18 = vadd.f32 1.0, %v4149_v40  ;;  %v974_v5 = vpop.f32.mrb[106].mxu1  ;;  %v1359_v11 = vpop.f32.mrb[106].mxu0 }
 0x26d   : > { %v976_v54 = vpop.f32.mrb[107].mxu1 }
 0x26e   : > { %v2459_v12 = vsel %vm2442_vm1, %v2389_v30, %v3961_v16  ;;  %v1974_v22 = vmul.f32 %v1910_v28, %v1782_v42  ;;  %v1784_v13 = vmul.f32 %v3080_v2, %v1720_v37  ;;  %3087 = vrcp.f32 %v4159_v18  ;;  %v1361_v30 = vpop.f32.mrb[107].mxu0  ;;  %v2134_v37 = vpop.permute.xlu1 %2133 }
 0x26f   : > { %2590 = vst [vmem:[#allocation6 + $0x68] sm:$0xff] %v2459_v12 }
 0x270   : > { %2288 = vperm.xlu0 %2981, %v1974_v22   ;;  %v3084_v22 = vpop.eup %3083 }
 0x271   : > { %v1430_v3 = vld [vmem:[%s3405_s27 + $0x70] sm:$0xff] }
 0x272   : > { %2525 = vst [vmem:[%s3973_s7 + $0x60] sm:$0xff] %v2458_v1  ;;  %v2006_v25 = vadd.f32 %v1430_v3, %v3733_v29  ;;  %v1847_v1 = vmul.f32 %v1783_v56, %v4089_v49  ;;  %v1657_v29 = vmul.f32 %v3082_v60, %v4117_v53  ;;  %v4163_v49 = vadd.f32 %v1359_v11, %v974_v5 }
 0x274   : > { %v2390_v3 = vmul.f32 %v2129_v23, %v2006_v25  ;;  %v1911_v42 = vsub.f32 2.0, %v1847_v1  ;;  %v1721_v52 = vsub.f32 2.0, %v1657_v29  ;;  %v4173_v2 = vadd.f32 1.0, %v4163_v49  ;;  %v979_v1 = vpop.f32.mrb[108].mxu1  ;;  %v1364_v23 = vpop.f32.mrb[108].mxu0 }
 0x275   : > { %v981_v5 = vpop.f32.mrb[109].mxu1 }
 0x276   : > { %v2460_v28 = vsel %vm2442_vm1, %v2390_v3, %v3961_v16  ;;  %v1975_v36 = vmul.f32 %v1911_v42, %v1783_v56  ;;  %v1785_v29 = vmul.f32 %v3082_v60, %v1721_v52  ;;  %3089 = vrcp.f32 %v4173_v2  ;;  %v1366_v3 = vpop.f32.mrb[109].mxu0  ;;  %v2139_v52 = vpop.permute.xlu0 %2138 }
 0x277   : > { %2591 = vst [vmem:[#allocation6 + $0x70] sm:$0xff] %v2460_v28 }
 0x278   : > { %2293 = vperm.xlu1 %2982, %v1975_v36   ;;  %v3086_v36 = vpop.eup %3085 }
 0x279   : > { %v1431_v26 = vld [vmem:[%s3405_s27 + $0x78] sm:$0xff] }
 0x27a   : > { %2526 = vst [vmem:[%s3973_s7 + $0x68] sm:$0xff] %v2459_v12  ;;  %v2007_v61 = vadd.f32 %v1431_v26, %v3741_v46  ;;  %v1848_v12 = vmul.f32 %v1784_v13, %v4103_v41  ;;  %v1658_v46 = vmul.f32 %v3084_v22, %v4131_v38  ;;  %v4177_v41 = vadd.f32 %v1364_v23, %v979_v1 }
 0x27c   : > { %v2391_v26 = vmul.f32 %v2134_v37, %v2007_v61  ;;  %v1912_v56 = vsub.f32 2.0, %v1848_v12  ;;  %v1722_v54 = vsub.f32 2.0, %v1658_v46  ;;  %v4187_v60 = vadd.f32 1.0, %v4177_v41  ;;  %v984_v12 = vpop.f32.mrb[110].mxu1  ;;  %v1369_v37 = vpop.f32.mrb[110].mxu0 }
 0x27d   : > { %v986_v1 = vpop.f32.mrb[111].mxu1 }
 0x27e   : > { %v2461_v42 = vsel %vm2442_vm1, %v2391_v26, %v3961_v16  ;;  %v1976_v30 = vmul.f32 %v1912_v56, %v1784_v13  ;;  %v1786_v46 = vmul.f32 %v3084_v22, %v1722_v54  ;;  %3091 = vrcp.f32 %v4187_v60  ;;  %v1371_v26 = vpop.f32.mrb[111].mxu0  ;;  %v2144_v54 = vpop.permute.xlu1 %2143 }
 0x27f   : > { %2592 = vst [vmem:[#allocation6 + $0x78] sm:$0xff] %v2461_v42 }
 0x280   : > { %2298 = vperm.xlu0 %2981, %v1976_v30   ;;  %v3088_v30 = vpop.eup %3087 }
 0x281   : > { %v1432_v25 = vld [vmem:[%s3405_s27 + $0x80] sm:$0xff] }
 0x282   : > { %2527 = vst [vmem:[%s3973_s7 + $0x70] sm:$0xff] %v2460_v28  ;;  %v2008_v11 = vadd.f32 %v1432_v25, %v3749_v59  ;;  %v1849_v28 = vmul.f32 %v1785_v29, %v4117_v53  ;;  %v1659_v59 = vmul.f32 %v3086_v36, %v4145_v62  ;;  %v4191_v53 = vadd.f32 %v1369_v37, %v984_v12 }
 0x284   : > { %v2392_v25 = vmul.f32 %v2139_v52, %v2008_v11  ;;  %v1913_v13 = vsub.f32 2.0, %v1849_v28  ;;  %v1723_v5 = vsub.f32 2.0, %v1659_v59  ;;  %v4201_v22 = vadd.f32 1.0, %v4191_v53  ;;  %v989_v28 = vpop.f32.mrb[112].mxu1  ;;  %v1374_v52 = vpop.f32.mrb[112].mxu0 }
 0x285   : > { %v991_v12 = vpop.f32.mrb[113].mxu1 }
 0x286   : > { %v2462_v56 = vsel %vm2442_vm1, %v2392_v25, %v3961_v16  ;;  %v1977_v3 = vmul.f32 %v1913_v13, %v1785_v29  ;;  %v1787_v59 = vmul.f32 %v3086_v36, %v1723_v5  ;;  %3093 = vrcp.f32 %v4201_v22  ;;  %v1376_v25 = vpop.f32.mrb[113].mxu0  ;;  %v2149_v5 = vpop.permute.xlu0 %2148 }
 0x287   : > { %2593 = vst [vmem:[#allocation6 + $0x80] sm:$0xff] %v2462_v56 }
 0x288   : > { %2303 = vperm.xlu1 %2982, %v1977_v3   ;;  %v3090_v3 = vpop.eup %3089 }
 0x289   : > { %v1433_v61 = vld [vmem:[%s3405_s27 + $0x88] sm:$0xff] }
 0x28a   : > { %2528 = vst [vmem:[%s3973_s7 + $0x78] sm:$0xff] %v2461_v42  ;;  %v2009_v23 = vadd.f32 %v1433_v61, %v3757_v43  ;;  %v1850_v42 = vmul.f32 %v1786_v46, %v4131_v38  ;;  %v1660_v43 = vmul.f32 %v3088_v30, %v4159_v18  ;;  %v4205_v38 = vadd.f32 %v1374_v52, %v989_v28 }
 0x28c   : > { %v2393_v61 = vmul.f32 %v2144_v54, %v2009_v23  ;;  %v1914_v29 = vsub.f32 2.0, %v1850_v42  ;;  %v1724_v1 = vsub.f32 2.0, %v1660_v43  ;;  %v4215_v36 = vadd.f32 1.0, %v4205_v38  ;;  %v994_v42 = vpop.f32.mrb[114].mxu1  ;;  %v1379_v54 = vpop.f32.mrb[114].mxu0 }
 0x28d   : > { %v996_v28 = vpop.f32.mrb[115].mxu1 }
 0x28e   : > { %v2463_v13 = vsel %vm2442_vm1, %v2393_v61, %v3961_v16  ;;  %v1978_v26 = vmul.f32 %v1914_v29, %v1786_v46  ;;  %v1788_v43 = vmul.f32 %v3088_v30, %v1724_v1  ;;  %3095 = vrcp.f32 %v4215_v36  ;;  %v1381_v61 = vpop.f32.mrb[115].mxu0  ;;  %v2154_v1 = vpop.permute.xlu1 %2153 }
 0x28f   : > { %2594 = vst [vmem:[#allocation6 + $0x88] sm:$0xff] %v2463_v13 }
 0x290   : > { %2308 = vperm.xlu0 %2981, %v1978_v26   ;;  %v3092_v26 = vpop.eup %3091 }
 0x291   : > { %v1434_v11 = vld [vmem:[%s3405_s27 + $0x90] sm:$0xff] }
 0x292   : > { %2529 = vst [vmem:[%s3973_s7 + $0x80] sm:$0xff] %v2462_v56  ;;  %v2010_v37 = vadd.f32 %v1434_v11, %v3765_v33  ;;  %v1851_v56 = vmul.f32 %v1787_v59, %v4145_v62  ;;  %v1661_v33 = vmul.f32 %v3090_v3, %v4173_v2  ;;  %v4219_v62 = vadd.f32 %v1379_v54, %v994_v42 }
 0x294   : > { %v2394_v11 = vmul.f32 %v2149_v5, %v2010_v37  ;;  %v1915_v46 = vsub.f32 2.0, %v1851_v56  ;;  %v1725_v12 = vsub.f32 2.0, %v1661_v33  ;;  %v4229_v30 = vadd.f32 1.0, %v4219_v62  ;;  %v999_v56 = vpop.f32.mrb[116].mxu1  ;;  %v1384_v5 = vpop.f32.mrb[116].mxu0 }
 0x295   : > { %v1001_v42 = vpop.f32.mrb[117].mxu1 }
 0x296   : > { %v2464_v29 = vsel %vm2442_vm1, %v2394_v11, %v3961_v16  ;;  %v1979_v25 = vmul.f32 %v1915_v46, %v1787_v59  ;;  %v1789_v33 = vmul.f32 %v3090_v3, %v1725_v12  ;;  %3097 = vrcp.f32 %v4229_v30  ;;  %v1386_v11 = vpop.f32.mrb[117].mxu0  ;;  %v2159_v12 = vpop.permute.xlu0 %2158 }
 0x297   : > { %2595 = vst [vmem:[#allocation6 + $0x90] sm:$0xff] %v2464_v29 }
 0x298   : > { %2313 = vperm.xlu1 %2982, %v1979_v25   ;;  %v3094_v25 = vpop.eup %3093 }
 0x299   : > { %v1435_v23 = vld [vmem:[%s3405_s27 + $0x98] sm:$0xff] }
 0x29a   : > { %2530 = vst [vmem:[%s3973_s7 + $0x88] sm:$0xff] %v2463_v13  ;;  %v2011_v52 = vadd.f32 %v1435_v23, %v3773_v51  ;;  %v1852_v13 = vmul.f32 %v1788_v43, %v4159_v18  ;;  %v1662_v51 = vmul.f32 %v3092_v26, %v4187_v60  ;;  %v4233_v18 = vadd.f32 %v1384_v5, %v999_v56 }
 0x29c   : > { %v2395_v23 = vmul.f32 %v2154_v1, %v2011_v52  ;;  %v1916_v59 = vsub.f32 2.0, %v1852_v13  ;;  %v1726_v28 = vsub.f32 2.0, %v1662_v51  ;;  %v4243_v3 = vadd.f32 1.0, %v4233_v18  ;;  %v1004_v13 = vpop.f32.mrb[118].mxu1  ;;  %v1389_v1 = vpop.f32.mrb[118].mxu0 }
 0x29d   : > { %v1006_v56 = vpop.f32.mrb[119].mxu1 }
 0x29e   : > { %v2465_v46 = vsel %vm2442_vm1, %v2395_v23, %v3961_v16  ;;  %v1980_v61 = vmul.f32 %v1916_v59, %v1788_v43  ;;  %v1790_v51 = vmul.f32 %v3092_v26, %v1726_v28  ;;  %3099 = vrcp.f32 %v4243_v3  ;;  %v1391_v23 = vpop.f32.mrb[119].mxu0  ;;  %v2164_v28 = vpop.permute.xlu1 %2163 }
 0x29f   : > { %2596 = vst [vmem:[#allocation6 + $0x98] sm:$0xff] %v2465_v46 }
 0x2a0   : > { %2318 = vperm.xlu0 %2981, %v1980_v61   ;;  %v3096_v61 = vpop.eup %3095 }
 0x2a1   : > { %v1436_v37 = vld [vmem:[%s3405_s27 + $0xa0] sm:$0xff] }
 0x2a2   : > { %2531 = vst [vmem:[%s3973_s7 + $0x90] sm:$0xff] %v2464_v29  ;;  %v2012_v54 = vadd.f32 %v1436_v37, %v3781_v9  ;;  %v1853_v29 = vmul.f32 %v1789_v33, %v4173_v2  ;;  %v1663_v9 = vmul.f32 %v3094_v25, %v4201_v22  ;;  %v4247_v2 = vadd.f32 %v1389_v1, %v1004_v13 }
 0x2a4   : > { %v2396_v37 = vmul.f32 %v2159_v12, %v2012_v54  ;;  %v1917_v43 = vsub.f32 2.0, %v1853_v29  ;;  %v1727_v42 = vsub.f32 2.0, %v1663_v9  ;;  %v4257_v26 = vadd.f32 1.0, %v4247_v2  ;;  %v1009_v29 = vpop.f32.mrb[120].mxu1  ;;  %v1394_v12 = vpop.f32.mrb[120].mxu0 }
 0x2a5   : > { %v1011_v13 = vpop.f32.mrb[121].mxu1 }
 0x2a6   : > { %v2466_v59 = vsel %vm2442_vm1, %v2396_v37, %v3961_v16  ;;  %v1981_v11 = vmul.f32 %v1917_v43, %v1789_v33  ;;  %v1791_v9 = vmul.f32 %v3094_v25, %v1727_v42  ;;  %3101 = vrcp.f32 %v4257_v26  ;;  %v1396_v37 = vpop.f32.mrb[121].mxu0  ;;  %v2169_v42 = vpop.permute.xlu0 %2168 }
 0x2a7   : > { %2597 = vst [vmem:[#allocation6 + $0xa0] sm:$0xff] %v2466_v59 }
 0x2a8   : > { %2323 = vperm.xlu1 %2982, %v1981_v11   ;;  %v3098_v11 = vpop.eup %3097 }
 0x2a9   : > { %v1437_v52 = vld [vmem:[%s3405_s27 + $0xa8] sm:$0xff] }
 0x2aa   : > { %2532 = vst [vmem:[%s3973_s7 + $0x98] sm:$0xff] %v2465_v46  ;;  %v2013_v5 = vadd.f32 %v1437_v52, %v3789_v45  ;;  %v1854_v46 = vmul.f32 %v1790_v51, %v4187_v60  ;;  %v1664_v45 = vmul.f32 %v3096_v61, %v4215_v36  ;;  %v4261_v60 = vadd.f32 %v1394_v12, %v1009_v29 }
 0x2ac   : > { %v2397_v52 = vmul.f32 %v2164_v28, %v2013_v5  ;;  %v1918_v33 = vsub.f32 2.0, %v1854_v46  ;;  %v1728_v56 = vsub.f32 2.0, %v1664_v45  ;;  %v4271_v25 = vadd.f32 1.0, %v4261_v60  ;;  %v1014_v46 = vpop.f32.mrb[122].mxu1  ;;  %v1399_v28 = vpop.f32.mrb[122].mxu0 }
 0x2ad   : > { %v1016_v29 = vpop.f32.mrb[123].mxu1 }
 0x2ae   : > { %v2467_v43 = vsel %vm2442_vm1, %v2397_v52, %v3961_v16  ;;  %v1982_v23 = vmul.f32 %v1918_v33, %v1790_v51  ;;  %v1792_v45 = vmul.f32 %v3096_v61, %v1728_v56  ;;  %3103 = vrcp.f32 %v4271_v25  ;;  %v1401_v52 = vpop.f32.mrb[123].mxu0  ;;  %v2174_v56 = vpop.permute.xlu1 %2173 }
 0x2af   : > { %2598 = vst [vmem:[#allocation6 + $0xa8] sm:$0xff] %v2467_v43 }
 0x2b0   : > { %2328 = vperm.xlu0 %2981, %v1982_v23   ;;  %v3100_v23 = vpop.eup %3099 }
 0x2b1   : > { %v1438_v54 = vld [vmem:[%s3405_s27 + $0xb0] sm:$0xff] }
 0x2b2   : > { %2533 = vst [vmem:[%s3973_s7 + $0xa0] sm:$0xff] %v2466_v59  ;;  %v2014_v1 = vadd.f32 %v1438_v54, %v3797_v48  ;;  %v1855_v59 = vmul.f32 %v1791_v9, %v4201_v22  ;;  %v1665_v48 = vmul.f32 %v3098_v11, %v4229_v30  ;;  %v4275_v22 = vadd.f32 %v1399_v28, %v1014_v46 }
 0x2b4   : > { %v2398_v54 = vmul.f32 %v2169_v42, %v2014_v1  ;;  %v1919_v51 = vsub.f32 2.0, %v1855_v59  ;;  %v1729_v13 = vsub.f32 2.0, %v1665_v48  ;;  %v4285_v61 = vadd.f32 1.0, %v4275_v22  ;;  %v1019_v59 = vpop.f32.mrb[124].mxu1  ;;  %v1404_v42 = vpop.f32.mrb[124].mxu0 }
 0x2b5   : > { %v1021_v46 = vpop.f32.mrb[125].mxu1 }
 0x2b6   : > { %v2468_v33 = vsel %vm2442_vm1, %v2398_v54, %v3961_v16  ;;  %v1983_v37 = vmul.f32 %v1919_v51, %v1791_v9  ;;  %v1793_v48 = vmul.f32 %v3098_v11, %v1729_v13  ;;  %3105 = vrcp.f32 %v4285_v61  ;;  %v1406_v54 = vpop.f32.mrb[125].mxu0  ;;  %v2179_v13 = vpop.permute.xlu0 %2178 }
 0x2b7   : > { %2599 = vst [vmem:[#allocation6 + $0xb0] sm:$0xff] %v2468_v33 }
 0x2b8   : > { %2333 = vperm.xlu1 %2982, %v1983_v37   ;;  %v3102_v37 = vpop.eup %3101 }
 0x2b9   : > { %v1439_v5 = vld [vmem:[%s3405_s27 + $0xb8] sm:$0xff] }
 0x2ba   : > { %2534 = vst [vmem:[%s3973_s7 + $0xa8] sm:$0xff] %v2467_v43  ;;  %v2015_v12 = vadd.f32 %v1439_v5, %v3805_v6  ;;  %v1856_v43 = vmul.f32 %v1792_v45, %v4215_v36  ;;  %v1666_v6 = vmul.f32 %v3100_v23, %v4243_v3  ;;  %v4289_v36 = vadd.f32 %v1404_v42, %v1019_v59 }
 0x2bc   : > { %v2399_v5 = vmul.f32 %v2174_v56, %v2015_v12  ;;  %v1920_v9 = vsub.f32 2.0, %v1856_v43  ;;  %v1730_v29 = vsub.f32 2.0, %v1666_v6  ;;  %v4299_v11 = vadd.f32 1.0, %v4289_v36  ;;  %v1024_v43 = vpop.f32.mrb[126].mxu1  ;;  %v1409_v56 = vpop.f32.mrb[126].mxu0 }
 0x2bd   : > { %v1026_v59 = vpop.f32.mrb[127].mxu1 }
 0x2be   : > { %v2469_v51 = vsel %vm2442_vm1, %v2399_v5, %v3961_v16  ;;  %v1984_v52 = vmul.f32 %v1920_v9, %v1792_v45  ;;  %v1794_v6 = vmul.f32 %v3100_v23, %v1730_v29  ;;  %3107 = vrcp.f32 %v4299_v11  ;;  %v1411_v5 = vpop.f32.mrb[127].mxu0  ;;  %v2184_v29 = vpop.permute.xlu1 %2183 }
 0x2bf   : > { %2600 = vst [vmem:[#allocation6 + $0xb8] sm:$0xff] %v2469_v51 }
 0x2c0   : > { %2338 = vperm.xlu0 %2981, %v1984_v52   ;;  %v3104_v52 = vpop.eup %3103 }
 0x2c1   : > { %v1440_v1 = vld [vmem:[%s3405_s27 + $0xc0] sm:$0xff]  ;;  %v3106_v59 = vpop.eup %3105 }
 0x2c2   : > { %2535 = vst [vmem:[%s3973_s7 + $0xb0] sm:$0xff] %v2468_v33  ;;  %v2016_v28 = vadd.f32 %v1440_v1, %v3813_v27  ;;  %v1857_v33 = vmul.f32 %v1793_v48, %v4229_v30  ;;  %v1667_v27 = vmul.f32 %v3102_v37, %v4257_v26  ;;  %v4303_v30 = vadd.f32 %v1409_v56, %v1024_v43 }
 0x2c4   : > { %v2400_v1 = vmul.f32 %v2179_v13, %v2016_v28  ;;  %v1921_v45 = vsub.f32 2.0, %v1857_v33  ;;  %v1731_v46 = vsub.f32 2.0, %v1667_v27  ;;  %v4313_v23 = vadd.f32 1.0, %v4303_v30 }
 0x2c6   : > { %v2470_v9 = vsel %vm2442_vm1, %v2400_v1, %v3961_v16  ;;  %v1985_v54 = vmul.f32 %v1921_v45, %v1793_v48  ;;  %v1795_v13 = vmul.f32 %v3102_v37, %v1731_v46  ;;  %3109 = vrcp.f32 %v4313_v23  ;;  %v2189_v45 = vpop.permute.xlu0 %2188 }
 0x2c7   : > { %2601 = vst [vmem:[#allocation6 + $0xc0] sm:$0xff] %v2470_v9  ;;  %v1669_v37 = vmul.f32 %v3106_v59, %v4285_v61 }
 0x2c8   : > { %2343 = vperm.xlu1 %2982, %v1985_v54   ;;  %v1859_v56 = vmul.f32 %v1795_v13, %v4257_v26 }
 0x2c9   : > { %v1441_v12 = vld [vmem:[%s3405_s27 + $0xc8] sm:$0xff] }
 0x2ca   : > { %2536 = vst [vmem:[%s3973_s7 + $0xb8] sm:$0xff] %v2469_v51  ;;  %v2017_v42 = vadd.f32 %v1441_v12, %v3821_v19  ;;  %v1858_v51 = vmul.f32 %v1794_v6, %v4243_v3  ;;  %v1668_v19 = vmul.f32 %v3104_v52, %v4271_v25 }
 0x2cc   : > { %v2401_v12 = vmul.f32 %v2184_v29, %v2017_v42  ;;  %v1922_v33 = vsub.f32 2.0, %v1858_v51  ;;  %v1732_v3 = vsub.f32 2.0, %v1668_v19  ;;  %v3108_v51 = vpop.eup %3107  ;;  %v2194_v29 = vpop.permute.xlu1 %2193 }
 0x2cd   : > { %v1670_v19 = vmul.f32 %v3108_v51, %v4299_v11 }
 0x2ce   : > { %v2471_v43 = vsel %vm2442_vm1, %v2401_v12, %v3961_v16  ;;  %v1986_v27 = vmul.f32 %v1922_v33, %v1794_v6  ;;  %v1796_v42 = vmul.f32 %v3104_v52, %v1732_v3 }
 0x2cf   : > { %2602 = vst [vmem:[#allocation6 + $0xc8] sm:$0xff] %v2471_v43 }
 0x2d0   : > { %2348 = vperm.xlu0 %2981, %v1986_v27   ;;  %v3110_v27 = vpop.eup %3109 }
 0x2d1   : > { %v1442_v28 = vld [vmem:[%s3405_s27 + $0xd0] sm:$0xff] }
 0x2d2   : > { %2537 = vst [vmem:[%s3973_s7 + $0xc0] sm:$0xff] %v2470_v9  ;;  %v2018_v48 = vadd.f32 %v1442_v28, %v3829_v10  ;;  %v1923_v10 = vsub.f32 2.0, %v1859_v56  ;;  %v1733_v9 = vsub.f32 2.0, %v1669_v37  ;;  %v1860_v28 = vmul.f32 %v1796_v42, %v4271_v25 }
 0x2d3   : > { %v1671_v56 = vmul.f32 %v3110_v27, %v4313_v23 }
 0x2d4   : > { %v2402_v5 = vmul.f32 %v2189_v45, %v2018_v48  ;;  %v1987_v54 = vmul.f32 %v1923_v10, %v1795_v13  ;;  %v1797_v12 = vmul.f32 %v3106_v59, %v1733_v9  ;;  %v1734_v48 = vsub.f32 2.0, %v1670_v19 }
 0x2d6   : > { %v2472_v6 = vsel %vm2442_vm1, %v2402_v5, %v3961_v16  ;;  %2353 = vperm.xlu1 %2982, %v1987_v54   ;;  %v1798_v45 = vmul.f32 %v3108_v51, %v1734_v48  ;;  %v1735_v5 = vsub.f32 2.0, %v1671_v56 }
 0x2d7   : > { %2603 = vst [vmem:[#allocation6 + $0xd0] sm:$0xff] %v2472_v6 }
 0x2d9   : > { %v1443_v1 = vld [vmem:[%s3405_s27 + $0xd8] sm:$0xff] }
 0x2da   : > { %2538 = vst [vmem:[%s3973_s7 + $0xc8] sm:$0xff] %v2471_v43  ;;  %v2019_v46 = vadd.f32 %v1443_v1, %v3837_v63  ;;  %v1924_v63 = vsub.f32 2.0, %v1860_v28  ;;  %v1861_v43 = vmul.f32 %v1797_v12, %v4285_v61  ;;  %v2199_v1 = vpop.permute.xlu0 %2198 }
 0x2dc   : > { %v2403_v52 = vmul.f32 %v2194_v29, %v2019_v46  ;;  %v1988_v3 = vmul.f32 %v1924_v63, %v1796_v42  ;;  %v1862_v42 = vmul.f32 %v1798_v45, %v4299_v11  ;;  %v2204_v46 = vpop.permute.xlu1 %2203 }
 0x2de   : > { %v2473_v13 = vsel %vm2442_vm1, %v2403_v52, %v3961_v16  ;;  %2358 = vperm.xlu0 %2981, %v1988_v3   ;;  %v1926_v54 = vsub.f32 2.0, %v1862_v42  ;;  %v2209_v29 = vpop.permute.xlu0 %2208  ;;  %v4616_v42 = vld [vmem:[#allocation15_spill] sm:$0xff] }
 0x2df   : > { %2604 = vst [vmem:[#allocation6 + $0xd8] sm:$0xff] %v2473_v13 }
 0x2e0   : > { %v1990_v51 = vmul.f32 %v1926_v54, %v1798_v45 }
 0x2e1   : > { %v1444_v26 = vld [vmem:[%s3405_s27 + $0xe0] sm:$0xff] }
 0x2e2   : > { %2539 = vst [vmem:[%s3973_s7 + $0xd0] sm:$0xff] %v2472_v6  ;;  %v2020_v33 = vadd.f32 %v1444_v26, %v3845_v58  ;;  %v1925_v58 = vsub.f32 2.0, %v1861_v43  ;;  %v1799_v26 = vmul.f32 %v3110_v27, %v1735_v5  ;;  %2368 = vperm.xlu0 %2981, %v1990_v51  }
 0x2e4   : > { %v2404_v59 = vmul.f32 %v2199_v1, %v2020_v33  ;;  %v1989_v61 = vmul.f32 %v1925_v58, %v1797_v12  ;;  %v1863_v11 = vmul.f32 %v1799_v26, %v4313_v23  ;;  %v2214_v23 = vpop.permute.xlu1 %2213 }
 0x2e6   : > { %v2474_v10 = vsel %vm2442_vm1, %v2404_v59, %v3961_v16  ;;  %2363 = vperm.xlu1 %2982, %v1989_v61   ;;  %v1927_v63 = vsub.f32 2.0, %v1863_v11 }
 0x2e7   : > { %2605 = vst [vmem:[#allocation6 + $0xe0] sm:$0xff] %v2474_v10 }
 0x2e8   : > { %v2224_v59 = vpop.permute.xlu1 %2223 }
 0x2e9   : > { %v1445_v25 = vld [vmem:[%s3405_s27 + $0xe8] sm:$0xff] }
 0x2ea   : > { %2540 = vst [vmem:[%s3973_s7 + $0xd8] sm:$0xff] %v2473_v13  ;;  %v2021_v37 = vadd.f32 %v1445_v25, %v3853_v15  ;;  %2541 = vst [vmem:[%s3973_s7 + $0xe0] sm:$0xff] %v2474_v10 }
 0x2ec   : > { %v2405_v6 = vmul.f32 %v2204_v46, %v2021_v37 }
 0x2ee   : > { %v2475_v15 = vsel %vm2442_vm1, %v2405_v6, %v3961_v16 }
 0x2ef   : > { %2606 = vst [vmem:[#allocation6 + $0xe8] sm:$0xff] %v2475_v15 }
 0x2f1   : > { %v1446_v9 = vld [vmem:[%s3405_s27 + $0xf0] sm:$0xff] }
 0x2f2   : > { %v2022_v28 = vadd.f32 %v1446_v9, %v3861_v44  ;;  %2542 = vst [vmem:[%s3973_s7 + $0xe8] sm:$0xff] %v2475_v15  ;;  %v1991_v44 = vmul.f32 %v1927_v63, %v1799_v26  ;;  %v2234_v9 = vpop.permute.xlu1 %2233  ;;  %v4617_v26 = vld [vmem:[#allocation16_spill] sm:$0xff] }
 0x2f4   : > { %v2406_v52 = vmul.f32 %v2209_v29, %v2022_v28  ;;  %2373 = vperm.xlu1 %2982, %v1991_v44  }
 0x2f6   : > { %v2476_v12 = vsel %vm2442_vm1, %v2406_v52, %v3961_v16  ;;  %v2244_v63 = vpop.permute.xlu1 %2243 }
 0x2f7   : > { %2607 = vst [vmem:[#allocation6 + $0xf0] sm:$0xff] %v2476_v12 }
 0x2f9   : > { %v1447_v19 = vld [vmem:[%s3405_s27 + $0xf8] sm:$0xff] }
 0x2fa   : > { %v2023_v33 = vadd.f32 %v1447_v19, %v3869_v8  ;;  %2543 = vst [vmem:[%s3973_s7 + $0xf0] sm:$0xff] %v2476_v12  ;;  %v2219_v8 = vpop.permute.xlu0 %2218  ;;  %v4618_v19 = vld [vmem:[#allocation17_spill] sm:$0xff] }
 0x2fc   : > { %v2407_v13 = vmul.f32 %v2214_v23, %v2023_v33  ;;  %v4619_v23 = vld [vmem:[#allocation18_spill] sm:$0xff] }
 0x2fe   : > { %v2477_v3 = vsel %vm2442_vm1, %v2407_v13, %v3961_v16  ;;  %v2229_v5 = vpop.permute.xlu0 %2228 }
 0x2ff   : > { %2608 = vst [vmem:[#allocation6 + $0xf8] sm:$0xff] %v2477_v3 }
 0x301   : > { %v1448_v48 = vld [vmem:[%s3405_s27 + $0x100] sm:$0xff] }
 0x302   : > { %v2024_v25 = vadd.f32 %v1448_v48, %v3880_v50  ;;  %2544 = vst [vmem:[%s3973_s7 + $0xf8] sm:$0xff] %v2477_v3  ;;  %v2239_v28 = vpop.permute.xlu0 %2238 }
 0x304   : > { %v2408_v27 = vmul.f32 %v2219_v8, %v2024_v25 }
 0x306   : > { %v2478_v1 = vsel %vm2442_vm1, %v2408_v27, %v3961_v16  ;;  %v2249_v13 = vpop.permute.xlu0 %2248  ;;  %v2254_v27 = vpop.permute.xlu1 %2253 }
 0x307   : > { %2609 = vst [vmem:[#allocation6 + $0x100] sm:$0xff] %v2478_v1 }
 0x309   : > { %v1449_v43 = vld [vmem:[%s3405_s27 + $0x108] sm:$0xff] }
 0x30a   : > { %v2025_v56 = vadd.f32 %v1449_v43, %v3892_v55  ;;  %2545 = vst [vmem:[%s3973_s7 + $0x100] sm:$0xff] %v2478_v1 }
 0x30c   : > { %v2409_v45 = vmul.f32 %v2224_v59, %v2025_v56 }
 0x30e   : > { %v2479_v50 = vsel %vm2442_vm1, %v2409_v45, %v3961_v16  ;;  %v2259_v45 = vpop.permute.xlu0 %2258 }
 0x30f   : > { %2610 = vst [vmem:[#allocation6 + $0x108] sm:$0xff] %v2479_v50 }
 0x311   : > { %v1450_v58 = vld [vmem:[%s3405_s27 + $0x110] sm:$0xff] }
 0x312   : > { %v2026_v37 = vadd.f32 %v1450_v58, %v3901_v32  ;;  %2546 = vst [vmem:[%s3973_s7 + $0x108] sm:$0xff] %v2479_v50 }
 0x314   : > { %v2410_v61 = vmul.f32 %v2229_v5, %v2026_v37 }
 0x316   : > { %v2480_v55 = vsel %vm2442_vm1, %v2410_v61, %v3961_v16 }
 0x317   : > { %2611 = vst [vmem:[#allocation6 + $0x110] sm:$0xff] %v2480_v55 }
 0x319   : > { %v1451_v10 = vld [vmem:[%s3405_s27 + $0x118] sm:$0xff] }
 0x31a   : > { %v2027_v46 = vadd.f32 %v1451_v10, %v4616_v42  ;;  %2547 = vst [vmem:[%s3973_s7 + $0x110] sm:$0xff] %v2480_v55  ;;  %v2264_v10 = vpop.permute.xlu1 %2263 }
 0x31c   : > { %v2411_v54 = vmul.f32 %v2234_v9, %v2027_v46  ;;  %v2269_v46 = vpop.permute.xlu0 %2268 }
 0x31e   : > { %v2481_v32 = vsel %vm2442_vm1, %v2411_v54, %v3961_v16 }
 0x31f   : > { %2612 = vst [vmem:[#allocation6 + $0x118] sm:$0xff] %v2481_v32 }
 0x321   : > { %v1452_v6 = vld [vmem:[%s3405_s27 + $0x120] sm:$0xff] }
 0x322   : > { %v2028_v15 = vadd.f32 %v1452_v6, %v4617_v26  ;;  %2548 = vst [vmem:[%s3973_s7 + $0x118] sm:$0xff] %v2481_v32  ;;  %v2274_v32 = vpop.permute.xlu1 %2273 }
 0x324   : > { %v2412_v11 = vmul.f32 %v2239_v28, %v2028_v15 }
 0x326   : > { %v2482_v29 = vsel %vm2442_vm1, %v2412_v11, %v3961_v16 }
 0x327   : > { %2613 = vst [vmem:[#allocation6 + $0x120] sm:$0xff] %v2482_v29 }
 0x329   : > { %v1453_v51 = vld [vmem:[%s3405_s27 + $0x128] sm:$0xff] }
 0x32a   : > { %v2029_v52 = vadd.f32 %v1453_v51, %v4618_v19  ;;  %2549 = vst [vmem:[%s3973_s7 + $0x120] sm:$0xff] %v2482_v29  ;;  %v2279_v51 = vpop.permute.xlu0 %2278 }
 0x32c   : > { %v2413_v33 = vmul.f32 %v2244_v63, %v2029_v52  ;;  %v2284_v52 = vpop.permute.xlu1 %2283 }
 0x32e   : > { %v2483_v44 = vsel %vm2442_vm1, %v2413_v33, %v3961_v16 }
 0x32f   : > { %2614 = vst [vmem:[#allocation6 + $0x128] sm:$0xff] %v2483_v44 }
 0x331   : > { %v1454_v12 = vld [vmem:[%s3405_s27 + $0x130] sm:$0xff] }
 0x332   : > { %v2030_v48 = vadd.f32 %v1454_v12, %v4619_v23  ;;  %2550 = vst [vmem:[%s3973_s7 + $0x128] sm:$0xff] %v2483_v44  ;;  %v2289_v44 = vpop.permute.xlu0 %2288 }
 0x334   : > { %v2414_v25 = vmul.f32 %v2249_v13, %v2030_v48 }
 0x336   : > { %v2484_v8 = vsel %vm2442_vm1, %v2414_v25, %v3961_v16 }
 0x337   : > { %2615 = vst [vmem:[#allocation6 + $0x130] sm:$0xff] %v2484_v8 }
 0x339   : > { %v1455_v3 = vld [vmem:[%s3405_s27 + $0x138] sm:$0xff] }
 0x33a   : > { %v2031_v43 = vadd.f32 %v1455_v3, %v3965_v7  ;;  %2551 = vst [vmem:[%s3973_s7 + $0x130] sm:$0xff] %v2484_v8  ;;  %v2294_v3 = vpop.permute.xlu1 %2293 }
 0x33c   : > { %v2415_v56 = vmul.f32 %v2254_v27, %v2031_v43  ;;  %v2299_v27 = vpop.permute.xlu0 %2298 }
 0x33e   : > { %v2485_v59 = vsel %vm2442_vm1, %v2415_v56, %v3961_v16 }
 0x33f   : > { %2616 = vst [vmem:[#allocation6 + $0x138] sm:$0xff] %v2485_v59 }
 0x341   : > { %v1456_v1 = vld [vmem:[%s3405_s27 + $0x140] sm:$0xff] }
 0x342   : > { %v2032_v58 = vadd.f32 %v1456_v1, %v3981_v0  ;;  %2552 = vst [vmem:[%s3973_s7 + $0x138] sm:$0xff] %v2485_v59 }
 0x344   : > { %v2416_v37 = vmul.f32 %v2259_v45, %v2032_v58  ;;  %v2304_v58 = vpop.permute.xlu1 %2303 }
 0x346   : > { %v2486_v7 = vsel %vm2442_vm1, %v2416_v37, %v3961_v16 }
 0x347   : > { %2617 = vst [vmem:[#allocation6 + $0x140] sm:$0xff] %v2486_v7 }
 0x349   : > { %v1457_v50 = vld [vmem:[%s3405_s27 + $0x148] sm:$0xff] }
 0x34a   : > { %v2033_v5 = vadd.f32 %v1457_v50, %v3995_v14  ;;  %2553 = vst [vmem:[%s3973_s7 + $0x140] sm:$0xff] %v2486_v7  ;;  %v2309_v7 = vpop.permute.xlu0 %2308 }
 0x34c   : > { %v2417_v55 = vmul.f32 %v2264_v10, %v2033_v5 }
 0x34e   : > { %v2487_v0 = vsel %vm2442_vm1, %v2417_v55, %v3961_v16  ;;  %v2314_v55 = vpop.permute.xlu1 %2313 }
 0x34f   : > { %2618 = vst [vmem:[#allocation6 + $0x148] sm:$0xff] %v2487_v0 }
 0x351   : > { %v1458_v61 = vld [vmem:[%s3405_s27 + $0x150] sm:$0xff] }
 0x352   : > { %v2034_v42 = vadd.f32 %v1458_v61, %v4009_v47  ;;  %2554 = vst [vmem:[%s3973_s7 + $0x148] sm:$0xff] %v2487_v0 }
 0x354   : > { %v2418_v6 = vmul.f32 %v2269_v46, %v2034_v42 }
 0x356   : > { %v2488_v14 = vsel %vm2442_vm1, %v2418_v6, %v3961_v16 }
 0x357   : > { %2619 = vst [vmem:[#allocation6 + $0x150] sm:$0xff] %v2488_v14 }
 0x359   : > { %v1459_v9 = vld [vmem:[%s3405_s27 + $0x158] sm:$0xff] }
 0x35a   : > { %v2035_v54 = vadd.f32 %v1459_v9, %v4023_v35  ;;  %2555 = vst [vmem:[%s3973_s7 + $0x150] sm:$0xff] %v2488_v14  ;;  %v2319_v9 = vpop.permute.xlu0 %2318 }
 0x35c   : > { %v2419_v15 = vmul.f32 %v2274_v32, %v2035_v54  ;;  %v2324_v32 = vpop.permute.xlu1 %2323 }
 0x35e   : > { %v2489_v47 = vsel %vm2442_vm1, %v2419_v15, %v3961_v16 }
 0x35f   : > { %2620 = vst [vmem:[#allocation6 + $0x158] sm:$0xff] %v2489_v47 }
 0x361   : > { %v1460_v26 = vld [vmem:[%s3405_s27 + $0x160] sm:$0xff] }
 0x362   : > { %v2036_v28 = vadd.f32 %v1460_v26, %v4037_v20  ;;  %2556 = vst [vmem:[%s3973_s7 + $0x158] sm:$0xff] %v2489_v47 }
 0x364   : > { %v2420_v29 = vmul.f32 %v2279_v51, %v2036_v28  ;;  %v2329_v28 = vpop.permute.xlu0 %2328 }
 0x366   : > { %v2490_v35 = vsel %vm2442_vm1, %v2420_v29, %v3961_v16 }
 0x367   : > { %2621 = vst [vmem:[#allocation6 + $0x160] sm:$0xff] %v2490_v35 }
 0x369   : > { %v1461_v11 = vld [vmem:[%s3405_s27 + $0x168] sm:$0xff] }
 0x36a   : > { %v2037_v19 = vadd.f32 %v1461_v11, %v4051_v24  ;;  %2557 = vst [vmem:[%s3973_s7 + $0x160] sm:$0xff] %v2490_v35  ;;  %v2334_v35 = vpop.permute.xlu1 %2333 }
 0x36c   : > { %v2421_v12 = vmul.f32 %v2284_v52, %v2037_v19 }
 0x36e   : > { %v2491_v20 = vsel %vm2442_vm1, %v2421_v12, %v3961_v16  ;;  %v2339_v12 = vpop.permute.xlu0 %2338 }
 0x36f   : > { %2622 = vst [vmem:[#allocation6 + $0x168] sm:$0xff] %v2491_v20 }
 0x371   : > { %v1462_v63 = vld [vmem:[%s3405_s27 + $0x170] sm:$0xff] }
 0x372   : > { %v2038_v33 = vadd.f32 %v1462_v63, %v4065_v34  ;;  %2558 = vst [vmem:[%s3973_s7 + $0x168] sm:$0xff] %v2491_v20 }
 0x374   : > { %v2422_v48 = vmul.f32 %v2289_v44, %v2038_v33 }
 0x376   : > { %v2492_v24 = vsel %vm2442_vm1, %v2422_v48, %v3961_v16 }
 0x377   : > { %2623 = vst [vmem:[#allocation6 + $0x170] sm:$0xff] %v2492_v24 }
 0x379   : > { %v1463_v23 = vld [vmem:[%s3405_s27 + $0x178] sm:$0xff] }
 0x37a   : > { %v2039_v13 = vadd.f32 %v1463_v23, %v4079_v31  ;;  %2559 = vst [vmem:[%s3973_s7 + $0x170] sm:$0xff] %v2492_v24  ;;  %v2344_v23 = vpop.permute.xlu1 %2343 }
 0x37c   : > { %v2423_v8 = vmul.f32 %v2294_v3, %v2039_v13  ;;  %v2349_v3 = vpop.permute.xlu0 %2348 }
 0x37e   : > { %v2493_v34 = vsel %vm2442_vm1, %v2423_v8, %v3961_v16 }
 0x37f   : > { %2624 = vst [vmem:[#allocation6 + $0x178] sm:$0xff] %v2493_v34 }
 0x381   : > { %v1464_v25 = vld [vmem:[%s3405_s27 + $0x180] sm:$0xff] }
 0x382   : > { %v2040_v43 = vadd.f32 %v1464_v25, %v4093_v4  ;;  %2560 = vst [vmem:[%s3973_s7 + $0x178] sm:$0xff] %v2493_v34 }
 0x384   : > { %v2424_v56 = vmul.f32 %v2299_v27, %v2040_v43  ;;  %v2354_v43 = vpop.permute.xlu1 %2353 }
 0x386   : > { %v2494_v31 = vsel %vm2442_vm1, %v2424_v56, %v3961_v16 }
 0x387   : > { %2625 = vst [vmem:[#allocation6 + $0x180] sm:$0xff] %v2494_v31 }
 0x389   : > { %v1465_v1 = vld [vmem:[%s3405_s27 + $0x188] sm:$0xff] }
 0x38a   : > { %v2041_v59 = vadd.f32 %v1465_v1, %v4107_v39  ;;  %2561 = vst [vmem:[%s3973_s7 + $0x180] sm:$0xff] %v2494_v31  ;;  %v2359_v31 = vpop.permute.xlu0 %2358 }
 0x38c   : > { %v2425_v50 = vmul.f32 %v2304_v58, %v2041_v59 }
 0x38e   : > { %v2495_v4 = vsel %vm2442_vm1, %v2425_v50, %v3961_v16  ;;  %v2364_v50 = vpop.permute.xlu1 %2363 }
 0x38f   : > { %2626 = vst [vmem:[#allocation6 + $0x188] sm:$0xff] %v2495_v4 }
 0x391   : > { %v1466_v45 = vld [vmem:[%s3405_s27 + $0x190] sm:$0xff] }
 0x392   : > { %v2042_v37 = vadd.f32 %v1466_v45, %v4121_v57  ;;  %2562 = vst [vmem:[%s3973_s7 + $0x188] sm:$0xff] %v2495_v4 }
 0x394   : > { %v2426_v10 = vmul.f32 %v2309_v7, %v2042_v37 }
 0x396   : > { %v2496_v39 = vsel %vm2442_vm1, %v2426_v10, %v3961_v16 }
 0x397   : > { %2627 = vst [vmem:[#allocation6 + $0x190] sm:$0xff] %v2496_v39 }
 0x399   : > { %v1467_v5 = vld [vmem:[%s3405_s27 + $0x198] sm:$0xff] }
 0x39a   : > { %v2043_v61 = vadd.f32 %v1467_v5, %v4135_v21  ;;  %2563 = vst [vmem:[%s3973_s7 + $0x190] sm:$0xff] %v2496_v39  ;;  %v2369_v5 = vpop.permute.xlu0 %2368 }
 0x39c   : > { %v2427_v42 = vmul.f32 %v2314_v55, %v2043_v61  ;;  %v2374_v55 = vpop.permute.xlu1 %2373 }
 0x39e   : > { %v2497_v57 = vsel %vm2442_vm1, %v2427_v42, %v3961_v16 }
 0x39f   : > { %2628 = vst [vmem:[#allocation6 + $0x198] sm:$0xff] %v2497_v57 }
 0x3a1   : > { %v1468_v0 = vld [vmem:[%s3405_s27 + $0x1a0] sm:$0xff] }
 0x3a2   : > { %v2044_v46 = vadd.f32 %v1468_v0, %v4149_v40  ;;  %2564 = vst [vmem:[%s3973_s7 + $0x198] sm:$0xff] %v2497_v57 }
 0x3a4   : > { %v2428_v14 = vmul.f32 %v2319_v9, %v2044_v46 }
 0x3a6   : > { %v2498_v21 = vsel %vm2442_vm1, %v2428_v14, %v3961_v16 }
 0x3a7   : > { %2629 = vst [vmem:[#allocation6 + $0x1a0] sm:$0xff] %v2498_v21 }
 0x3a9   : > { %v1469_v6 = vld [vmem:[%s3405_s27 + $0x1a8] sm:$0xff] }
 0x3aa   : > { %v2045_v54 = vadd.f32 %v1469_v6, %v4163_v49  ;;  %2565 = vst [vmem:[%s3973_s7 + $0x1a0] sm:$0xff] %v2498_v21 }
 0x3ac   : > { %v2429_v15 = vmul.f32 %v2324_v32, %v2045_v54 }
 0x3ae   : > { %v2499_v40 = vsel %vm2442_vm1, %v2429_v15, %v3961_v16 }
 0x3af   : > { %2630 = vst [vmem:[#allocation6 + $0x1a8] sm:$0xff] %v2499_v40 }
 0x3b1   : > { %v1470_v26 = vld [vmem:[%s3405_s27 + $0x1b0] sm:$0xff] }
 0x3b2   : > { %v2046_v47 = vadd.f32 %v1470_v26, %v4177_v41  ;;  %2566 = vst [vmem:[%s3973_s7 + $0x1a8] sm:$0xff] %v2499_v40 }
 0x3b4   : > { %v2430_v11 = vmul.f32 %v2329_v28, %v2046_v47 }
 0x3b6   : > { %v2500_v49 = vsel %vm2442_vm1, %v2430_v11, %v3961_v16 }
 0x3b7   : > { %2631 = vst [vmem:[#allocation6 + $0x1b0] sm:$0xff] %v2500_v49 }
 0x3b9   : > { %v1471_v51 = vld [vmem:[%s3405_s27 + $0x1b8] sm:$0xff] }
 0x3ba   : > { %v2047_v29 = vadd.f32 %v1471_v51, %v4191_v53  ;;  %2567 = vst [vmem:[%s3973_s7 + $0x1b0] sm:$0xff] %v2500_v49 }
 0x3bc   : > { %v2431_v52 = vmul.f32 %v2334_v35, %v2047_v29 }
 0x3be   : > { %v2501_v41 = vsel %vm2442_vm1, %v2431_v52, %v3961_v16 }
 0x3bf   : > { %2632 = vst [vmem:[#allocation6 + $0x1b8] sm:$0xff] %v2501_v41 }
 0x3c1   : > { %v1472_v19 = vld [vmem:[%s3405_s27 + $0x1c0] sm:$0xff] }
 0x3c2   : > { %v2048_v63 = vadd.f32 %v1472_v19, %v4205_v38  ;;  %2568 = vst [vmem:[%s3973_s7 + $0x1b8] sm:$0xff] %v2501_v41 }
 0x3c4   : > { %v2432_v33 = vmul.f32 %v2339_v12, %v2048_v63 }
 0x3c6   : > { %v2502_v53 = vsel %vm2442_vm1, %v2432_v33, %v3961_v16 }
 0x3c7   : > { %2633 = vst [vmem:[#allocation6 + $0x1c0] sm:$0xff] %v2502_v53 }
 0x3c9   : > { %v1473_v20 = vld [vmem:[%s3405_s27 + $0x1c8] sm:$0xff] }
 0x3ca   : > { %v2049_v44 = vadd.f32 %v1473_v20, %v4219_v62  ;;  %2569 = vst [vmem:[%s3973_s7 + $0x1c0] sm:$0xff] %v2502_v53 }
 0x3cc   : > { %v2433_v24 = vmul.f32 %v2344_v23, %v2049_v44 }
 0x3ce   : > { %v2503_v38 = vsel %vm2442_vm1, %v2433_v24, %v3961_v16 }
 0x3cf   : > { %2634 = vst [vmem:[#allocation6 + $0x1c8] sm:$0xff] %v2503_v38 }
 0x3d1   : > { %v1474_v48 = vld [vmem:[%s3405_s27 + $0x1d0] sm:$0xff] }
 0x3d2   : > { %v2050_v13 = vadd.f32 %v1474_v48, %v4233_v18  ;;  %2570 = vst [vmem:[%s3973_s7 + $0x1c8] sm:$0xff] %v2503_v38 }
 0x3d4   : > { %v2434_v8 = vmul.f32 %v2349_v3, %v2050_v13 }
 0x3d6   : > { %v2504_v62 = vsel %vm2442_vm1, %v2434_v8, %v3961_v16 }
 0x3d7   : > { %2635 = vst [vmem:[#allocation6 + $0x1d0] sm:$0xff] %v2504_v62 }
 0x3d9   : > { %v1475_v25 = vld [vmem:[%s3405_s27 + $0x1d8] sm:$0xff] }
 0x3da   : > { %v2051_v34 = vadd.f32 %v1475_v25, %v4247_v2  ;;  %2571 = vst [vmem:[%s3973_s7 + $0x1d0] sm:$0xff] %v2504_v62 }
 0x3dc   : > { %v2435_v1 = vmul.f32 %v2354_v43, %v2051_v34 }
 0x3de   : > { %v2505_v18 = vsel %vm2442_vm1, %v2435_v1, %v3961_v16 }
 0x3df   : > { %2636 = vst [vmem:[#allocation6 + $0x1d8] sm:$0xff] %v2505_v18 }
 0x3e1   : > { %v1476_v27 = vld [vmem:[%s3405_s27 + $0x1e0] sm:$0xff] }
 0x3e2   : > { %v2052_v56 = vadd.f32 %v1476_v27, %v4261_v60  ;;  %2572 = vst [vmem:[%s3973_s7 + $0x1d8] sm:$0xff] %v2505_v18 }
 0x3e4   : > { %v2436_v58 = vmul.f32 %v2359_v31, %v2052_v56 }
 0x3e6   : > { %v2506_v2 = vsel %vm2442_vm1, %v2436_v58, %v3961_v16 }
 0x3e7   : > { %2637 = vst [vmem:[#allocation6 + $0x1e0] sm:$0xff] %v2506_v2 }
 0x3e9   : > { %v1477_v59 = vld [vmem:[%s3405_s27 + $0x1e8] sm:$0xff] }
 0x3ea   : > { %v2053_v45 = vadd.f32 %v1477_v59, %v4275_v22  ;;  %2573 = vst [vmem:[%s3973_s7 + $0x1e0] sm:$0xff] %v2506_v2 }
 0x3ec   : > { %v2437_v37 = vmul.f32 %v2364_v50, %v2053_v45 }
 0x3ee   : > { %v2507_v60 = vsel %vm2442_vm1, %v2437_v37, %v3961_v16 }
 0x3ef   : > { %2638 = vst [vmem:[#allocation6 + $0x1e8] sm:$0xff] %v2507_v60 }
 0x3f1   : > { %v1478_v4 = vld [vmem:[%s3405_s27 + $0x1f0] sm:$0xff] }
 0x3f2   : > { %v2054_v7 = vadd.f32 %v1478_v4, %v4289_v36  ;;  %2574 = vst [vmem:[%s3973_s7 + $0x1e8] sm:$0xff] %v2507_v60 }
 0x3f4   : > { %v2438_v39 = vmul.f32 %v2369_v5, %v2054_v7 }
 0x3f6   : > { %v2508_v22 = vsel %vm2442_vm1, %v2438_v39, %v3961_v16 }
 0x3f7   : > { %2639 = vst [vmem:[#allocation6 + $0x1f0] sm:$0xff] %v2508_v22 }
 0x3f9   : > { %v1479_v10 = vld [vmem:[%s3405_s27 + $0x1f8] sm:$0xff] }
 0x3fa   : > { %v2055_v61 = vadd.f32 %v1479_v10, %v4303_v30  ;;  %2575 = vst [vmem:[%s3973_s7 + $0x1f0] sm:$0xff] %v2508_v22 }
 0x3fc   : > { %v2439_v0 = vmul.f32 %v2374_v55, %v2055_v61 }
 0x3fe   : > { %v2509_v36 = vsel %vm2442_vm1, %v2439_v0, %v3961_v16 }
 0x3ff   : > { %2576 = vst [vmem:[%s3973_s7 + $0x1f8] sm:$0xff] %v2509_v36  ;;  %2640 = vst [vmem:[#allocation6 + $0x1f8] sm:$0xff] %v2509_v36 }
 0x400   : > { %3176 = shalt.err (!%p3173_p10)
}
 0x401   : > { %s3177_s19 = scalar_lea.hbm %s4604_s2, 8192 }
 0x402   : > { %p3178_p12 = scmp.ne.s32.totalorder %s4604_s2, %s3177_s19  ;;  %p3183_p2 = scmp.lt.u32.totalorder %s3177_s19, %s4604_s2 }
 0x404   : > { %p3179_p0 = pnand %p3178_p12, %p4554_p3 }
 0x406   : > { %p3180_p1 = pneg %p3179_p0 }
 0x408   : > { %p3185_p11 = pnand %p3183_p2, %p3180_p1 }
 0x40a   : > { %3188 = shalt.err (!%p3185_p11)
}
 0x40b   : > { %s3255_s26 = smov 128   ;;  %s3256_s28 = smov 8  }
 0x40c   : > { %2914 = dma.vmem_to_hbm [thread:$0]  (%p4554_p3), %s2651_s9, 8192, %s4604_s2, [#allocation5], %s3255_s26, %s3255_s26, %s3256_s28  }
 0x40d   : > { %3220 = dma.done.wait (%p4554_p3), [#allocation5], 8192  }
 0x40e   : > { %3222 = vsyncadd (%p4554_p3), [#allocation5], 4294959104 }
 0x40f PF: > { %s16_s14 = sadd.s32 1, %s3245_s14   ;;  %s4621_s9 = smov %s3229_s10 }
 0x410   : > { %p13_p13 = scmp.ge.s32.totalorder %s16_s14, 5   ;;  %s4622_s10 = smov %s3233_s11 }
 0x411   : > { %s4623_s11 = smov %s3323_s21  ;;  %s4624_s12 = smov %s3241_s13 }
 0x412   : > { %s4625_s13 = smov %s4627_s16  ;;  %15 = sbr.rel (!%p13_p13) target bundleno = 5 (0x5), region = 74 }
 0x419   :  { %2666 = vsyncpa [#allocation4], 1 }
 0x41a   :  { %2668 = vsyncpa [#allocation4 + $0x1], 1 }
 0x41b   :  { %2669 = vsyncpa [#allocation5], 1 }
 0x41c   :  { %2671 = vsyncpa [#allocation5 + $0x1], 1 }

</bundles_post_ra>
